<compile_context>
chip_gen: v7x
topology: tpu7x:2x2x1
jax: 0.10.0
libtpu: 0.0.40
codegen_flags: <defaults>
</compile_context>

<pallas_src>
import jax
import jax.numpy as jnp
from jax.experimental import pallas as pl
from jax.experimental.pallas import tpu as pltpu

NB_MOVIES = 1682   # MovieLens-style movie count (deliberately not 128-aligned)
H1 = 20
H2 = 10
TB = 128           # batch tile: >= 2 pipelined steps per TensorCore at BATCH=512
BATCH = 512


def sae_kernel(x_ref,
               w1_ref, b1_ref,
               w2_ref, b2_ref,
               w3_ref, b3_ref,
               w4_ref, b4_ref,
               o_ref):
    # fc1: cast the f32 input tile to bf16 in-register (no extra HBM pass),
    # bf16 x bf16 MXU matmul with f32 accumulation; bias + sigmoid in f32.
    x = x_ref[...].astype(jnp.bfloat16)
    h = jnp.dot(x, w1_ref[...], preferred_element_type=jnp.float32)
    h = jax.nn.sigmoid(h + b1_ref[...])

    # fc2 / fc3: tiny (20x10 / 10x20) f32 matmuls; <0.5% of FLOPs and bytes,
    # so no padding/relayout -- each is a single MXU push.
    h = jnp.dot(h, w2_ref[...], preferred_element_type=jnp.float32) + b2_ref[...]
    h = jax.nn.sigmoid(h)
    h = jnp.dot(h, w3_ref[...], preferred_element_type=jnp.float32) + b3_ref[...]
    h = jax.nn.sigmoid(h)

    # fc4: bf16 code x bf16 weight on the MXU, f32 accumulate, f32 bias add,
    # bf16 store (13 dense lane groups + one masked tail per row block).
    out = jnp.dot(h.astype(jnp.bfloat16), w4_ref[...],
                  preferred_element_type=jnp.float32) + b4_ref[...]
    o_ref[...] = out.astype(o_ref.dtype)


def sae_forward(x, packed_params, *, tb=TB):
    """x: [B, nb_movies] float32 ratings.  packed_params: see pack_params()."""
    (w1, b1), (w2, b2), (w3, b3), (w4, b4) = packed_params
    B, M = x.shape
    assert w1.shape == (M, H1) and w4.shape == (H1, M) and b4.shape == (1, M)
    assert tb % 8 == 0

    # Only the batch axis ever needs padding (and only if B % tb != 0);
    # the movie axis is used at its natural, unpadded width everywhere.
    b_pad = pl.cdiv(B, tb) * tb
    xp = x if b_pad == B else jnp.pad(x, ((0, b_pad - B), (0, 0)))

    params = (w1, b1, w2, b2, w3, b3, w4, b4)
    param_bytes = sum(int(p.size) * p.dtype.itemsize for p in params)
    cost = pl.CostEstimate(
        flops=2 * b_pad * (M * H1 + H1 * H2 + H2 * H1 + H1 * M),
        transcendentals=b_pad * (H1 + H2 + H1),
        bytes_accessed=int(xp.size) * 4 + b_pad * M * 2 + param_bytes,
    )

    def invariant(shape):
        # Whole-array block, constant block index -> resident across steps.
        return pl.BlockSpec(shape, lambda i: (0, 0))

    out = pl.pallas_call(
        sae_kernel,
        out_shape=jax.ShapeDtypeStruct((b_pad, M), jnp.bfloat16),
        grid_spec=pltpu.PrefetchScalarGridSpec(
            num_scalar_prefetch=0,
            grid=(b_pad // tb,),
            in_specs=[
                pl.BlockSpec((tb, M), lambda i: (i, 0)),   # x tile (last dim == full dim)
                invariant(w1.shape), invariant(b1.shape),
                invariant(w2.shape), invariant(b2.shape),
                invariant(w3.shape), invariant(b3.shape),
                invariant(w4.shape), invariant(b4.shape),
            ],
            out_specs=pl.BlockSpec((tb, M), lambda i: (i, 0)),
        ),
        compiler_params=pltpu.CompilerParams(
            dimension_semantics=("parallel",)),   # batch tiles shard across TCs (v7x)
        cost_estimate=cost,
    )(xp, w1, b1, w2, b2, w3, b3, w4, b4)

    return out if b_pad == B else out[:B]


def init_params(key, nb_movies=NB_MOVIES):
    """Synthetic params matching nn.Linear's default init range.
    Weights stored as [in, out] (so kernel computes x @ W + b == PyTorch
    x @ W.T + b); biases as [1, out] (2-D for TPU layout)."""
    def linear(k, fan_in, fan_out):
        kw, kb = jax.random.split(k)
        bound = float(fan_in) ** -0.5
        w = jax.random.uniform(kw, (fan_in, fan_out), jnp.float32, -bound, bound)
        b = jax.random.uniform(kb, (1, fan_out), jnp.float32, -bound, bound)
        return w, b

    k1, k2, k3, k4 = jax.random.split(key, 4)
    return (
        linear(k1, nb_movies, H1),
        linear(k2, H1, H2),
        linear(k3, H2, H1),
        linear(k4, H1, nb_movies),
    )


def pack_params(params):
    """Cast only the two large weights to bf16 (halves their DMA bytes and
    doubles MXU throughput).  No padding anywhere: the kernel works at the
    natural 1682-wide movie axis."""
    (w1, b1), (w2, b2), (w3, b3), (w4, b4) = params
    return ((w1.astype(jnp.bfloat16), b1),
            (w2, b2),
            (w3, b3),
            (w4.astype(jnp.bfloat16), b4))


def sae_reference(x, packed_params):
    """Pure-JAX reference replicating the kernel's quantization exactly
    (bf16 matmul operands, f32 accumulation/activations); returns f32."""
    (w1, b1), (w2, b2), (w3, b3), (w4, b4) = packed_params
    xb = x.astype(jnp.bfloat16)
    h = jax.nn.sigmoid(jnp.dot(xb, w1, preferred_element_type=jnp.float32) + b1)
    h = jax.nn.sigmoid(h @ w2 + b2)
    h = jax.nn.sigmoid(h @ w3 + b3)
    out = jnp.dot(h.astype(jnp.bfloat16), w4,
                  preferred_element_type=jnp.float32) + b4
    return out


if __name__ == "__main__":
    key = jax.random.PRNGKey(0)
    kx, kp = jax.random.split(key)

    # ratings-style input: [batch, nb_movies]
    x = jax.random.uniform(kx, (BATCH, NB_MOVIES), jnp.float32, 0.0, 5.0)
    params = init_params(kp)
    packed = pack_params(params)

    out = jax.block_until_ready(sae_forward(x, packed))
    assert out.shape == (BATCH, NB_MOVIES)
    assert out.dtype == jnp.bfloat16

    ref = sae_reference(x, packed)                        # f32, same quantization path
    ref_b = ref.astype(jnp.bfloat16).astype(jnp.float32)  # parity target for bf16 store
    err = float(jnp.max(jnp.abs(out.astype(jnp.float32) - ref_b)))
    # Tolerance: ~2 bf16 ulps at the output's largest magnitude (covers MXU vs
    # XLA accumulation-order differences landing across a rounding boundary).
    tol = 2.0 * (2.0 ** -8) * max(1.0, float(jnp.max(jnp.abs(ref))))
    assert err <= tol, f"max abs err {err} > tol {tol}"

    print("KERNEL_OK")
</pallas_src>

<mosaic_0001>
module attributes {stable_mosaic.version = 11 : i64} {
  func.func @sae_kernel(%arg0: i32, %arg1: memref<128x1682xf32, #tpu.memory_space<vmem>>, %arg2: memref<1682x20xbf16, #tpu.memory_space<vmem>>, %arg3: memref<1x20xf32, #tpu.memory_space<vmem>>, %arg4: memref<20x10xf32, #tpu.memory_space<vmem>>, %arg5: memref<1x10xf32, #tpu.memory_space<vmem>>, %arg6: memref<10x20xf32, #tpu.memory_space<vmem>>, %arg7: memref<1x20xf32, #tpu.memory_space<vmem>>, %arg8: memref<20x1682xbf16, #tpu.memory_space<vmem>>, %arg9: memref<1x1682xf32, #tpu.memory_space<vmem>>, %arg10: memref<128x1682xbf16, #tpu.memory_space<vmem>>) attributes {dimension_semantics = [#tpu.dimension_semantics<parallel>], iteration_bounds = array<i64: 4>, scalar_prefetch = 0 : i64, scratch_operands = 0 : i64, tpu.core_type = #tpu.core_type<tc>, window_params = [{transform_indices = @transform_0, window_bounds = array<i64: 128, 1682>}, {pipeline_mode = #tpu.pipeline_mode<synchronous>, transform_indices = @transform_1, window_bounds = array<i64: 1682, 20>}, {pipeline_mode = #tpu.pipeline_mode<synchronous>, transform_indices = @transform_2, window_bounds = array<i64: 1, 20>}, {pipeline_mode = #tpu.pipeline_mode<synchronous>, transform_indices = @transform_3, window_bounds = array<i64: 20, 10>}, {pipeline_mode = #tpu.pipeline_mode<synchronous>, transform_indices = @transform_4, window_bounds = array<i64: 1, 10>}, {pipeline_mode = #tpu.pipeline_mode<synchronous>, transform_indices = @transform_5, window_bounds = array<i64: 10, 20>}, {pipeline_mode = #tpu.pipeline_mode<synchronous>, transform_indices = @transform_6, window_bounds = array<i64: 1, 20>}, {pipeline_mode = #tpu.pipeline_mode<synchronous>, transform_indices = @transform_7, window_bounds = array<i64: 20, 1682>}, {pipeline_mode = #tpu.pipeline_mode<synchronous>, transform_indices = @transform_8, window_bounds = array<i64: 1, 1682>}, {transform_indices = @transform_9, window_bounds = array<i64: 128, 1682>}]} {
    %c0 = arith.constant 0 : index
    %c0_0 = arith.constant 0 : index
    %0 = vector.load %arg1[%c0, %c0_0] : memref<128x1682xf32, #tpu.memory_space<vmem>>, vector<128x1682xf32>
    %1 = arith.truncf %0 : vector<128x1682xf32> to vector<128x1682xbf16>
    %c0_1 = arith.constant 0 : index
    %c0_2 = arith.constant 0 : index
    %2 = vector.load %arg2[%c0_1, %c0_2] : memref<1682x20xbf16, #tpu.memory_space<vmem>>, vector<1682x20xbf16>
    %cst = arith.constant dense<0.000000e+00> : vector<128x20xf32>
    %3 = tpu.matmul %1, %2, %cst {dimension_numbers = #tpu.dot_dimension_numbers<[1], [0], [0], [1], [0, 0, 1, 1], [], []>} : vector<128x1682xbf16>, vector<1682x20xbf16>, vector<128x20xf32> -> vector<128x20xf32>
    %c0_3 = arith.constant 0 : index
    %c0_4 = arith.constant 0 : index
    %4 = vector.load %arg3[%c0_3, %c0_4] : memref<1x20xf32, #tpu.memory_space<vmem>>, vector<1x20xf32>
    %5 = vector.broadcast %4 : vector<1x20xf32> to vector<128x20xf32>
    %6 = arith.addf %3, %5 : vector<128x20xf32>
    %7 = arith.negf %6 : vector<128x20xf32>
    %8 = math.exp %7 : vector<128x20xf32>
    %cst_5 = arith.constant 1.000000e+00 : f32
    %9 = vector.broadcast %cst_5 : f32 to vector<128x20xf32>
    %10 = arith.addf %9, %8 : vector<128x20xf32>
    %11 = arith.divf %9, %10 : vector<128x20xf32>
    %c0_6 = arith.constant 0 : index
    %c0_7 = arith.constant 0 : index
    %12 = vector.load %arg4[%c0_6, %c0_7] : memref<20x10xf32, #tpu.memory_space<vmem>>, vector<20x10xf32>
    %cst_8 = arith.constant dense<0.000000e+00> : vector<128x10xf32>
    %13 = tpu.matmul %11, %12, %cst_8 {dimension_numbers = #tpu.dot_dimension_numbers<[1], [0], [0], [1], [0, 0, 1, 1], [], []>} : vector<128x20xf32>, vector<20x10xf32>, vector<128x10xf32> -> vector<128x10xf32>
    %c0_9 = arith.constant 0 : index
    %c0_10 = arith.constant 0 : index
    %14 = vector.load %arg5[%c0_9, %c0_10] : memref<1x10xf32, #tpu.memory_space<vmem>>, vector<1x10xf32>
    %15 = vector.broadcast %14 : vector<1x10xf32> to vector<128x10xf32>
    %16 = arith.addf %13, %15 : vector<128x10xf32>
    %17 = arith.negf %16 : vector<128x10xf32>
    %18 = math.exp %17 : vector<128x10xf32>
    %cst_11 = arith.constant 1.000000e+00 : f32
    %19 = vector.broadcast %cst_11 : f32 to vector<128x10xf32>
    %20 = arith.addf %19, %18 : vector<128x10xf32>
    %21 = arith.divf %19, %20 : vector<128x10xf32>
    %c0_12 = arith.constant 0 : index
    %c0_13 = arith.constant 0 : index
    %22 = vector.load %arg6[%c0_12, %c0_13] : memref<10x20xf32, #tpu.memory_space<vmem>>, vector<10x20xf32>
    %cst_14 = arith.constant dense<0.000000e+00> : vector<128x20xf32>
    %23 = tpu.matmul %21, %22, %cst_14 {dimension_numbers = #tpu.dot_dimension_numbers<[1], [0], [0], [1], [0, 0, 1, 1], [], []>} : vector<128x10xf32>, vector<10x20xf32>, vector<128x20xf32> -> vector<128x20xf32>
    %c0_15 = arith.constant 0 : index
    %c0_16 = arith.constant 0 : index
    %24 = vector.load %arg7[%c0_15, %c0_16] : memref<1x20xf32, #tpu.memory_space<vmem>>, vector<1x20xf32>
    %25 = vector.broadcast %24 : vector<1x20xf32> to vector<128x20xf32>
    %26 = arith.addf %23, %25 : vector<128x20xf32>
    %27 = arith.negf %26 : vector<128x20xf32>
    %28 = math.exp %27 : vector<128x20xf32>
    %cst_17 = arith.constant 1.000000e+00 : f32
    %29 = vector.broadcast %cst_17 : f32 to vector<128x20xf32>
    %30 = arith.addf %29, %28 : vector<128x20xf32>
    %31 = arith.divf %29, %30 : vector<128x20xf32>
    %32 = arith.truncf %31 : vector<128x20xf32> to vector<128x20xbf16>
    %c0_18 = arith.constant 0 : index
    %c0_19 = arith.constant 0 : index
    %33 = vector.load %arg8[%c0_18, %c0_19] : memref<20x1682xbf16, #tpu.memory_space<vmem>>, vector<20x1682xbf16>
    %cst_20 = arith.constant dense<0.000000e+00> : vector<128x1682xf32>
    %34 = tpu.matmul %32, %33, %cst_20 {dimension_numbers = #tpu.dot_dimension_numbers<[1], [0], [0], [1], [0, 0, 1, 1], [], []>} : vector<128x20xbf16>, vector<20x1682xbf16>, vector<128x1682xf32> -> vector<128x1682xf32>
    %c0_21 = arith.constant 0 : index
    %c0_22 = arith.constant 0 : index
    %35 = vector.load %arg9[%c0_21, %c0_22] : memref<1x1682xf32, #tpu.memory_space<vmem>>, vector<1x1682xf32>
    %36 = vector.broadcast %35 : vector<1x1682xf32> to vector<128x1682xf32>
    %37 = arith.addf %34, %36 : vector<128x1682xf32>
    %38 = arith.truncf %37 : vector<128x1682xf32> to vector<128x1682xbf16>
    %c0_23 = arith.constant 0 : index
    %c0_24 = arith.constant 0 : index
    %39 = vector.load %arg10[%c0_23, %c0_24] : memref<128x1682xbf16, #tpu.memory_space<vmem>>, vector<128x1682xbf16>
    tpu.vector_store %arg10[%c0_23, %c0_24], %38 {strides = array<i32>} : memref<128x1682xbf16, #tpu.memory_space<vmem>>, vector<128x1682xbf16>,
    return
  }
  func.func @transform_0(%arg0: i32) -> (i32, i32) {
    %c0_i32 = arith.constant 0 : i32
    %c0_i32_0 = arith.constant 0 : i32
    return %arg0, %c0_i32 : i32, i32
  }
  func.func @transform_1(%arg0: i32) -> (i32, i32) {
    %c0_i32 = arith.constant 0 : i32
    %c0_i32_0 = arith.constant 0 : i32
    %c0_i32_1 = arith.constant 0 : i32
    return %c0_i32, %c0_i32_0 : i32, i32
  }
  func.func @transform_2(%arg0: i32) -> (i32, i32) {
    %c0_i32 = arith.constant 0 : i32
    %c0_i32_0 = arith.constant 0 : i32
    %c0_i32_1 = arith.constant 0 : i32
    return %c0_i32, %c0_i32_0 : i32, i32
  }
  func.func @transform_3(%arg0: i32) -> (i32, i32) {
    %c0_i32 = arith.constant 0 : i32
    %c0_i32_0 = arith.constant 0 : i32
    %c0_i32_1 = arith.constant 0 : i32
    return %c0_i32, %c0_i32_0 : i32, i32
  }
  func.func @transform_4(%arg0: i32) -> (i32, i32) {
    %c0_i32 = arith.constant 0 : i32
    %c0_i32_0 = arith.constant 0 : i32
    %c0_i32_1 = arith.constant 0 : i32
    return %c0_i32, %c0_i32_0 : i32, i32
  }
  func.func @transform_5(%arg0: i32) -> (i32, i32) {
    %c0_i32 = arith.constant 0 : i32
    %c0_i32_0 = arith.constant 0 : i32
    %c0_i32_1 = arith.constant 0 : i32
    return %c0_i32, %c0_i32_0 : i32, i32
  }
  func.func @transform_6(%arg0: i32) -> (i32, i32) {
    %c0_i32 = arith.constant 0 : i32
    %c0_i32_0 = arith.constant 0 : i32
    %c0_i32_1 = arith.constant 0 : i32
    return %c0_i32, %c0_i32_0 : i32, i32
  }
  func.func @transform_7(%arg0: i32) -> (i32, i32) {
    %c0_i32 = arith.constant 0 : i32
    %c0_i32_0 = arith.constant 0 : i32
    %c0_i32_1 = arith.constant 0 : i32
    return %c0_i32, %c0_i32_0 : i32, i32
  }
  func.func @transform_8(%arg0: i32) -> (i32, i32) {
    %c0_i32 = arith.constant 0 : i32
    %c0_i32_0 = arith.constant 0 : i32
    %c0_i32_1 = arith.constant 0 : i32
    return %c0_i32, %c0_i32_0 : i32, i32
  }
  func.func @transform_9(%arg0: i32) -> (i32, i32) {
    %c0_i32 = arith.constant 0 : i32
    %c0_i32_0 = arith.constant 0 : i32
    return %arg0, %c0_i32 : i32, i32
  }
}

</mosaic_0001>

<bundles_post_ra>
// kernel: tpu_custom_call.1
= control target key start
LH: loop header
LB: loop body
LE: loop exit
PB: predicated region body
PF: predicated region fallthrough
CT: control target
= control target key end

     0   :  { %s6284_s30 = smov 0   ;;  %s7840_s0 = inlined_call_operand.vmem [shape: f32[512,1682], index: 0, kind: input, shape index: {}]   ;;  %s7841_s1 = inlined_call_operand.vmem [shape: bf16[1682,20], index: 1, kind: input, shape index: {}]   ;;  %s7842_s2 = inlined_call_operand.vmem [shape: f32[1,20], index: 2, kind: input, shape index: {}]   ;;  %s7843_s3 = inlined_call_operand.vmem [shape: f32[20,10], index: 3, kind: input, shape index: {}]   ;;  %s7844_s4 = inlined_call_operand.vmem [shape: f32[1,10], index: 4, kind: input, shape index: {}]   ;;  %s7845_s5 = inlined_call_operand.vmem [shape: f32[10,20], index: 5, kind: input, shape index: {}]   ;;  %s7846_s6 = inlined_call_operand.vmem [shape: f32[1,20], index: 6, kind: input, shape index: {}]   ;;  %s7847_s7 = inlined_call_operand.vmem [shape: bf16[20,1682], index: 7, kind: input, shape index: {}]   ;;  %s7848_s8 = inlined_call_operand.vmem [shape: f32[1,1682], index: 8, kind: input, shape index: {}]   ;;  %s7849_s9 = inlined_call_operand.vmem [shape: bf16[512,1682], index: 9, kind: output, shape index: {}]  }
   0x1 LB: > { %s4849_s10 = sadd.s32 4294967295, %s6230_s30   ;;  %p4853_p0 = scmp.ge.s32.totalorder %s6230_s30, 1  ;;  %s6230_s30 = sphi %s6284_s30, %s19_s30  }
   0x2   : > { %p289_p1 = scmp.lt.s32.totalorder %s6230_s30, 5 }
   0x4   : > { %p290_p2 = pnand %p4853_p0, %p289_p1 }
   0x5   : > { %v5891_v0 = vld [vmem:[%s7841_s1 + $0x40] sm:$0xff] (!%p290_p2)   ;;  %s4854_s13 = sshll.u32 (!%p290_p2), %s4849_s10, 4  ;;  %v5893_v2 = vld [vmem:[%s7841_s1 + $0x48] sm:$0xff] (!%p290_p2)   ;;  %v5895_v4 = vld [vmem:[%s7841_s1 + $0x50] sm:$0xff] (!%p290_p2)   ;;  %vm1554_vm0 = vcmask (!%p290_p2), 1040384   ;;  %vm1529_vm1 = vcmask (!%p290_p2), 146432  }
   0x6   : > { %293 = sbr.rel (%p290_p2) target bundleno = 1399 (0x577), region = 56  ;;  %v5892_v1 = vld [vmem:[%s7841_s1] sm:$0xff] (!%p290_p2)   ;;  %p328_p3 = scmp.lt.s32.totalorder (!%p290_p2), %s4854_s13, 63  ;;  %5863 = vmatprep.subr.bf16.mxu1 (!%p290_p2), %v5891_v0  ;;  %5374 = vmatprep.subr.bf16.mxu0 (!%p290_p2), %v5891_v0  ;;  %v5894_v3 = vld [vmem:[%s7841_s1 + $0x8] sm:$0xff] (!%p290_p2)   ;;  %v5896_v5 = vld [vmem:[%s7841_s1 + $0x10] sm:$0xff] (!%p290_p2)   ;;  %vm2392_vm2 = vcmask (!%p290_p2), 1043456  }
   0x7   : > { %5871 = vmatpush3.bf16.msra.mxu1 (!%p290_p2), %v5892_v1  ;;  %5375 = vmatpush3.bf16.msra.mxu0 (!%p290_p2), %v5892_v1  ;;  %v5897_v6 = vld [vmem:[%s7841_s1 + $0x58] sm:$0xff] (!%p290_p2)   ;;  %v5899_v8 = vld [vmem:[%s7841_s1 + $0x60] sm:$0xff] (!%p290_p2)   ;;  %v5901_v10 = vld [vmem:[%s7841_s1 + $0x68] sm:$0xff] (!%p290_p2)   ;;  %vm2695_vm3 = vcmask (!%p290_p2), 1041408   ;;  %vm6233_vm4 = vmmov (!%p290_p2), 1   ;;  %vm2343_vm6 = vcmask (!%p290_p2), 162816  }
   0x8   : > { %5864 = vmatprep.subr.bf16.mxu1 (!%p290_p2), %v5893_v2  ;;  %5376 = vmatprep.subr.bf16.mxu0 (!%p290_p2), %v5893_v2  ;;  %v5898_v7 = vld [vmem:[%s7841_s1 + $0x18] sm:$0xff] (!%p290_p2)   ;;  %v5900_v9 = vld [vmem:[%s7841_s1 + $0x20] sm:$0xff] (!%p290_p2)   ;;  %v5902_v16 = vld [vmem:[%s7841_s1 + $0x28] sm:$0xff] (!%p290_p2)   ;;  %vm2646_vm7 = vcmask (!%p290_p2), 80896   ;;  %vm4683_vm8 = vcmask (!%p290_p2), 146436  }
   0x9   : > { %v5903_v18 = vld [vmem:[%s7841_s1 + $0x70] sm:$0xff] (!%p290_p2)   ;;  %v5905_v20 = vld [vmem:[%s7841_s1 + $0x78] sm:$0xff] (!%p290_p2)   ;;  %v5907_v24 = vld [vmem:[%s7841_s1 + $0xc0] sm:$0xff] (!%p290_p2)  }
   0xa   : > { %v5904_v19 = vld [vmem:[%s7841_s1 + $0x30] sm:$0xff] (!%p290_p2)   ;;  %v5906_v21 = vld [vmem:[%s7841_s1 + $0x38] sm:$0xff] (!%p290_p2)   ;;  %v5909_v27 = vld [vmem:[%s7841_s1 + $0x140] sm:$0xff] (!%p290_p2)  }
   0xb   : > { %5872 = vmatpush3.bf16.msra.mxu1 (!%p290_p2), %v5894_v3  ;;  %5377 = vmatpush3.bf16.msra.mxu0 (!%p290_p2), %v5894_v3  ;;  %v5908_v28 = vld [vmem:[%s7841_s1 + $0x80] sm:$0xff] (!%p290_p2)   ;;  %v5911_v36 = vld [vmem:[%s7841_s1 + $0xc8] sm:$0xff] (!%p290_p2)   ;;  %v5915_v46 = vld [vmem:[%s7841_s1 + $0xd0] sm:$0xff] (!%p290_p2)  }
   0xc   : > { %5865 = vmatprep.subr.bf16.mxu1 (!%p290_p2), %v5895_v4  ;;  %5378 = vmatprep.subr.bf16.mxu0 (!%p290_p2), %v5895_v4  ;;  %v5910_v29 = vld [vmem:[%s7841_s1 + $0x100] sm:$0xff] (!%p290_p2)   ;;  %v5913_v37 = vld [vmem:[%s7841_s1 + $0x148] sm:$0xff] (!%p290_p2)   ;;  %v5917_v47 = vld [vmem:[%s7841_s1 + $0x150] sm:$0xff] (!%p290_p2)  }
   0xd   : > { %s7855_s13 = smov (!%p328_p3, %s4854_s13), 63  ;;  %v5912_v38 = vld [vmem:[%s7841_s1 + $0x88] sm:$0xff]   ;;  %v5916_v48 = vld [vmem:[%s7841_s1 + $0x90] sm:$0xff]   ;;  %v5919_v52 = vld [vmem:[%s7841_s1 + $0xd8] sm:$0xff]  }
   0xe   : > { %s5879_s26 = smul.u32 112, %s7855_s13  ;;  %v5914_v40 = vld [vmem:[%s7841_s1 + $0x108] sm:$0xff]   ;;  %v5918_v49 = vld [vmem:[%s7841_s1 + $0x110] sm:$0xff]   ;;  %v5921_v55 = vld [vmem:[%s7841_s1 + $0x158] sm:$0xff]  }
   0xf   : > { %5873 = vmatpush3.bf16.msra.mxu1 %v5896_v5  ;;  %5379 = vmatpush3.bf16.msra.mxu0 %v5896_v5  ;;  %v5920_v58 = vld [vmem:[%s7841_s1 + $0x98] sm:$0xff]   ;;  %v5923_v0 = vld [vmem:[%s7841_s1 + $0xe0] sm:$0xff]   ;;  %vm6986_vm5 = vmpackc.low %vm2695_vm3, %vm6233_vm4  ;;  %s5880_s11 = smul.u32 56, %s7855_s13 }
  0x10   : > { %5866 = vmatprep.subr.bf16.mxu1 %v5897_v6  ;;  %5380 = vmatprep.subr.bf16.mxu0 %v5897_v6  ;;  %s6325_s14 = scalar_lea.vmem %s7840_s0, %s5879_s26  ;;  %v5922_v60 = vld [vmem:[%s7841_s1 + $0x118] sm:$0xff]   ;;  %v5925_v3 = vld [vmem:[%s7841_s1 + $0x160] sm:$0xff]   ;;  %vm7755_vm9 = vmor %vm4683_vm8, %vm2392_vm2 }
  0x11   : > { %v455_v11 = vld [vmem:[%s6325_s14 + $0x388] sm:$0xff]  ;;  %v469_v12 = vld [vmem:[%s6325_s14 + $0x3f8] sm:$0xff]  ;;  %v454_v22 = vld [vmem:[%s6325_s14 + $0x380] sm:$0xff]  ;;  %s7405_s16 = scalar_lea.vmem %s7849_s9, %s5880_s11 }
  0x12   : > { %v623_v13 = vpack.c.bf16 %v469_v12, %v455_v11  ;;  %v343_v14 = vld [vmem:[%s6325_s14 + $0x8] sm:$0xff]  ;;  %v357_v15 = vld [vmem:[%s6325_s14 + $0x78] sm:$0xff]  ;;  %v468_v23 = vld [vmem:[%s6325_s14 + $0x3f0] sm:$0xff] }
  0x13   : > { %5874 = vmatpush3.bf16.msra.mxu1 %v5898_v7  ;;  %5381 = vmatpush3.bf16.msra.mxu0 %v5898_v7  ;;  %v567_v17 = vpack.c.bf16 %v357_v15, %v343_v14  ;;  %v342_v25 = vld [vmem:[%s6325_s14] sm:$0xff]  ;;  %v356_v26 = vld [vmem:[%s6325_s14 + $0x70] sm:$0xff]  ;;  %v483_v30 = vld [vmem:[%s6325_s14 + $0x468] sm:$0xff]  ;;  %v622_v32 = vpack.c.bf16 %v468_v23, %v454_v22 }
  0x14   : > { %5867 = vmatprep.subr.bf16.mxu1 %v5899_v8  ;;  %5382 = vmatprep.subr.bf16.mxu0 %v5899_v8  ;;  %v497_v31 = vld [vmem:[%s6325_s14 + $0x4d8] sm:$0xff]  ;;  %v566_v33 = vpack.c.bf16 %v356_v26, %v342_v25  ;;  %v371_v34 = vld [vmem:[%s6325_s14 + $0xe8] sm:$0xff]  ;;  %v482_v41 = vld [vmem:[%s6325_s14 + $0x460] sm:$0xff] }
  0x15   : > { %1622 = vmatprep.mubr.bf16.mxu1 %v623_v13  ;;  %1590 = vmatprep.mubr.bf16.mxu0 %v567_v17  ;;  %v385_v35 = vld [vmem:[%s6325_s14 + $0x158] sm:$0xff]  ;;  %v637_v39 = vpack.c.bf16 %v497_v31, %v483_v30  ;;  %v496_v42 = vld [vmem:[%s6325_s14 + $0x4d0] sm:$0xff]  ;;  %v370_v44 = vld [vmem:[%s6325_s14 + $0xe0] sm:$0xff] }
  0x16   : > { %v581_v43 = vpack.c.bf16 %v385_v35, %v371_v34  ;;  %v384_v45 = vld [vmem:[%s6325_s14 + $0x150] sm:$0xff]  ;;  %v636_v50 = vpack.c.bf16 %v496_v42, %v482_v41  ;;  %v511_v53 = vld [vmem:[%s6325_s14 + $0x548] sm:$0xff]  ;;  %v525_v54 = vld [vmem:[%s6325_s14 + $0x5b8] sm:$0xff] }
  0x17   : > { %5875 = vmatpush3.bf16.msra.mxu1 %v5900_v9  ;;  %5383 = vmatpush3.bf16.msra.mxu0 %v5900_v9  ;;  %v580_v51 = vpack.c.bf16 %v384_v45, %v370_v44  ;;  %v399_v56 = vld [vmem:[%s6325_s14 + $0x1c8] sm:$0xff]  ;;  %v413_v57 = vld [vmem:[%s6325_s14 + $0x238] sm:$0xff]  ;;  %v651_v59 = vpack.c.bf16 %v525_v54, %v511_v53  ;;  %v510_v61 = vld [vmem:[%s6325_s14 + $0x540] sm:$0xff] }
  0x18   : > { %5868 = vmatprep.subr.bf16.mxu1 %v5901_v10  ;;  %5384 = vmatprep.subr.bf16.mxu0 %v5901_v10  ;;  %v524_v62 = vld [vmem:[%s6325_s14 + $0x5b0] sm:$0xff]  ;;  %v595_v63 = vpack.c.bf16 %v413_v57, %v399_v56  ;;  %v398_v1 = vld [vmem:[%s6325_s14 + $0x1c0] sm:$0xff]  ;;  %v539_v8 = vld [vmem:[%s6325_s14 + $0x628] sm:$0xff] }
  0x19   : > { %v412_v2 = vld [vmem:[%s6325_s14 + $0x230] sm:$0xff]  ;;  %v5924_v4 = vld [vmem:[%s7841_s1 + $0xa0] sm:$0xff]   ;;  %v650_v5 = vpack.c.bf16 %v524_v62, %v510_v61  ;;  %v553_v9 = vld [vmem:[%s6325_s14 + $0x698] sm:$0xff] }
  0x1a   : > { %v594_v6 = vpack.c.bf16 %v412_v2, %v398_v1  ;;  %v5926_v7 = vld [vmem:[%s7841_s1 + $0x120] sm:$0xff]   ;;  %v5927_v10 = vld [vmem:[%s7841_s1 + $0xe8] sm:$0xff]   ;;  %v665_v13 = vpack.c.bf16 %v553_v9, %v539_v8  ;;  %v440_v22 = vld [vmem:[%s6325_s14 + $0x310] sm:$0xff] }
  0x1b   : > { %5876 = vmatpush3.bf16.msra.mxu1 %v5902_v16  ;;  %5385 = vmatpush3.bf16.msra.mxu0 %v5902_v16  ;;  %v5929_v11 = vld [vmem:[%s7841_s1 + $0x168] sm:$0xff]   ;;  %v538_v15 = vld [vmem:[%s6325_s14 + $0x620] sm:$0xff]  ;;  %v552_v16 = vld [vmem:[%s6325_s14 + $0x690] sm:$0xff] }
  0x1c   : > { %5869 = vmatprep.subr.bf16.mxu1 %v5903_v18  ;;  %5386 = vmatprep.subr.bf16.mxu0 %v5903_v18  ;;  %v5928_v12 = vld [vmem:[%s7841_s1 + $0xa8] sm:$0xff]   ;;  %v441_v18 = vld [vmem:[%s6325_s14 + $0x318] sm:$0xff]  ;;  %v5933_v23 = vld [vmem:[%s7841_s1 + $0x170] sm:$0xff]  }
  0x1d   : > { %v5930_v14 = vld [vmem:[%s7841_s1 + $0x128] sm:$0xff]   ;;  %v5932_v25 = vld [vmem:[%s7841_s1 + $0xb0] sm:$0xff]   ;;  %v5937_v30 = vld [vmem:[%s7841_s1 + $0x178] sm:$0xff]  }
  0x1e   : > { %v427_v17 = vld [vmem:[%s6325_s14 + $0x2a8] sm:$0xff]  ;;  %v345_v31 = vld [vmem:[%s6325_s14 + $0x18] sm:$0xff]  ;;  %v344_v35 = vld [vmem:[%s6325_s14 + $0x10] sm:$0xff] }
  0x1f   : > { %5877 = vmatpush3.bf16.msra.mxu1 %v5904_v19  ;;  %5387 = vmatpush3.bf16.msra.mxu0 %v5904_v19  ;;  %v5931_v19 = vld [vmem:[%s7841_s1 + $0xf0] sm:$0xff]   ;;  %v5938_v34 = vld [vmem:[%s7841_s1 + $0x138] sm:$0xff]   ;;  %v5940_v42 = vld [vmem:[%s7841_s1 + $0x180] sm:$0xff]  }
  0x20   : > { %5870 = vmatprep.subr.bf16.mxu1 %v5905_v20  ;;  %5388 = vmatprep.subr.bf16.mxu0 %v5905_v20  ;;  %v609_v20 = vpack.c.bf16 %v441_v18, %v427_v17  ;;  %v360_v44 = vld [vmem:[%s6325_s14 + $0x90] sm:$0xff]  ;;  %v5943_v53 = vld [vmem:[%s7841_s1 + $0x1c8] sm:$0xff]  }
  0x21   : > { %v375_v54 = vld [vmem:[%s6325_s14 + $0x108] sm:$0xff]  ;;  %v5948_v9 = vld [vmem:[%s7841_s1 + $0x190] sm:$0xff]  }
  0x22   : > { %v5944_v57 = vld [vmem:[%s7841_s1 + $0x188] sm:$0xff]  }
  0x23   : > { %5878 = vmatpush3.bf16.msra.mxu1 %v5906_v21  ;;  %5389 = vmatpush3.bf16.msra.mxu0 %v5906_v21  ;;  %v426_v21 = vld [vmem:[%s6325_s14 + $0x2a0] sm:$0xff]  ;;  %v5945_v62 = vld [vmem:[%s7841_s1 + $0x248] sm:$0xff]  }
  0x24   : > { %5438 = vmatprep.subr.bf16.mxu1 %v5907_v24  ;;  %5502 = vmatprep.subr.bf16.mxu0 %v5909_v27  ;;  %v664_v24 = vpack.c.bf16 %v552_v16, %v538_v15  ;;  %v608_v26 = vpack.c.bf16 %v440_v22, %v426_v21  ;;  %v5934_v27 = vld [vmem:[%s7841_s1 + $0x130] sm:$0xff]   ;;  %v415_v1 = vld [vmem:[%s6325_s14 + $0x248] sm:$0xff]  ;;  %v429_v16 = vld [vmem:[%s6325_s14 + $0x2b8] sm:$0xff] }
  0x25   : > { %v5950_v15 = vld [vmem:[%s7841_s1 + $0x210] sm:$0xff]   ;;  %v443_v17 = vld [vmem:[%s6325_s14 + $0x328] sm:$0xff]  ;;  %v442_v21 = vld [vmem:[%s6325_s14 + $0x320] sm:$0xff] }
  0x26   : > { %1623 = vmatmul.mubr.bf16.vlgmr.msra.gmra.mrb[0].mxu1 %v622_v32  ;;  %1591 = vmatmul.mubr.bf16.vlgmr.msra.gmra.mrb[0].mxu0 %v566_v33  ;;  %v359_v32 = vld [vmem:[%s6325_s14 + $0x88] sm:$0xff]  ;;  %v611_v18 = vpack.c.bf16 %v443_v17, %v429_v16  ;;  %v5967_v16 = vld [vmem:[%s7841_s1 + $0x1f8] sm:$0xff]  }
  0x27   : > { %5439 = vmatpush3.bf16.msra.mxu1 %v5908_v28  ;;  %5503 = vmatpush3.bf16.msra.mxu0 %v5910_v29  ;;  %v5935_v28 = vld [vmem:[%s7841_s1 + $0xf8] sm:$0xff]   ;;  %v569_v33 = vpack.c.bf16 %v359_v32, %v345_v31  ;;  %v431_v22 = vld [vmem:[%s6325_s14 + $0x2c8] sm:$0xff] }
  0x28   : > { %5440 = vmatprep.subr.bf16.mxu1 %v5911_v36  ;;  %5504 = vmatprep.subr.bf16.mxu0 %v5913_v37  ;;  %v5936_v29 = vld [vmem:[%s7841_s1 + $0xb8] sm:$0xff]   ;;  %v358_v36 = vld [vmem:[%s6325_s14 + $0x80] sm:$0xff]  ;;  %v471_v31 = vld [vmem:[%s6325_s14 + $0x408] sm:$0xff] }
  0x29   : > { %1630 = vmatprep.mubr.bf16.mxu1 %v637_v39  ;;  %1598 = vmatprep.mubr.bf16.mxu0 %v581_v43  ;;  %v5939_v37 = vld [vmem:[%s7841_s1 + $0x1c0] sm:$0xff]   ;;  %v361_v39 = vld [vmem:[%s6325_s14 + $0x98] sm:$0xff]  ;;  %v543_v17 = vld [vmem:[%s6325_s14 + $0x648] sm:$0xff] }
  0x2a   : > { %v346_v43 = vld [vmem:[%s6325_s14 + $0x20] sm:$0xff] }
  0x2b   : > { %5441 = vmatpush3.bf16.msra.mxu1 %v5912_v38  ;;  %5505 = vmatpush3.bf16.msra.mxu0 %v5914_v40  ;;  %v347_v38 = vld [vmem:[%s6325_s14 + $0x28] sm:$0xff]  ;;  %v568_v40 = vpack.c.bf16 %v358_v36, %v344_v35  ;;  %v570_v45 = vpack.c.bf16 %v360_v44, %v346_v43  ;;  %v5955_v35 = vld [vmem:[%s7841_s1 + $0x1e0] sm:$0xff]   ;;  %v472_v43 = vld [vmem:[%s6325_s14 + $0x410] sm:$0xff] }
  0x2c   : > { %5442 = vmatprep.subr.bf16.mxu1 %v5915_v46  ;;  %5506 = vmatprep.subr.bf16.mxu0 %v5917_v47  ;;  %v571_v41 = vpack.c.bf16 %v361_v39, %v347_v38  ;;  %v5941_v46 = vld [vmem:[%s7841_s1 + $0x240] sm:$0xff]   ;;  %v459_v36 = vld [vmem:[%s6325_s14 + $0x3a8] sm:$0xff]  ;;  %v456_v38 = vld [vmem:[%s6325_s14 + $0x390] sm:$0xff] }
  0x2d   : > { %v5942_v47 = vld [vmem:[%s7841_s1 + $0x200] sm:$0xff]  }
  0x2e   : > { %1631 = vmatmul.mubr.bf16.gmra.mrb[4].mxu1 %v636_v50  ;;  %1599 = vmatmul.mubr.bf16.gmra.mrb[4].mxu0 %v580_v51  ;;  %v372_v51 = vld [vmem:[%s6325_s14 + $0xf0] sm:$0xff]  ;;  %v470_v39 = vld [vmem:[%s6325_s14 + $0x400] sm:$0xff] }
  0x2f   : > { %5443 = vmatpush3.bf16.msra.mxu1 %v5916_v48  ;;  %5507 = vmatpush3.bf16.msra.mxu0 %v5918_v49  ;;  %v373_v48 = vld [vmem:[%s6325_s14 + $0xf8] sm:$0xff]  ;;  %v387_v49 = vld [vmem:[%s6325_s14 + $0x168] sm:$0xff]  ;;  %v5957_v44 = vld [vmem:[%s7841_s1 + $0x260] sm:$0xff]  }
  0x30   : > { %5444 = vmatprep.subr.bf16.mxu1 %v5919_v52  ;;  %5508 = vmatprep.subr.bf16.mxu0 %v5921_v55  ;;  %v583_v50 = vpack.c.bf16 %v387_v49, %v373_v48  ;;  %v386_v52 = vld [vmem:[%s6325_s14 + $0x160] sm:$0xff]  ;;  %v389_v55 = vld [vmem:[%s6325_s14 + $0x178] sm:$0xff]  ;;  %v624_v48 = vpack.c.bf16 %v470_v39, %v456_v38 }
  0x31   : > { %1638 = vmatprep.mubr.bf16.mxu1 %v651_v59  ;;  %1606 = vmatprep.mubr.bf16.mxu0 %v595_v63  ;;  %v585_v56 = vpack.c.bf16 %v389_v55, %v375_v54  ;;  %v388_v59 = vld [vmem:[%s6325_s14 + $0x170] sm:$0xff]  ;;  %v5946_v63 = vld [vmem:[%s7841_s1 + $0x208] sm:$0xff]  }
  0x32   : > { %v5960_v55 = vld [vmem:[%s7841_s1 + $0x1a8] sm:$0xff]  }
  0x33   : > { %5445 = vmatpush3.bf16.msra.mxu1 %v5920_v58  ;;  %5509 = vmatpush3.bf16.msra.mxu0 %v5922_v60  ;;  %v374_v58 = vld [vmem:[%s6325_s14 + $0x100] sm:$0xff]  ;;  %v582_v60 = vpack.c.bf16 %v386_v52, %v372_v51  ;;  %v487_v51 = vld [vmem:[%s6325_s14 + $0x488] sm:$0xff]  ;;  %v501_v52 = vld [vmem:[%s6325_s14 + $0x4f8] sm:$0xff] }
  0x34   : > { %5446 = vmatprep.subr.bf16.mxu1 %v5923_v0  ;;  %5510 = vmatprep.subr.bf16.mxu0 %v5925_v3  ;;  %v584_v61 = vpack.c.bf16 %v388_v59, %v374_v58  ;;  %v401_v0 = vld [vmem:[%s6325_s14 + $0x1d8] sm:$0xff]  ;;  %v400_v3 = vld [vmem:[%s6325_s14 + $0x1d0] sm:$0xff]  ;;  %v641_v54 = vpack.c.bf16 %v501_v52, %v487_v51  ;;  %v5961_v58 = vld [vmem:[%s7841_s1 + $0x268] sm:$0xff]  }
  0x35   : > { %v597_v2 = vpack.c.bf16 %v415_v1, %v401_v0  ;;  %v486_v59 = vld [vmem:[%s6325_s14 + $0x480] sm:$0xff]  ;;  %v5963_v0 = vld [vmem:[%s7841_s1 + $0x1f0] sm:$0xff]   ;;  %v515_v1 = vld [vmem:[%s6325_s14 + $0x568] sm:$0xff] }
  0x36   : > { %1639 = vmatmul.mubr.bf16.gmra.mrb[8].mxu1 %v650_v5  ;;  %1607 = vmatmul.mubr.bf16.gmra.mrb[8].mxu0 %v594_v6  ;;  %v5947_v5 = vld [vmem:[%s7841_s1 + $0x1d0] sm:$0xff]   ;;  %v403_v6 = vld [vmem:[%s6325_s14 + $0x1e8] sm:$0xff]  ;;  %v5973_v51 = vld [vmem:[%s7841_s1 + $0x300] sm:$0xff]  }
  0x37   : > { %5447 = vmatpush3.bf16.msra.mxu1 %v5924_v4  ;;  %5511 = vmatpush3.bf16.msra.mxu0 %v5926_v7  ;;  %v414_v4 = vld [vmem:[%s6325_s14 + $0x240] sm:$0xff]  ;;  %v417_v7 = vld [vmem:[%s6325_s14 + $0x258] sm:$0xff] }
  0x38   : > { %5448 = vmatprep.subr.bf16.mxu1 %v5927_v10  ;;  %5512 = vmatprep.subr.bf16.mxu0 %v5929_v11  ;;  %v599_v8 = vpack.c.bf16 %v417_v7, %v403_v6  ;;  %v402_v10 = vld [vmem:[%s6325_s14 + $0x1e0] sm:$0xff]  ;;  %v416_v11 = vld [vmem:[%s6325_s14 + $0x250] sm:$0xff] }
  0x39   : > { %1646 = vmatprep.mubr.bf16.mxu1 %v665_v13  ;;  %1614 = vmatprep.mubr.bf16.mxu0 %v609_v20  ;;  %v596_v13 = vpack.c.bf16 %v414_v4, %v400_v3  ;;  %v428_v20 = vld [vmem:[%s6325_s14 + $0x2b0] sm:$0xff] }
  0x3a   : > { %v610_v32 = vpack.c.bf16 %v442_v21, %v428_v20 }
  0x3b   : > { %5449 = vmatpush3.bf16.msra.mxu1 %v5928_v12  ;;  %5513 = vmatpush3.bf16.msra.mxu0 %v5930_v14  ;;  %v5949_v12 = vld [vmem:[%s7841_s1 + $0x250] sm:$0xff]   ;;  %v598_v14 = vpack.c.bf16 %v416_v11, %v402_v10  ;;  %v526_v10 = vld [vmem:[%s6325_s14 + $0x5c0] sm:$0xff] }
  0x3c   : > { %5450 = vmatprep.subr.bf16.mxu1 %v5931_v19  ;;  %5514 = vmatprep.subr.bf16.mxu0 %v5933_v23  ;;  %v5951_v19 = vld [vmem:[%s7841_s1 + $0x1d8] sm:$0xff]   ;;  %v514_v11 = vld [vmem:[%s6325_s14 + $0x560] sm:$0xff] }
  0x3d   : > { %v445_v23 = vld [vmem:[%s6325_s14 + $0x338] sm:$0xff] }
  0x3e   : > { %1647 = vmatmul.mubr.bf16.gmra.mrb[12].mxu1 %v664_v24  ;;  %1615 = vmatmul.mubr.bf16.gmra.mrb[12].mxu0 %v608_v26  ;;  %v613_v24 = vpack.c.bf16 %v445_v23, %v431_v22  ;;  %v430_v26 = vld [vmem:[%s6325_s14 + $0x2c0] sm:$0xff]  ;;  %v5969_v22 = vld [vmem:[%s7841_s1 + $0x278] sm:$0xff]  }
  0x3f   : > { %5451 = vmatpush3.bf16.msra.mxu1 %v5932_v25  ;;  %5515 = vmatpush3.bf16.msra.mxu0 %v5934_v27  ;;  %v5952_v25 = vld [vmem:[%s7841_s1 + $0x198] sm:$0xff]   ;;  %v444_v27 = vld [vmem:[%s6325_s14 + $0x330] sm:$0xff] }
  0x40   : > { %5452 = vmatprep.subr.bf16.mxu1 %v5935_v28  ;;  %5516 = vmatprep.subr.bf16.mxu0 %v5937_v30  ;;  %v5953_v28 = vld [vmem:[%s7841_s1 + $0x258] sm:$0xff]  }
  0x41   : > { %1687 = vmatprep.mubr.bf16.mxu1 %v569_v33  ;;  %1784 = vmatprep.mubr.bf16.mxu0 %v571_v41  ;;  %v457_v30 = vld [vmem:[%s6325_s14 + $0x398] sm:$0xff]  ;;  %v612_v33 = vpack.c.bf16 %v444_v27, %v430_v26  ;;  %v5956_v41 = vld [vmem:[%s7841_s1 + $0x1a0] sm:$0xff]   ;;  %v540_v26 = vld [vmem:[%s6325_s14 + $0x630] sm:$0xff] }
  0x42   : > { %v554_v27 = vld [vmem:[%s6325_s14 + $0x6a0] sm:$0xff] }
  0x43   : > { %5453 = vmatpush3.bf16.msra.mxu1 %v5936_v29  ;;  %5517 = vmatpush3.bf16.msra.mxu0 %v5938_v34  ;;  %v5954_v29 = vld [vmem:[%s7841_s1 + $0x218] sm:$0xff]   ;;  %v625_v34 = vpack.c.bf16 %v471_v31, %v457_v30  ;;  %v5971_v31 = vld [vmem:[%s7841_s1 + $0x2c0] sm:$0xff]  }
  0x44   : > { %5566 = vmatprep.subr.bf16.mxu1 %v5939_v37  ;;  %5630 = vmatprep.subr.bf16.mxu0 %v5941_v46  ;;  %v473_v37 = vld [vmem:[%s6325_s14 + $0x418] sm:$0xff] }
  0x45   : > { %v485_v46 = vld [vmem:[%s6325_s14 + $0x478] sm:$0xff] }
  0x46   : > { %1688 = vmatmul.mubr.bf16.vlgmr.msra.gmra.mrb[16].mxu1 %v568_v40  ;;  %1785 = vmatmul.mubr.bf16.vlgmr.msra.gmra.mrb[16].mxu0 %v570_v45  ;;  %v627_v40 = vpack.c.bf16 %v473_v37, %v459_v36  ;;  %v5958_v45 = vld [vmem:[%s7841_s1 + $0x220] sm:$0xff]   ;;  %v349_v30 = vld [vmem:[%s6325_s14 + $0x38] sm:$0xff]  ;;  %v666_v36 = vpack.c.bf16 %v554_v27, %v540_v26  ;;  %v432_v26 = vld [vmem:[%s6325_s14 + $0x2d0] sm:$0xff] }
  0x47   : > { %5567 = vmatpush3.bf16.msra.mxu1 %v5940_v42  ;;  %5631 = vmatpush3.bf16.msra.mxu0 %v5942_v47  ;;  %v458_v42 = vld [vmem:[%s6325_s14 + $0x3a0] sm:$0xff]  ;;  %v499_v47 = vld [vmem:[%s6325_s14 + $0x4e8] sm:$0xff] }
  0x48   : > { %1695 = vmatprep.mubr.bf16.mxu1 %v583_v50  ;;  %5568 = vmatprep.subr.bf16.mxu1 %v5943_v53  ;;  %v626_v49 = vpack.c.bf16 %v472_v43, %v458_v42  ;;  %v5959_v50 = vld [vmem:[%s7841_s1 + $0x1e8] sm:$0xff]   ;;  %v639_v53 = vpack.c.bf16 %v499_v47, %v485_v46  ;;  %v350_v42 = vld [vmem:[%s6325_s14 + $0x40] sm:$0xff]  ;;  %v364_v43 = vld [vmem:[%s6325_s14 + $0xb0] sm:$0xff] }
  0x49   : > { %1792 = vmatprep.mubr.bf16.mxu0 %v585_v56  ;;  %5632 = vmatprep.subr.bf16.mxu0 %v5945_v62  ;;  %v484_v56 = vld [vmem:[%s6325_s14 + $0x470] sm:$0xff]  ;;  %v513_v62 = vld [vmem:[%s6325_s14 + $0x558] sm:$0xff]  ;;  %v379_v46 = vld [vmem:[%s6325_s14 + $0x128] sm:$0xff] }
  0x4a   : > { %v446_v27 = vld [vmem:[%s6325_s14 + $0x340] sm:$0xff] }
  0x4b   : > { %5569 = vmatpush3.bf16.msra.mxu1 %v5944_v57  ;;  %5633 = vmatpush3.bf16.msra.mxu0 %v5946_v63  ;;  %v498_v57 = vld [vmem:[%s6325_s14 + $0x4e0] sm:$0xff]  ;;  %v527_v63 = vld [vmem:[%s6325_s14 + $0x5c8] sm:$0xff] }
  0x4c   : > { %5570 = vmatprep.subr.bf16.mxu1 %v5947_v5  ;;  %5634 = vmatprep.subr.bf16.mxu0 %v5949_v12  ;;  %v638_v3 = vpack.c.bf16 %v498_v57, %v484_v56  ;;  %v5964_v5 = vld [vmem:[%s7841_s1 + $0x1b0] sm:$0xff]   ;;  %v653_v6 = vpack.c.bf16 %v527_v63, %v513_v62  ;;  %v5975_v57 = vld [vmem:[%s7841_s1 + $0x288] sm:$0xff]  }
  0x4d   : > { %v528_v12 = vld [vmem:[%s6325_s14 + $0x5d0] sm:$0xff]  ;;  %v419_v62 = vld [vmem:[%s6325_s14 + $0x268] sm:$0xff] }
  0x4e   : > { %1696 = vmatmul.mubr.bf16.gmra.mrb[20].mxu1 %v582_v60  ;;  %1793 = vmatmul.mubr.bf16.gmra.mrb[20].mxu0 %v584_v61  ;;  %v5962_v60 = vld [vmem:[%s7841_s1 + $0x228] sm:$0xff]   ;;  %v500_v61 = vld [vmem:[%s6325_s14 + $0x4f0] sm:$0xff]  ;;  %v654_v21 = vpack.c.bf16 %v528_v12, %v514_v11  ;;  %v5980_v12 = vld [vmem:[%s7841_s1 + $0x2d8] sm:$0xff]  }
  0x4f   : > { %1703 = vmatprep.mubr.bf16.mxu1 %v597_v2  ;;  %1800 = vmatprep.mubr.bf16.mxu0 %v599_v8  ;;  %v529_v2 = vld [vmem:[%s6325_s14 + $0x5d8] sm:$0xff]  ;;  %v640_v4 = vpack.c.bf16 %v500_v61, %v486_v59  ;;  %v5965_v8 = vld [vmem:[%s7841_s1 + $0x270] sm:$0xff]  }
  0x50   : > { %5571 = vmatpush3.bf16.msra.mxu1 %v5948_v9  ;;  %5635 = vmatpush3.bf16.msra.mxu0 %v5950_v15  ;;  %v655_v7 = vpack.c.bf16 %v529_v2, %v515_v1  ;;  %v512_v9 = vld [vmem:[%s6325_s14 + $0x550] sm:$0xff]  ;;  %v555_v15 = vld [vmem:[%s6325_s14 + $0x6a8] sm:$0xff]  ;;  %v405_v61 = vld [vmem:[%s6325_s14 + $0x1f8] sm:$0xff] }
  0x51   : > { %5572 = vmatprep.subr.bf16.mxu1 %v5951_v19  ;;  %5636 = vmatprep.subr.bf16.mxu0 %v5953_v28  ;;  %v5968_v19 = vld [vmem:[%s7841_s1 + $0x1b8] sm:$0xff]   ;;  %v652_v20 = vpack.c.bf16 %v526_v10, %v512_v9  ;;  %v542_v28 = vld [vmem:[%s6325_s14 + $0x640] sm:$0xff]  ;;  %v392_v59 = vld [vmem:[%s6325_s14 + $0x190] sm:$0xff] }
  0x52   : > { %v5977_v63 = vld [vmem:[%s7841_s1 + $0x2d0] sm:$0xff]   ;;  %v421_v1 = vld [vmem:[%s6325_s14 + $0x278] sm:$0xff]  ;;  %v418_v9 = vld [vmem:[%s6325_s14 + $0x260] sm:$0xff] }
  0x53   : > { %v406_v10 = vld [vmem:[%s6325_s14 + $0x200] sm:$0xff]  ;;  %v420_v11 = vld [vmem:[%s6325_s14 + $0x270] sm:$0xff] }
  0x54   : > { %5573 = vmatpush3.bf16.msra.mxu1 %v5952_v25  ;;  %5637 = vmatpush3.bf16.msra.mxu0 %v5954_v29  ;;  %v5970_v25 = vld [vmem:[%s7841_s1 + $0x238] sm:$0xff]   ;;  %v556_v29 = vld [vmem:[%s6325_s14 + $0x6b0] sm:$0xff] }
  0x55   : > { %5574 = vmatprep.subr.bf16.mxu1 %v5955_v35  ;;  %5638 = vmatprep.subr.bf16.mxu0 %v5957_v44  ;;  %v6232_v35 = vmov 0   ;;  %v668_v37 = vpack.c.bf16 %v556_v29, %v542_v28  ;;  %v377_v44 = vld [vmem:[%s6325_s14 + $0x118] sm:$0xff]  ;;  %v434_v28 = vld [vmem:[%s6325_s14 + $0x2e0] sm:$0xff]  ;;  %v448_v29 = vld [vmem:[%s6325_s14 + $0x350] sm:$0xff] }
  0x56   : > { %1704 = vmatmul.mubr.bf16.gmra.mrb[24].mxu1 %v596_v13  ;;  %1801 = vmatmul.mubr.bf16.gmra.mrb[24].mxu0 %v598_v14  ;;  %v5966_v13 = vld [vmem:[%s7841_s1 + $0x230] sm:$0xff]   ;;  %v541_v14 = vld [vmem:[%s6325_s14 + $0x638] sm:$0xff] }
  0x57   : > { %1711 = vmatprep.mubr.bf16.mxu1 %v611_v18  ;;  %1808 = vmatprep.mubr.bf16.mxu0 %v613_v24  ;;  %v557_v18 = vld [vmem:[%s6325_s14 + $0x6b8] sm:$0xff]  ;;  %v667_v23 = vpack.c.bf16 %v555_v15, %v541_v14  ;;  %v447_v14 = vld [vmem:[%s6325_s14 + $0x348] sm:$0xff] }
  0x58   : > { %5575 = vmatpush3.bf16.msra.mxu1 %v5956_v41  ;;  %5639 = vmatpush3.bf16.msra.mxu0 %v5958_v45  ;;  %v669_v24 = vpack.c.bf16 %v557_v18, %v543_v17  ;;  %v362_v41 = vld [vmem:[%s6325_s14 + $0xa0] sm:$0xff]  ;;  %v391_v45 = vld [vmem:[%s6325_s14 + $0x188] sm:$0xff]  ;;  %v5981_v17 = vld [vmem:[%s7841_s1 + $0x298] sm:$0xff]  }
  0x59   : > { %5576 = vmatprep.subr.bf16.mxu1 %v5959_v50  ;;  %5640 = vmatprep.subr.bf16.mxu0 %v5961_v58  ;;  %v5972_v50 = vld [vmem:[%s7841_s1 + $0x280] sm:$0xff]   ;;  %v587_v52 = vpack.c.bf16 %v391_v45, %v377_v44  ;;  %v435_v15 = vld [vmem:[%s6325_s14 + $0x2e8] sm:$0xff]  ;;  %v5982_v18 = vld [vmem:[%s7841_s1 + $0x318] sm:$0xff]  }
  0x5a   : > { %v378_v58 = vld [vmem:[%s6325_s14 + $0x120] sm:$0xff]  ;;  %v5991_v44 = vld [vmem:[%s7841_s1 + $0x2b0] sm:$0xff]  }
  0x5b   : > { %v460_v45 = vld [vmem:[%s6325_s14 + $0x3b0] sm:$0xff] }
  0x5c   : > { %5577 = vmatpush3.bf16.msra.mxu1 %v5960_v55  ;;  %5641 = vmatpush3.bf16.msra.mxu0 %v5962_v60  ;;  %v390_v55 = vld [vmem:[%s6325_s14 + $0x180] sm:$0xff]  ;;  %v5976_v60 = vld [vmem:[%s7841_s1 + $0x308] sm:$0xff]  }
  0x5d   : > { %5578 = vmatprep.subr.bf16.mxu1 %v5963_v0  ;;  %5642 = vmatprep.subr.bf16.mxu0 %v5965_v8  ;;  %v407_v0 = vld [vmem:[%s6325_s14 + $0x208] sm:$0xff]  ;;  %v404_v8 = vld [vmem:[%s6325_s14 + $0x1f0] sm:$0xff] }
  0x5e   : > { %1712 = vmatmul.mubr.bf16.gmra.mrb[28].mxu1 %v610_v32  ;;  %1809 = vmatmul.mubr.bf16.gmra.mrb[28].mxu0 %v612_v33  ;;  %v363_v32 = vld [vmem:[%s6325_s14 + $0xa8] sm:$0xff] }
  0x5f   : > { %1719 = vmatprep.mubr.bf16.mxu1 %v625_v34  ;;  %1816 = vmatprep.mubr.bf16.mxu0 %v627_v40  ;;  %v351_v33 = vld [vmem:[%s6325_s14 + $0x48] sm:$0xff]  ;;  %v365_v34 = vld [vmem:[%s6325_s14 + $0xb8] sm:$0xff]  ;;  %v573_v38 = vpack.c.bf16 %v363_v32, %v349_v30  ;;  %v348_v40 = vld [vmem:[%s6325_s14 + $0x30] sm:$0xff] }
  0x60   : > { %5579 = vmatpush3.bf16.msra.mxu1 %v5964_v5  ;;  %5643 = vmatpush3.bf16.msra.mxu0 %v5966_v13  ;;  %v575_v39 = vpack.c.bf16 %v365_v34, %v351_v33  ;;  %v572_v47 = vpack.c.bf16 %v362_v41, %v348_v40  ;;  %v603_v5 = vpack.c.bf16 %v421_v1, %v407_v0  ;;  %v433_v13 = vld [vmem:[%s6325_s14 + $0x2d8] sm:$0xff]  ;;  %v5987_v30 = vld [vmem:[%s7841_s1 + $0x2e8] sm:$0xff]   ;;  %v490_v0 = vld [vmem:[%s6325_s14 + $0x4a0] sm:$0xff] }
  0x61   : > { %5580 = vmatprep.subr.bf16.mxu1 %v5967_v16  ;;  %5644 = vmatprep.subr.bf16.mxu0 %v5969_v22  ;;  %v449_v16 = vld [vmem:[%s6325_s14 + $0x358] sm:$0xff]  ;;  %v615_v22 = vpack.c.bf16 %v447_v14, %v433_v13  ;;  %v475_v32 = vld [vmem:[%s6325_s14 + $0x428] sm:$0xff]  ;;  %v616_v40 = vpack.c.bf16 %v448_v29, %v434_v28  ;;  %v504_v1 = vld [vmem:[%s6325_s14 + $0x510] sm:$0xff] }
  0x62   : > { %v463_v33 = vld [vmem:[%s6325_s14 + $0x3c8] sm:$0xff]  ;;  %v477_v34 = vld [vmem:[%s6325_s14 + $0x438] sm:$0xff]  ;;  %v518_v13 = vld [vmem:[%s6325_s14 + $0x580] sm:$0xff] }
  0x63   : > { %v532_v14 = vld [vmem:[%s6325_s14 + $0x5f0] sm:$0xff]  ;;  %v367_v28 = vld [vmem:[%s6325_s14 + $0xc8] sm:$0xff] }
  0x64   : > { %5581 = vmatpush3.bf16.msra.mxu1 %v5968_v19  ;;  %5645 = vmatpush3.bf16.msra.mxu0 %v5970_v25  ;;  %v5983_v19 = vld [vmem:[%s7841_s1 + $0x2e0] sm:$0xff]   ;;  %v355_v29 = vld [vmem:[%s6325_s14 + $0x68] sm:$0xff] }
  0x65   : > { %5694 = vmatprep.subr.bf16.mxu1 %v5971_v31  ;;  %2140 = vmatprep.subr.bf16.mxu0 %v6232_v35  ;;  %v5985_v25 = vld [vmem:[%s7841_s1 + $0x2a0] sm:$0xff]   ;;  %v461_v31 = vld [vmem:[%s6325_s14 + $0x3b8] sm:$0xff] }
  0x66   : > { %1720 = vmatmul.mubr.bf16.gmra.mrb[32].mxu1 %v624_v48  ;;  %1817 = vmatmul.mubr.bf16.gmra.mrb[32].mxu0 %v626_v49  ;;  %v574_v48 = vpack.c.bf16 %v364_v43, %v350_v42  ;;  %v393_v49 = vld [vmem:[%s6325_s14 + $0x198] sm:$0xff]  ;;  %v629_v41 = vpack.c.bf16 %v475_v32, %v461_v31  ;;  %v631_v42 = vpack.c.bf16 %v477_v34, %v463_v33  ;;  %v5989_v43 = vld [vmem:[%s7841_s1 + $0x330] sm:$0xff]  }
  0x67   : > { %1727 = vmatprep.mubr.bf16.mxu1 %v639_v53  ;;  %1824 = vmatprep.mubr.bf16.mxu0 %v641_v54  ;;  %v5974_v53 = vld [vmem:[%s7841_s1 + $0x2c8] sm:$0xff]   ;;  %v376_v54 = vld [vmem:[%s6325_s14 + $0x110] sm:$0xff]  ;;  %v589_v56 = vpack.c.bf16 %v393_v49, %v379_v46  ;;  %v474_v46 = vld [vmem:[%s6325_s14 + $0x420] sm:$0xff] }
  0x68   : > { %v586_v2 = vpack.c.bf16 %v390_v55, %v376_v54  ;;  %v489_v49 = vld [vmem:[%s6325_s14 + $0x498] sm:$0xff] }
  0x69   : > { %v5992_v54 = vld [vmem:[%s7841_s1 + $0x338] sm:$0xff]  }
  0x6a   : > { %v5994_v55 = vld [vmem:[%s7841_s1 + $0x2b8] sm:$0xff]  }
  0x6e   : > { %1728 = vmatmul.mubr.bf16.gmra.mrb[36].mxu1 %v638_v3  ;;  %1825 = vmatmul.mubr.bf16.gmra.mrb[36].mxu0 %v640_v4  ;;  %v588_v3 = vpack.c.bf16 %v392_v59, %v378_v58  ;;  %v601_v4 = vpack.c.bf16 %v419_v62, %v405_v61  ;;  %v5996_v61 = vld [vmem:[%s7841_s1 + $0x348] ss:$0 sps:$4 sm:$0x11]   ;;  %v488_v62 = vld [vmem:[%s6325_s14 + $0x490] sm:$0xff] }
  0x6f   : > { %1735 = vmatprep.mubr.bf16.mxu1 %v653_v6  ;;  %1832 = vmatprep.mubr.bf16.mxu0 %v655_v7  ;;  %v5978_v6 = vld [vmem:[%s7841_s1 + $0x290] sm:$0xff]  }
  0x70   : > { %v5979_v7 = vld [vmem:[%s7841_s1 + $0x310] sm:$0xff]  }
  0x76   : > { %1736 = vmatmul.mubr.bf16.gmra.mrb[40].mxu1 %v652_v20  ;;  %1833 = vmatmul.mubr.bf16.gmra.mrb[40].mxu0 %v654_v21  ;;  %v600_v20 = vpack.c.bf16 %v418_v9, %v404_v8  ;;  %v602_v21 = vpack.c.bf16 %v420_v11, %v406_v10  ;;  %v644_v8 = vpack.c.bf16 %v504_v1, %v490_v0  ;;  %v516_v11 = vld [vmem:[%s6325_s14 + $0x570] sm:$0xff]  ;;  %v437_v0 = vld [vmem:[%s6325_s14 + $0x2f8] sm:$0xff]  ;;  %v451_v1 = vld [vmem:[%s6325_s14 + $0x368] sm:$0xff] }
  0x77   : > { %1743 = vmatprep.mubr.bf16.mxu1 %v667_v23  ;;  %1840 = vmatprep.mubr.bf16.mxu0 %v669_v24  ;;  %v617_v23 = vpack.c.bf16 %v449_v16, %v435_v15  ;;  %v5984_v24 = vld [vmem:[%s7841_s1 + $0x320] sm:$0xff]   ;;  %v545_v15 = vld [vmem:[%s6325_s14 + $0x658] sm:$0xff]  ;;  %v559_v16 = vld [vmem:[%s6325_s14 + $0x6c8] sm:$0xff] }
  0x7e   : > { %1744 = vmatmul.mubr.bf16.gmra.mrb[44].mxu1 %v666_v36  ;;  %1841 = vmatmul.mubr.bf16.gmra.mrb[44].mxu0 %v668_v37  ;;  %v5986_v36 = vld [vmem:[%s7841_s1 + $0x328] sm:$0xff]  }
  0x7f   : > { %1881 = vmatprep.mubr.bf16.mxu1 %v573_v38  ;;  %1978 = vmatprep.mubr.bf16.mxu0 %v575_v39  ;;  %v5988_v37 = vld [vmem:[%s7841_s1 + $0x2a8] sm:$0xff]   ;;  %v5990_v38 = vld [vmem:[%s7841_s1 + $0x2f0] sm:$0xff]   ;;  %v614_v39 = vpack.c.bf16 %v446_v27, %v432_v26  ;;  %v353_v27 = vld [vmem:[%s6325_s14 + $0x58] sm:$0xff] }
  0x80   : > { %v560_v26 = vld [vmem:[%s6325_s14 + $0x6d0] sm:$0xff]  ;;  %v577_v33 = vpack.c.bf16 %v367_v28, %v353_v27  ;;  %v509_v27 = vld [vmem:[%s6325_s14 + $0x538] sm:$0xff] }
  0x86   : > { %1882 = vmatmul.mubr.bf16.vlgmr.msra.gmra.mrb[48].mxu1 %v572_v47  ;;  %1979 = vmatmul.mubr.bf16.vlgmr.msra.gmra.mrb[48].mxu0 %v574_v48  ;;  %v462_v47 = vld [vmem:[%s6325_s14 + $0x3c0] sm:$0xff]  ;;  %v476_v48 = vld [vmem:[%s6325_s14 + $0x430] sm:$0xff] }
  0x87   : > { %5695 = vmatpush3.bf16.msra.mxu1 %v5972_v50  ;;  %2141 = vmatpush1.bf16.msra.mxu0 %v5973_v51  ;;  %v503_v50 = vld [vmem:[%s6325_s14 + $0x508] sm:$0xff]  ;;  %v5993_v51 = vld [vmem:[%s7841_s1 + $0x2f8] sm:$0xff]  }
  0x88   : > { %1889 = vmatprep.mubr.bf16.mxu1 %v587_v52  ;;  %5696 = vmatprep.subr.bf16.mxu1 %v5974_v53  ;;  %v491_v52 = vld [vmem:[%s6325_s14 + $0x4a8] sm:$0xff]  ;;  %v505_v53 = vld [vmem:[%s6325_s14 + $0x518] sm:$0xff]  ;;  %v643_v58 = vpack.c.bf16 %v503_v50, %v489_v49  ;;  %v394_v49 = vld [vmem:[%s6325_s14 + $0x1a0] sm:$0xff] }
  0x89   : > { %1986 = vmatprep.mubr.bf16.mxu0 %v589_v56  ;;  %2142 = vmatprep.subr.bf16.mxu0 %v6232_v35  ;;  %v628_v56 = vpack.c.bf16 %v474_v46, %v460_v45  ;;  %v645_v59 = vpack.c.bf16 %v505_v53, %v491_v52  ;;  %v382_v50 = vld [vmem:[%s6325_s14 + $0x140] sm:$0xff]  ;;  %v409_v52 = vld [vmem:[%s6325_s14 + $0x218] sm:$0xff]  ;;  %v423_v53 = vld [vmem:[%s6325_s14 + $0x288] sm:$0xff] }
  0x8b   : > { %5697 = vmatpush3.bf16.msra.mxu1 %v5975_v57  ;;  %2143 = vmatpush1.bf16.msra.mxu0 %v5976_v60  ;;  %v630_v57 = vpack.c.bf16 %v476_v48, %v462_v47  ;;  %v5995_v60 = vld [vmem:[%s7841_s1 + $0x340] sm:$0xff]   ;;  %v380_v48 = vld [vmem:[%s6325_s14 + $0x130] sm:$0xff] }
  0x8c   : > { %5698 = vmatprep.subr.bf16.mxu1 %v5977_v63  ;;  %2144 = vmatprep.subr.bf16.mxu0 %v6232_v35  ;;  %v502_v63 = vld [vmem:[%s6325_s14 + $0x500] sm:$0xff] }
  0x8e   : > { %1890 = vmatmul.mubr.bf16.gmra.mrb[52].mxu1 %v586_v2  ;;  %1987 = vmatmul.mubr.bf16.gmra.mrb[52].mxu0 %v588_v3  ;;  %v517_v2 = vld [vmem:[%s6325_s14 + $0x578] sm:$0xff]  ;;  %v531_v3 = vld [vmem:[%s6325_s14 + $0x5e8] sm:$0xff] }
  0x8f   : > { %1897 = vmatprep.mubr.bf16.mxu1 %v601_v4  ;;  %1994 = vmatprep.mubr.bf16.mxu0 %v603_v5  ;;  %v519_v4 = vld [vmem:[%s6325_s14 + $0x588] sm:$0xff]  ;;  %v533_v5 = vld [vmem:[%s6325_s14 + $0x5f8] sm:$0xff]  ;;  %v657_v9 = vpack.c.bf16 %v531_v3, %v517_v2 }
  0x90   : > { %5699 = vmatpush3.bf16.msra.mxu1 %v5978_v6  ;;  %2145 = vmatpush1.bf16.msra.mxu0 %v5979_v7  ;;  %v1556_v6 = vsel %vm1554_vm0, %v5996_v61, 0  ;;  %v642_v7 = vpack.c.bf16 %v502_v63, %v488_v62  ;;  %v659_v10 = vpack.c.bf16 %v533_v5, %v519_v4  ;;  %v422_v61 = vld [vmem:[%s6325_s14 + $0x280] sm:$0xff]  ;;  %v424_v63 = vld [vmem:[%s6325_s14 + $0x290] sm:$0xff]  ;;  %v439_v2 = vld [vmem:[%s6325_s14 + $0x308] sm:$0xff] }
  0x91   : > { %5700 = vmatprep.subr.bf16.mxu1 %v5980_v12  ;;  %2146 = vmatprep.subr.bf16.mxu0 %v6232_v35  ;;  %v530_v12 = vld [vmem:[%s6325_s14 + $0x5e0] sm:$0xff]  ;;  %v453_v3 = vld [vmem:[%s6325_s14 + $0x378] sm:$0xff] }
  0x92   : > { %v410_v62 = vld [vmem:[%s6325_s14 + $0x220] sm:$0xff] }
  0x93   : > { %v606_v5 = vpack.c.bf16 %v424_v63, %v410_v62 }
  0x94   : > { %5701 = vmatpush3.bf16.msra.mxu1 %v5981_v17  ;;  %2147 = vmatpush1.bf16.msra.mxu0 %v5982_v18  ;;  %v547_v17 = vld [vmem:[%s6325_s14 + $0x668] sm:$0xff]  ;;  %v561_v18 = vld [vmem:[%s6325_s14 + $0x6d8] sm:$0xff] }
  0x95   : > { %2148 = vmatprep.subr.bf16.mxu0 %v6232_v35  ;;  %5702 = vmatprep.subr.bf16.mxu1 %v5983_v19  ;;  %v656_v19 = vpack.c.bf16 %v530_v12, %v516_v11  ;;  %v452_v11 = vld [vmem:[%s6325_s14 + $0x370] sm:$0xff]  ;;  %v465_v12 = vld [vmem:[%s6325_s14 + $0x3d8] sm:$0xff] }
  0x96   : > { %1898 = vmatmul.mubr.bf16.gmra.mrb[56].mxu1 %v600_v20  ;;  %1995 = vmatmul.mubr.bf16.gmra.mrb[56].mxu0 %v602_v21  ;;  %v658_v20 = vpack.c.bf16 %v532_v14, %v518_v13  ;;  %v671_v21 = vpack.c.bf16 %v559_v16, %v545_v15  ;;  %v479_v13 = vld [vmem:[%s6325_s14 + $0x448] sm:$0xff]  ;;  %v481_v15 = vld [vmem:[%s6325_s14 + $0x458] sm:$0xff] }
  0x97   : > { %1905 = vmatprep.mubr.bf16.mxu1 %v615_v22  ;;  %2002 = vmatprep.mubr.bf16.mxu0 %v617_v23  ;;  %v673_v22 = vpack.c.bf16 %v561_v18, %v547_v17  ;;  %v544_v23 = vld [vmem:[%s6325_s14 + $0x650] sm:$0xff]  ;;  %v467_v14 = vld [vmem:[%s6325_s14 + $0x3e8] sm:$0xff]  ;;  %v633_v18 = vpack.c.bf16 %v479_v13, %v465_v12 }
  0x98   : > { %2149 = vmatpush1.bf16.msra.mxu0 %v5984_v24  ;;  %5703 = vmatpush3.bf16.msra.mxu1 %v5985_v25  ;;  %v558_v24 = vld [vmem:[%s6325_s14 + $0x6c0] sm:$0xff]  ;;  %v2334_v12 = vld [vmem:[%s7843_s3 + $0x8] sm:$0xff] }
  0x99   : > { %2150 = vmatprep.subr.bf16.mxu0 %v6232_v35  ;;  %5704 = vmatprep.subr.bf16.mxu1 %v5987_v30  ;;  %v546_v25 = vld [vmem:[%s6325_s14 + $0x660] sm:$0xff]  ;;  %v369_v30 = vld [vmem:[%s6325_s14 + $0xd8] sm:$0xff]  ;;  %v670_v31 = vpack.c.bf16 %v558_v24, %v544_v23  ;;  %v480_v23 = vld [vmem:[%s6325_s14 + $0x450] sm:$0xff] }
  0x9a   : > { %v672_v32 = vpack.c.bf16 %v560_v26, %v546_v25  ;;  %v579_v34 = vpack.c.bf16 %v369_v30, %v355_v29  ;;  %v493_v24 = vld [vmem:[%s6325_s14 + $0x4b8] sm:$0xff]  ;;  %v507_v25 = vld [vmem:[%s6325_s14 + $0x528] sm:$0xff] }
  0x9b   : > { %v495_v26 = vld [vmem:[%s6325_s14 + $0x4c8] sm:$0xff]  ;;  %v647_v30 = vpack.c.bf16 %v507_v25, %v493_v24 }
  0x9c   : > { %2151 = vmatpush1.bf16.msra.mxu0 %v5986_v36  ;;  %5705 = vmatpush3.bf16.msra.mxu1 %v5988_v37  ;;  %v352_v36 = vld [vmem:[%s6325_s14 + $0x50] sm:$0xff]  ;;  %v366_v37 = vld [vmem:[%s6325_s14 + $0xc0] sm:$0xff] }
  0x9d   : > { %2152 = vmatprep.subr.bf16.mxu0 %v6232_v35  ;;  %5706 = vmatprep.subr.bf16.mxu1 %v5990_v38  ;;  %v354_v38 = vld [vmem:[%s6325_s14 + $0x60] sm:$0xff] }
  0x9e   : > { %1906 = vmatmul.mubr.bf16.gmra.mrb[60].mxu1 %v614_v39  ;;  %2003 = vmatmul.mubr.bf16.gmra.mrb[60].mxu0 %v616_v40  ;;  %v368_v39 = vld [vmem:[%s6325_s14 + $0xd0] sm:$0xff]  ;;  %v381_v40 = vld [vmem:[%s6325_s14 + $0x138] sm:$0xff] }
  0x9f   : > { %1913 = vmatprep.mubr.bf16.mxu1 %v629_v41  ;;  %2010 = vmatprep.mubr.bf16.mxu0 %v631_v42  ;;  %v395_v41 = vld [vmem:[%s6325_s14 + $0x1a8] sm:$0xff]  ;;  %v578_v45 = vpack.c.bf16 %v368_v39, %v354_v38 }
  0xa0   : > { %2153 = vmatpush1.bf16.msra.mxu0 %v5989_v43  ;;  %5707 = vmatpush3.bf16.msra.mxu1 %v5991_v44  ;;  %v383_v42 = vld [vmem:[%s6325_s14 + $0x148] sm:$0xff]  ;;  %v397_v43 = vld [vmem:[%s6325_s14 + $0x1b8] sm:$0xff]  ;;  %v576_v44 = vpack.c.bf16 %v366_v37, %v352_v36  ;;  %v591_v46 = vpack.c.bf16 %v395_v41, %v381_v40  ;;  %v508_v36 = vld [vmem:[%s6325_s14 + $0x530] sm:$0xff] }
  0xa1   : > { %2154 = vmatprep.subr.bf16.mxu0 %v6232_v35  ;;  %5708 = vmatprep.subr.bf16.mxu1 %v5993_v51  ;;  %v593_v47 = vpack.c.bf16 %v397_v43, %v383_v42  ;;  %v396_v51 = vld [vmem:[%s6325_s14 + $0x1b0] sm:$0xff]  ;;  %v521_v37 = vld [vmem:[%s6325_s14 + $0x598] sm:$0xff]  ;;  %v535_v38 = vld [vmem:[%s6325_s14 + $0x608] sm:$0xff] }
  0xa2   : > { %v523_v39 = vld [vmem:[%s6325_s14 + $0x5a8] sm:$0xff]  ;;  %v537_v40 = vld [vmem:[%s6325_s14 + $0x618] sm:$0xff]  ;;  %v661_v43 = vpack.c.bf16 %v535_v38, %v521_v37 }
  0xa4   : > { %2155 = vmatpush1.bf16.msra.mxu0 %v5992_v54  ;;  %5709 = vmatpush3.bf16.msra.mxu1 %v5994_v55  ;;  %v411_v54 = vld [vmem:[%s6325_s14 + $0x228] sm:$0xff]  ;;  %v425_v55 = vld [vmem:[%s6325_s14 + $0x298] sm:$0xff] }
  0xa5   : > { %2156 = vmatprep.subr.bf16.mxu0 %v6232_v35 }
  0xa6   : > { %1914 = vmatmul.mubr.bf16.gmra.mrb[64].mxu1 %v628_v56  ;;  %2011 = vmatmul.mubr.bf16.gmra.mrb[64].mxu0 %v630_v57  ;;  %v590_v56 = vpack.c.bf16 %v394_v49, %v380_v48  ;;  %v592_v57 = vpack.c.bf16 %v396_v51, %v382_v50  ;;  %v536_v48 = vld [vmem:[%s6325_s14 + $0x610] sm:$0xff]  ;;  %v549_v49 = vld [vmem:[%s6325_s14 + $0x678] sm:$0xff]  ;;  %v563_v50 = vld [vmem:[%s6325_s14 + $0x6e8] sm:$0xff] }
  0xa7   : > { %1921 = vmatprep.mubr.bf16.mxu1 %v643_v58  ;;  %2018 = vmatprep.mubr.bf16.mxu0 %v645_v59  ;;  %v605_v58 = vpack.c.bf16 %v423_v53, %v409_v52  ;;  %v607_v59 = vpack.c.bf16 %v425_v55, %v411_v54  ;;  %v551_v51 = vld [vmem:[%s6325_s14 + $0x688] sm:$0xff]  ;;  %v565_v52 = vld [vmem:[%s6325_s14 + $0x6f8] sm:$0xff]  ;;  %v675_v55 = vpack.c.bf16 %v563_v50, %v549_v49 }
  0xa8   : > { %2157 = vmatpush1.bf16.msra.mxu0 %v5995_v60  ;;  %v408_v60 = vld [vmem:[%s6325_s14 + $0x210] sm:$0xff] }
  0xa9   : > { %2158 = vmatprep.subr.bf16.mxu0 %v6232_v35  ;;  %v604_v4 = vpack.c.bf16 %v422_v61, %v408_v60  ;;  %v564_v60 = vld [vmem:[%s6325_s14 + $0x6f0] sm:$0xff] }
  0xac   : > { %2159 = vmatpush1.bf16.msra.mxu0 %v1556_v6  ;;  %v619_v6 = vpack.c.bf16 %v451_v1, %v437_v0 }
  0xae   : > { %1922 = vmatmul.mubr.bf16.gmra.mrb[68].mxu1 %v642_v7  ;;  %2019 = vmatmul.mubr.bf16.gmra.mrb[68].mxu0 %v644_v8  ;;  %v621_v7 = vpack.c.bf16 %v453_v3, %v439_v2  ;;  %v436_v8 = vld [vmem:[%s6325_s14 + $0x2f0] sm:$0xff] }
  0xaf   : > { %1929 = vmatprep.mubr.bf16.mxu1 %v657_v9  ;;  %2026 = vmatprep.mubr.bf16.mxu0 %v659_v10  ;;  %v450_v9 = vld [vmem:[%s6325_s14 + $0x360] sm:$0xff] }
  0xb0   : > { %v438_v10 = vld [vmem:[%s6325_s14 + $0x300] sm:$0xff]  ;;  %v618_v16 = vpack.c.bf16 %v450_v9, %v436_v8 }
  0xb1   : > { %v620_v17 = vpack.c.bf16 %v452_v11, %v438_v10  ;;  %v2333_v11 = vld [vmem:[%s7843_s3] sm:$0xff] }
  0xb2   : > { %v5853_v13 = vpack.c.bf16 %v2334_v12, %v2333_v11 }
  0xb4   : > { %5854 = vmatprep.subr.bf16.mxu1 %v5853_v13 }
  0xb6   : > { %1930 = vmatmul.mubr.bf16.gmra.mrb[72].mxu1 %v656_v19  ;;  %2027 = vmatmul.mubr.bf16.gmra.mrb[72].mxu0 %v658_v20  ;;  %v635_v19 = vpack.c.bf16 %v481_v15, %v467_v14  ;;  %v464_v20 = vld [vmem:[%s6325_s14 + $0x3d0] sm:$0xff] }
  0xb7   : > { %1937 = vmatprep.mubr.bf16.mxu1 %v671_v21  ;;  %2034 = vmatprep.mubr.bf16.mxu0 %v673_v22  ;;  %v478_v21 = vld [vmem:[%s6325_s14 + $0x440] sm:$0xff] }
  0xb8   : > { %v466_v22 = vld [vmem:[%s6325_s14 + $0x3e0] sm:$0xff]  ;;  %v632_v28 = vpack.c.bf16 %v478_v21, %v464_v20 }
  0xb9   : > { %v634_v29 = vpack.c.bf16 %v480_v23, %v466_v22 }
  0xbe   : > { %1938 = vmatmul.mubr.bf16.gmra.mrb[76].mxu1 %v670_v31  ;;  %2035 = vmatmul.mubr.bf16.gmra.mrb[76].mxu0 %v672_v32  ;;  %v649_v31 = vpack.c.bf16 %v509_v27, %v495_v26  ;;  %v492_v32 = vld [vmem:[%s6325_s14 + $0x4b0] sm:$0xff] }
  0xbf   : > { %2075 = vmatprep.mubr.bf16.mxu1 %v577_v33  ;;  %4965 = vmatprep.mubr.msk.bf16.mxu0 %vm1529_vm1, %v579_v34  ;;  %v506_v33 = vld [vmem:[%s6325_s14 + $0x520] sm:$0xff] }
  0xc0   : > { %v494_v34 = vld [vmem:[%s6325_s14 + $0x4c0] sm:$0xff]  ;;  %v646_v41 = vpack.c.bf16 %v506_v33, %v492_v32 }
  0xc1   : > { %v648_v42 = vpack.c.bf16 %v508_v36, %v494_v34 }
  0xc6   : > { %2076 = vmatmul.mubr.bf16.vlgmr.msra.gmra.mrb[80].mxu1 %v576_v44  ;;  %2173 = vmatmul.mubr.bf16.vlgmr.msra.gmra.mrb[80].mxu0 %v578_v45  ;;  %v663_v44 = vpack.c.bf16 %v537_v40, %v523_v39  ;;  %v520_v45 = vld [vmem:[%s6325_s14 + $0x590] sm:$0xff] }
  0xc7   : > { %2083 = vmatprep.mubr.bf16.mxu1 %v591_v46  ;;  %4966 = vmatprep.mubr.msk.bf16.mxu0 %vm1529_vm1, %v593_v47  ;;  %v534_v46 = vld [vmem:[%s6325_s14 + $0x600] sm:$0xff] }
  0xc8   : > { %v522_v47 = vld [vmem:[%s6325_s14 + $0x5a0] sm:$0xff]  ;;  %v660_v53 = vpack.c.bf16 %v534_v46, %v520_v45  ;;  %5856 = vmatpush3.bf16.msra.mxu1 %v5853_v13 }
  0xc9   : > { %v662_v54 = vpack.c.bf16 %v536_v48, %v522_v47 }
  0xce   : > { %2084 = vmatmul.mubr.bf16.gmra.mrb[84].mxu1 %v590_v56  ;;  %2181 = vmatmul.mubr.bf16.gmra.mrb[84].mxu0 %v592_v57  ;;  %v677_v56 = vpack.c.bf16 %v565_v52, %v551_v51  ;;  %v548_v57 = vld [vmem:[%s6325_s14 + $0x670] sm:$0xff] }
  0xcf   : > { %2091 = vmatprep.mubr.bf16.mxu1 %v605_v58  ;;  %4967 = vmatprep.mubr.msk.bf16.mxu0 %vm1529_vm1, %v607_v59  ;;  %v562_v58 = vld [vmem:[%s6325_s14 + $0x6e0] sm:$0xff] }
  0xd0   : > { %v550_v59 = vld [vmem:[%s6325_s14 + $0x680] sm:$0xff]  ;;  %v674_v1 = vpack.c.bf16 %v562_v58, %v548_v57 }
  0xd1   : > { %v676_v2 = vpack.c.bf16 %v564_v60, %v550_v59 }
  0xd6   : > { %2092 = vmatmul.mubr.bf16.gmra.mrb[88].mxu1 %v604_v4  ;;  %2189 = vmatmul.mubr.bf16.gmra.mrb[88].mxu0 %v606_v5 }
  0xd7   : > { %2099 = vmatprep.mubr.bf16.mxu1 %v619_v6  ;;  %4968 = vmatprep.mubr.msk.bf16.mxu0 %vm1529_vm1, %v621_v7 }
  0xde   : > { %2100 = vmatmul.mubr.bf16.gmra.mrb[92].mxu1 %v618_v16  ;;  %2197 = vmatmul.mubr.bf16.gmra.mrb[92].mxu0 %v620_v17 }
  0xdf   : > { %2107 = vmatprep.mubr.bf16.mxu1 %v633_v18  ;;  %4969 = vmatprep.mubr.msk.bf16.mxu0 %vm1529_vm1, %v635_v19 }
  0xe6   : > { %2108 = vmatmul.mubr.bf16.gmra.mrb[96].mxu1 %v632_v28  ;;  %2205 = vmatmul.mubr.bf16.gmra.mrb[96].mxu0 %v634_v29 }
  0xe7   : > { %2115 = vmatprep.mubr.bf16.mxu1 %v647_v30  ;;  %4970 = vmatprep.mubr.msk.bf16.mxu0 %vm1529_vm1, %v649_v31 }
  0xee   : > { %2116 = vmatmul.mubr.bf16.gmra.mrb[100].mxu1 %v646_v41  ;;  %2213 = vmatmul.mubr.bf16.gmra.mrb[100].mxu0 %v648_v42 }
  0xef   : > { %2123 = vmatprep.mubr.bf16.mxu1 %v661_v43  ;;  %4971 = vmatprep.mubr.msk.bf16.mxu0 %vm1529_vm1, %v663_v44 }
  0xf6   : > { %2124 = vmatmul.mubr.bf16.gmra.mrb[104].mxu1 %v660_v53  ;;  %2221 = vmatmul.mubr.bf16.gmra.mrb[104].mxu0 %v662_v54  ;;  %v6890_v53 = vld [vmem:[%s7842_s2] ss:$0 sm:$0xff] }
  0xf7   : > { %2131 = vmatprep.mubr.bf16.mxu1 %v675_v55  ;;  %4972 = vmatprep.mubr.msk.bf16.mxu0 %vm1529_vm1, %v677_v56 }
  0xf9   : > { %v5414_v61 = vpop.f32.mrb[0].mxu1  ;;  %v5390_v62 = vpop.f32.mrb[0].mxu0 }
  0xfa   : > { %v5415_v63 = vpop.f32.mrb[1].mxu1  ;;  %v5391_v0 = vpop.f32.mrb[1].mxu0 }
  0xfb   : > { %v6860_v3 = vadd.f32 %v5415_v63, %v5414_v61  ;;  %v5417_v4 = vpop.f32.mrb[2].mxu1  ;;  %v5392_v5 = vadd.f32 %v5391_v0, %v5390_v62  ;;  %v5393_v6 = vpop.f32.mrb[2].mxu0 }
  0xfc   : > { %v5418_v7 = vpop.f32.mrb[3].mxu1  ;;  %v5394_v8 = vpop.f32.mrb[3].mxu0 }
  0xfd   : > { %v6862_v9 = vadd.f32 %v5418_v7, %v5417_v4  ;;  %v5395_v10 = vadd.f32 %v5394_v8, %v5393_v6  ;;  %v1593_v56 = vadd.f32 %v5392_v5, %v6890_v53 }
  0xfe   : > { %2132 = vmatmul.mubr.bf16.gmra.mrb[108].mxu1 %v674_v1  ;;  %2229 = vmatmul.mubr.bf16.gmra.mrb[108].mxu0 %v676_v2 }
  0xff   : > { %3246 = vmatprep.mubr.bf16.mxu0 %v6232_v35  ;;  %v1596_v63 = vadd.f32 %v5395_v10, %v6890_v53 }
 0x101   : > { %v5420_v14 = vpop.f32.mrb[4].mxu1  ;;  %v5396_v15 = vpop.f32.mrb[4].mxu0 }
 0x102   : > { %v5421_v16 = vpop.f32.mrb[5].mxu1  ;;  %v5397_v17 = vpop.f32.mrb[5].mxu0 }
 0x103   : > { %v6871_v18 = vadd.f32 %v5421_v16, %v5420_v14  ;;  %v5423_v19 = vpop.f32.mrb[6].mxu1  ;;  %v5398_v20 = vadd.f32 %v5397_v17, %v5396_v15  ;;  %v5399_v21 = vpop.f32.mrb[6].mxu0 }
 0x104   : > { %v5424_v22 = vpop.f32.mrb[7].mxu1  ;;  %v5400_v23 = vpop.f32.mrb[7].mxu0 }
 0x105   : > { %v6873_v24 = vadd.f32 %v5424_v22, %v5423_v19  ;;  %v5401_v25 = vadd.f32 %v5400_v23, %v5399_v21  ;;  %v1601_v13 = vadd.f32 %v5398_v20, %v6890_v53 }
 0x107   : > { %v1604_v21 = vadd.f32 %v5401_v25, %v6890_v53 }
 0x109   : > { %v5426_v26 = vpop.f32.mrb[8].mxu1  ;;  %v5402_v27 = vpop.f32.mrb[8].mxu0 }
 0x10a   : > { %v5427_v28 = vpop.f32.mrb[9].mxu1  ;;  %v5403_v29 = vpop.f32.mrb[9].mxu0 }
 0x10b   : > { %v6875_v30 = vadd.f32 %v5427_v28, %v5426_v26  ;;  %v5429_v31 = vpop.f32.mrb[10].mxu1  ;;  %v5404_v32 = vadd.f32 %v5403_v29, %v5402_v27  ;;  %v5405_v33 = vpop.f32.mrb[10].mxu0 }
 0x10c   : > { %v5430_v34 = vpop.f32.mrb[11].mxu1  ;;  %v5406_v36 = vpop.f32.mrb[11].mxu0 }
 0x10d   : > { %v6877_v37 = vadd.f32 %v5430_v34, %v5429_v31  ;;  %v5407_v38 = vadd.f32 %v5406_v36, %v5405_v33  ;;  %v1609_v36 = vadd.f32 %v5404_v32, %v6890_v53 }
 0x111   : > { %v5432_v39 = vpop.f32.mrb[12].mxu1  ;;  %v5408_v40 = vpop.f32.mrb[12].mxu0 }
 0x112   : > { %v5433_v41 = vpop.f32.mrb[13].mxu1  ;;  %v5409_v42 = vpop.f32.mrb[13].mxu0 }
 0x113   : > { %v6879_v43 = vadd.f32 %v5433_v41, %v5432_v39  ;;  %v5435_v44 = vpop.f32.mrb[14].mxu1  ;;  %v6881_v45 = vadd.f32 %v5409_v42, %v5408_v40  ;;  %v5411_v46 = vpop.f32.mrb[14].mxu0 }
 0x114   : > { %v5436_v47 = vpop.f32.mrb[15].mxu1  ;;  %v5412_v48 = vpop.f32.mrb[15].mxu0 }
 0x115   : > { %v6883_v49 = vadd.f32 %v5436_v47, %v5435_v44  ;;  %v6885_v50 = vadd.f32 %v5412_v48, %v5411_v46  ;;  %v1612_v46 = vadd.f32 %v5407_v38, %v6890_v53  ;;  %v1617_v38 = vadd.f32 %v6881_v45, %v6890_v53 }
 0x119   : > { %v5454_v51 = vpop.f32.mrb[16].mxu1  ;;  %v5518_v52 = vpop.f32.mrb[16].mxu0 }
 0x11a   : > { %v5455_v54 = vpop.f32.mrb[17].mxu1  ;;  %v5519_v55 = vpop.f32.mrb[17].mxu0 }
 0x11b   : > { %v5456_v57 = vadd.f32 %v5455_v54, %v5454_v51  ;;  %v5457_v58 = vpop.f32.mrb[18].mxu1  ;;  %v5520_v59 = vadd.f32 %v5519_v55, %v5518_v52  ;;  %v5521_v60 = vpop.f32.mrb[18].mxu0  ;;  %v2335_v55 = vld [vmem:[%s7843_s3 + $0x10] sm:$0xf] }
 0x11c   : > { %v5458_v61 = vpop.f32.mrb[19].mxu1  ;;  %v5522_v62 = vpop.f32.mrb[19].mxu0  ;;  %5799 = vmatprep.subr.msk.mxu1 %vm2392_vm2, %v2335_v55 }
 0x11d   : > { %v1690_v0 = vadd.f32 %v5456_v57, %v1593_v56  ;;  %v5459_v1 = vadd.f32 %v5458_v61, %v5457_v58  ;;  %v5523_v2 = vadd.f32 %v5522_v62, %v5521_v60  ;;  %5800 = vmatpush3.msk.msra.mxu1 %vm2392_vm2, %v2335_v55 }
 0x11f   : > { %v1693_v4 = vadd.f32 %v5459_v1, %v1596_v63  ;;  %v6894_v6 = vadd.f32 %v5520_v59, %v1690_v0 }
 0x121   : > { %v6896_v7 = vadd.f32 %v5523_v2, %v1693_v4  ;;  %v5460_v8 = vpop.f32.mrb[20].mxu1  ;;  %v5524_v11 = vpop.f32.mrb[20].mxu0  ;;  %v1620_v2 = vadd.f32 %v6885_v50, %v6890_v53 }
 0x122   : > { %v5461_v12 = vpop.f32.mrb[21].mxu1  ;;  %v5525_v5 = vpop.f32.mrb[21].mxu0 }
 0x123   : > { %v5462_v14 = vadd.f32 %v5461_v12, %v5460_v8  ;;  %v5463_v15 = vpop.f32.mrb[22].mxu1  ;;  %v5526_v16 = vadd.f32 %v5525_v5, %v5524_v11  ;;  %v5527_v17 = vpop.f32.mrb[22].mxu0 }
 0x124   : > { %v5464_v19 = vpop.f32.mrb[23].mxu1  ;;  %v5528_v10 = vpop.f32.mrb[23].mxu0 }
 0x125   : > { %v1698_v22 = vadd.f32 %v5462_v14, %v1601_v13  ;;  %v5465_v23 = vadd.f32 %v5464_v19, %v5463_v15  ;;  %v5529_v26 = vadd.f32 %v5528_v10, %v5527_v17  ;;  %v1625_v17 = vadd.f32 %v6860_v3, %v6890_v53 }
 0x127   : > { %v1701_v27 = vadd.f32 %v5465_v23, %v1604_v21  ;;  %v6900_v28 = vadd.f32 %v5526_v16, %v1698_v22 }
 0x129   : > { %v6902_v29 = vadd.f32 %v5529_v26, %v1701_v27  ;;  %v5466_v31 = vpop.f32.mrb[24].mxu1  ;;  %v5530_v33 = vpop.f32.mrb[24].mxu0  ;;  %v1628_v26 = vadd.f32 %v6862_v9, %v6890_v53 }
 0x12a   : > { %v5467_v34 = vpop.f32.mrb[25].mxu1  ;;  %v5531_v20 = vpop.f32.mrb[25].mxu0 }
 0x12b   : > { %v5468_v39 = vadd.f32 %v5467_v34, %v5466_v31  ;;  %v5469_v40 = vpop.f32.mrb[26].mxu1  ;;  %v5532_v41 = vadd.f32 %v5531_v20, %v5530_v33  ;;  %v5533_v42 = vpop.f32.mrb[26].mxu0 }
 0x12c   : > { %v5470_v44 = vpop.f32.mrb[27].mxu1  ;;  %v5534_v25 = vpop.f32.mrb[27].mxu0 }
 0x12d   : > { %v1706_v47 = vadd.f32 %v5468_v39, %v1609_v36  ;;  %v5471_v48 = vadd.f32 %v5470_v44, %v5469_v40  ;;  %v5535_v51 = vadd.f32 %v5534_v25, %v5533_v42  ;;  %v1633_v42 = vadd.f32 %v6871_v18, %v6890_v53 }
 0x12f   : > { %v1709_v52 = vadd.f32 %v5471_v48, %v1612_v46  ;;  %v6906_v54 = vadd.f32 %v5532_v41, %v1706_v47 }
 0x131   : > { %v6911_v32 = vadd.f32 %v5535_v51, %v1709_v52  ;;  %v5472_v56 = vpop.f32.mrb[28].mxu1  ;;  %v5536_v57 = vpop.f32.mrb[28].mxu0  ;;  %v1636_v51 = vadd.f32 %v6873_v24, %v6890_v53 }
 0x132   : > { %v5473_v58 = vpop.f32.mrb[29].mxu1  ;;  %v5537_v59 = vpop.f32.mrb[29].mxu0 }
 0x133   : > { %v5474_v60 = vadd.f32 %v5473_v58, %v5472_v56  ;;  %v5475_v61 = vpop.f32.mrb[30].mxu1  ;;  %v5538_v62 = vadd.f32 %v5537_v59, %v5536_v57  ;;  %v5539_v63 = vpop.f32.mrb[30].mxu0 }
 0x134   : > { %v5476_v0 = vpop.f32.mrb[31].mxu1  ;;  %v5540_v1 = vpop.f32.mrb[31].mxu0 }
 0x135   : > { %v1714_v4 = vadd.f32 %v5474_v60, %v1617_v38  ;;  %v5477_v8 = vadd.f32 %v5476_v0, %v5475_v61  ;;  %v5541_v11 = vadd.f32 %v5540_v1, %v5539_v63 }
 0x137   : > { %v1717_v12 = vadd.f32 %v5477_v8, %v1620_v2  ;;  %v6919_v5 = vadd.f32 %v5538_v62, %v1714_v4  ;;  %v1641_v62 = vadd.f32 %v6875_v30, %v6890_v53  ;;  %v1644_v8 = vadd.f32 %v6877_v37, %v6890_v53 }
 0x139   : > { %v6921_v13 = vadd.f32 %v5541_v11, %v1717_v12  ;;  %v5478_v14 = vpop.f32.mrb[32].mxu1  ;;  %v5542_v15 = vpop.f32.mrb[32].mxu0 }
 0x13a   : > { %v5479_v45 = vpop.f32.mrb[33].mxu1  ;;  %v5543_v16 = vpop.f32.mrb[33].mxu0 }
 0x13b   : > { %v5480_v19 = vadd.f32 %v5479_v45, %v5478_v14  ;;  %v5481_v10 = vpop.f32.mrb[34].mxu1  ;;  %v5544_v21 = vadd.f32 %v5543_v16, %v5542_v15  ;;  %v5545_v22 = vpop.f32.mrb[34].mxu0 }
 0x13c   : > { %v5482_v50 = vpop.f32.mrb[35].mxu1  ;;  %v5546_v23 = vpop.f32.mrb[35].mxu0 }
 0x13d   : > { %v1722_v27 = vadd.f32 %v5480_v19, %v1625_v17  ;;  %v5483_v31 = vadd.f32 %v5482_v50, %v5481_v10  ;;  %v5547_v33 = vadd.f32 %v5546_v23, %v5545_v22 }
 0x13f   : > { %v1725_v34 = vadd.f32 %v5483_v31, %v1628_v26  ;;  %v6927_v20 = vadd.f32 %v5544_v21, %v1722_v27  ;;  %v1649_v21 = vadd.f32 %v6879_v43, %v6890_v53  ;;  %v1652_v31 = vadd.f32 %v6883_v49, %v6890_v53 }
 0x141   : > { %v6929_v36 = vadd.f32 %v5547_v33, %v1725_v34  ;;  %v5484_v39 = vpop.f32.mrb[36].mxu1  ;;  %v5548_v40 = vpop.f32.mrb[36].mxu0 }
 0x142   : > { %v5485_v3 = vpop.f32.mrb[37].mxu1  ;;  %v5549_v41 = vpop.f32.mrb[37].mxu0 }
 0x143   : > { %v5486_v44 = vadd.f32 %v5485_v3, %v5484_v39  ;;  %v5487_v25 = vpop.f32.mrb[38].mxu1  ;;  %v5550_v46 = vadd.f32 %v5549_v41, %v5548_v40  ;;  %v5551_v47 = vpop.f32.mrb[38].mxu0 }
 0x144   : > { %v5488_v9 = vpop.f32.mrb[39].mxu1  ;;  %v5552_v48 = vpop.f32.mrb[39].mxu0 }
 0x145   : > { %v1730_v52 = vadd.f32 %v5486_v44, %v1633_v42  ;;  %v5489_v55 = vadd.f32 %v5488_v9, %v5487_v25  ;;  %v5553_v56 = vadd.f32 %v5552_v48, %v5551_v47 }
 0x147   : > { %v1733_v57 = vadd.f32 %v5489_v55, %v1636_v51  ;;  %v6935_v58 = vadd.f32 %v5550_v46, %v1730_v52 }
 0x149   : > { %v6937_v59 = vadd.f32 %v5553_v56, %v1733_v57  ;;  %v5490_v38 = vpop.f32.mrb[40].mxu1  ;;  %v5554_v60 = vpop.f32.mrb[40].mxu0 }
 0x14a   : > { %v5491_v18 = vpop.f32.mrb[41].mxu1  ;;  %v5555_v61 = vpop.f32.mrb[41].mxu0 }
 0x14b   : > { %v5492_v63 = vadd.f32 %v5491_v18, %v5490_v38  ;;  %v5493_v0 = vpop.f32.mrb[42].mxu1  ;;  %v5556_v1 = vadd.f32 %v5555_v61, %v5554_v60  ;;  %v5557_v2 = vpop.f32.mrb[42].mxu0 }
 0x14c   : > { %v5494_v24 = vpop.f32.mrb[43].mxu1  ;;  %v5558_v4 = vpop.f32.mrb[43].mxu0 }
 0x14d   : > { %v1738_v11 = vadd.f32 %v5492_v63, %v1641_v62  ;;  %v5495_v12 = vadd.f32 %v5494_v24, %v5493_v0  ;;  %v5559_v14 = vadd.f32 %v5558_v4, %v5557_v2 }
 0x14f   : > { %v1741_v15 = vadd.f32 %v5495_v12, %v1644_v8  ;;  %v6943_v45 = vadd.f32 %v5556_v1, %v1738_v11 }
 0x151   : > { %v6945_v16 = vadd.f32 %v5559_v14, %v1741_v15  ;;  %v5496_v17 = vpop.f32.mrb[44].mxu1  ;;  %v5560_v19 = vpop.f32.mrb[44].mxu0 }
 0x152   : > { %v5497_v30 = vpop.f32.mrb[45].mxu1  ;;  %v5561_v10 = vpop.f32.mrb[45].mxu0 }
 0x153   : > { %v5498_v22 = vadd.f32 %v5497_v30, %v5496_v17  ;;  %v5499_v50 = vpop.f32.mrb[46].mxu1  ;;  %v5562_v23 = vadd.f32 %v5561_v10, %v5560_v19  ;;  %v5563_v26 = vpop.f32.mrb[46].mxu0 }
 0x154   : > { %v5500_v37 = vpop.f32.mrb[47].mxu1  ;;  %v5564_v27 = vpop.f32.mrb[47].mxu0 }
 0x155   : > { %v1746_v33 = vadd.f32 %v5498_v22, %v1649_v21  ;;  %v5501_v34 = vadd.f32 %v5500_v37, %v5499_v50  ;;  %v5565_v39 = vadd.f32 %v5564_v27, %v5563_v26 }
 0x157   : > { %v1749_v40 = vadd.f32 %v5501_v34, %v1652_v31  ;;  %v6951_v3 = vadd.f32 %v5562_v23, %v1746_v33 }
 0x159   : > { %v6953_v41 = vadd.f32 %v5565_v39, %v1749_v40  ;;  %v5582_v42 = vpop.f32.mrb[48].mxu1  ;;  %v5646_v44 = vpop.f32.mrb[48].mxu0 }
 0x15a   : > { %v5583_v43 = vpop.f32.mrb[49].mxu1  ;;  %v5647_v25 = vpop.f32.mrb[49].mxu0 }
 0x15b   : > { %v5584_v46 = vadd.f32 %v5583_v43, %v5582_v42  ;;  %v5585_v47 = vpop.f32.mrb[50].mxu1  ;;  %v5648_v9 = vadd.f32 %v5647_v25, %v5646_v44  ;;  %v5649_v48 = vpop.f32.mrb[50].mxu0 }
 0x15c   : > { %v5586_v51 = vpop.f32.mrb[51].mxu1  ;;  %v5650_v52 = vpop.f32.mrb[51].mxu0 }
 0x15d   : > { %v1884_v49 = vadd.f32 %v5584_v46, %v6894_v6  ;;  %v5587_v53 = vadd.f32 %v5586_v51, %v5585_v47  ;;  %v5651_v55 = vadd.f32 %v5650_v52, %v5649_v48  ;;  %v2638_v52 = vld [vmem:[%s7845_s5 + $0x8] sm:$0x3] }
 0x15f   : > { %v1887_v56 = vadd.f32 %v5587_v53, %v6896_v7  ;;  %v6957_v57 = vadd.f32 %v5648_v9, %v1884_v49 }
 0x161   : > { %v6959_v38 = vadd.f32 %v5651_v55, %v1887_v56  ;;  %v5588_v60 = vpop.f32.mrb[52].mxu1  ;;  %v5652_v18 = vpop.f32.mrb[52].mxu0 }
 0x162   : > { %v5589_v61 = vpop.f32.mrb[53].mxu1  ;;  %v5653_v62 = vpop.f32.mrb[53].mxu0 }
 0x163   : > { %v5590_v63 = vadd.f32 %v5589_v61, %v5588_v60  ;;  %v5591_v0 = vpop.f32.mrb[54].mxu1  ;;  %v5654_v1 = vadd.f32 %v5653_v62, %v5652_v18  ;;  %v5655_v2 = vpop.f32.mrb[54].mxu0 }
 0x164   : > { %v5592_v24 = vpop.f32.mrb[55].mxu1  ;;  %v5656_v4 = vpop.f32.mrb[55].mxu0 }
 0x165   : > { %v1892_v6 = vadd.f32 %v5590_v63, %v6900_v28  ;;  %v5593_v8 = vadd.f32 %v5592_v24, %v5591_v0  ;;  %v5657_v11 = vadd.f32 %v5656_v4, %v5655_v2 }
 0x167   : > { %v1895_v7 = vadd.f32 %v5593_v8, %v6902_v29  ;;  %v6963_v12 = vadd.f32 %v5654_v1, %v1892_v6 }
 0x169   : > { %v6965_v14 = vadd.f32 %v5657_v11, %v1895_v7  ;;  %v5594_v15 = vpop.f32.mrb[56].mxu1  ;;  %v5658_v17 = vpop.f32.mrb[56].mxu0 }
 0x16a   : > { %v5595_v19 = vpop.f32.mrb[57].mxu1  ;;  %v5659_v30 = vpop.f32.mrb[57].mxu0 }
 0x16b   : > { %v5596_v10 = vadd.f32 %v5595_v19, %v5594_v15  ;;  %v5597_v21 = vpop.f32.mrb[58].mxu1  ;;  %v5660_v22 = vadd.f32 %v5659_v30, %v5658_v17  ;;  %v5661_v50 = vpop.f32.mrb[58].mxu0 }
 0x16c   : > { %v5598_v23 = vpop.f32.mrb[59].mxu1  ;;  %v5662_v26 = vpop.f32.mrb[59].mxu0 }
 0x16d   : > { %v1900_v28 = vadd.f32 %v5596_v10, %v6906_v54  ;;  %v5599_v37 = vadd.f32 %v5598_v23, %v5597_v21  ;;  %v5663_v27 = vadd.f32 %v5662_v26, %v5661_v50 }
 0x16f   : > { %v1903_v29 = vadd.f32 %v5599_v37, %v6911_v32  ;;  %v6969_v31 = vadd.f32 %v5660_v22, %v1900_v28  ;;  %v2637_v32 = vld [vmem:[%s7845_s5] sm:$0xff] }
 0x170   : > { %v6980_v49 = vpack.c.bf16 %v2638_v52, %v2637_v32 }
 0x171   : > { %v6971_v33 = vadd.f32 %v5663_v27, %v1903_v29  ;;  %v5600_v34 = vpop.f32.mrb[60].mxu1  ;;  %v5664_v39 = vpop.f32.mrb[60].mxu0 }
 0x172   : > { %v5601_v40 = vpop.f32.mrb[61].mxu1  ;;  %v5665_v42 = vpop.f32.mrb[61].mxu0  ;;  %5859 = vmatprep.subr.msk.bf16.mxu1 %vm6986_vm5, %v6980_v49 }
 0x173   : > { %v5602_v44 = vadd.f32 %v5601_v40, %v5600_v34  ;;  %v5603_v43 = vpop.f32.mrb[62].mxu1  ;;  %v5666_v25 = vadd.f32 %v5665_v42, %v5664_v39  ;;  %v5667_v46 = vpop.f32.mrb[62].mxu0 }
 0x174   : > { %v5604_v47 = vpop.f32.mrb[63].mxu1  ;;  %v5668_v9 = vpop.f32.mrb[63].mxu0 }
 0x175   : > { %v1908_v54 = vadd.f32 %v5602_v44, %v6919_v5  ;;  %v5605_v48 = vadd.f32 %v5604_v47, %v5603_v43  ;;  %v5669_v51 = vadd.f32 %v5668_v9, %v5667_v46 }
 0x177   : > { %v1911_v53 = vadd.f32 %v5605_v48, %v6921_v13  ;;  %v6983_v55 = vadd.f32 %v5666_v25, %v1908_v54 }
 0x179   : > { %v6993_v56 = vadd.f32 %v5669_v51, %v1911_v53  ;;  %v5606_v60 = vpop.f32.mrb[64].mxu1  ;;  %v5670_v18 = vpop.f32.mrb[64].mxu0 }
 0x17a   : > { %v5607_v61 = vpop.f32.mrb[65].mxu1  ;;  %v5671_v62 = vpop.f32.mrb[65].mxu0 }
 0x17b   : > { %v5608_v63 = vadd.f32 %v5607_v61, %v5606_v60  ;;  %v5609_v13 = vpop.f32.mrb[66].mxu1  ;;  %v5672_v0 = vadd.f32 %v5671_v62, %v5670_v18  ;;  %v5673_v1 = vpop.f32.mrb[66].mxu0 }
 0x17c   : > { %v5610_v2 = vpop.f32.mrb[67].mxu1  ;;  %v5674_v24 = vpop.f32.mrb[67].mxu0 }
 0x17d   : > { %v1916_v4 = vadd.f32 %v5608_v63, %v6927_v20  ;;  %v5611_v6 = vadd.f32 %v5610_v2, %v5609_v13  ;;  %v5675_v8 = vadd.f32 %v5674_v24, %v5673_v1 }
 0x17f   : > { %v1919_v11 = vadd.f32 %v5611_v6, %v6929_v36  ;;  %v6997_v7 = vadd.f32 %v5672_v0, %v1916_v4 }
 0x181   : > { %v6999_v15 = vadd.f32 %v5675_v8, %v1919_v11  ;;  %v5612_v17 = vpop.f32.mrb[68].mxu1  ;;  %v5676_v19 = vpop.f32.mrb[68].mxu0 }
 0x182   : > { %v5613_v30 = vpop.f32.mrb[69].mxu1  ;;  %v5677_v10 = vpop.f32.mrb[69].mxu0 }
 0x183   : > { %v5614_v21 = vadd.f32 %v5613_v30, %v5612_v17  ;;  %v5615_v22 = vpop.f32.mrb[70].mxu1  ;;  %v5678_v50 = vadd.f32 %v5677_v10, %v5676_v19  ;;  %v5679_v23 = vpop.f32.mrb[70].mxu0 }
 0x184   : > { %v5616_v26 = vpop.f32.mrb[71].mxu1  ;;  %v5680_v28 = vpop.f32.mrb[71].mxu0 }
 0x185   : > { %v1924_v20 = vadd.f32 %v5614_v21, %v6935_v58  ;;  %v5617_v37 = vadd.f32 %v5616_v26, %v5615_v22  ;;  %v5681_v27 = vadd.f32 %v5680_v28, %v5679_v23 }
 0x187   : > { %v1927_v36 = vadd.f32 %v5617_v37, %v6937_v59  ;;  %v7003_v29 = vadd.f32 %v5678_v50, %v1924_v20 }
 0x189   : > { %v7005_v34 = vadd.f32 %v5681_v27, %v1927_v36  ;;  %v5618_v39 = vpop.f32.mrb[72].mxu1  ;;  %v5682_v40 = vpop.f32.mrb[72].mxu0 }
 0x18a   : > { %v5619_v42 = vpop.f32.mrb[73].mxu1  ;;  %v5683_v44 = vpop.f32.mrb[73].mxu0 }
 0x18b   : > { %v5620_v43 = vadd.f32 %v5619_v42, %v5618_v39  ;;  %v5621_v25 = vpop.f32.mrb[74].mxu1  ;;  %v5684_v46 = vadd.f32 %v5683_v44, %v5682_v40  ;;  %v5685_v47 = vpop.f32.mrb[74].mxu0 }
 0x18c   : > { %v5622_v9 = vpop.f32.mrb[75].mxu1  ;;  %v5686_v54 = vpop.f32.mrb[75].mxu0 }
 0x18d   : > { %v1932_v58 = vadd.f32 %v5620_v43, %v6943_v45  ;;  %v5623_v48 = vadd.f32 %v5622_v9, %v5621_v25  ;;  %v5687_v51 = vadd.f32 %v5686_v54, %v5685_v47 }
 0x18f   : > { %v1935_v59 = vadd.f32 %v5623_v48, %v6945_v16  ;;  %v7009_v32 = vadd.f32 %v5684_v46, %v1932_v58 }
 0x191   : > { %v7011_v52 = vadd.f32 %v5687_v51, %v1935_v59  ;;  %v5624_v53 = vpop.f32.mrb[76].mxu1  ;;  %v5688_v60 = vpop.f32.mrb[76].mxu0 }
 0x192   : > { %v5625_v18 = vpop.f32.mrb[77].mxu1  ;;  %v5689_v61 = vpop.f32.mrb[77].mxu0 }
 0x193   : > { %v5626_v62 = vadd.f32 %v5625_v18, %v5624_v53  ;;  %v5627_v63 = vpop.f32.mrb[78].mxu1  ;;  %v5690_v13 = vadd.f32 %v5689_v61, %v5688_v60  ;;  %v5691_v0 = vpop.f32.mrb[78].mxu0 }
 0x194   : > { %v5628_v1 = vpop.f32.mrb[79].mxu1  ;;  %v5692_v2 = vpop.f32.mrb[79].mxu0 }
 0x195   : > { %v1940_v45 = vadd.f32 %v5626_v62, %v6951_v3  ;;  %v5629_v24 = vadd.f32 %v5628_v1, %v5627_v63  ;;  %v5693_v4 = vadd.f32 %v5692_v2, %v5691_v0 }
 0x197   : > { %v1943_v16 = vadd.f32 %v5629_v24, %v6953_v41  ;;  %v7015_v6 = vadd.f32 %v5690_v13, %v1940_v45 }
 0x199   : > { %v7017_v8 = vadd.f32 %v5693_v4, %v1943_v16  ;;  %v5710_v11 = vpop.f32.mrb[80].mxu1  ;;  %v2174_v17 = vpop.f32.mrb[80].mxu0 }
 0x19a   : > { %v5711_v19 = vpop.f32.mrb[81].mxu1  ;;  %v2176_v30 = vpop.f32.mrb[81].mxu0 }
 0x19b   : > { %v5712_v10 = vadd.f32 %v5711_v19, %v5710_v11  ;;  %v5713_v21 = vpop.f32.mrb[82].mxu1  ;;  %v2177_v22 = vpop.f32.mrb[82].mxu0 }
 0x19c   : > { %v5714_v50 = vpop.f32.mrb[83].mxu1  ;;  %v2179_v23 = vpop.f32.mrb[83].mxu0 }
 0x19d   : > { %v5715_v26 = vadd.f32 %v5714_v50, %v5713_v21  ;;  %v2078_v3 = vadd.f32 %v5712_v10, %v6957_v57 }
 0x19f   : > { %v2175_v28 = vadd.f32 %v2174_v17, %v2078_v3  ;;  %v2081_v20 = vadd.f32 %v5715_v26, %v6959_v38 }
 0x1a1   : > { %v4973_v41 = vmul.f32 -1.442695, %v2175_v28  ;;  %v2178_v37 = vadd.f32 %v2177_v22, %v2081_v20  ;;  %v5716_v27 = vpop.f32.mrb[84].mxu1  ;;  %v2182_v36 = vpop.f32.mrb[84].mxu0 }
 0x1a2   : > { %v5717_v39 = vpop.f32.mrb[85].mxu1  ;;  %v2184_v40 = vpop.f32.mrb[85].mxu0 }
 0x1a3   : > { %6032 = vpow2.f32 %v4973_v41  ;;  %v4974_v42 = vmul.f32 -1.442695, %v2178_v37  ;;  %v5718_v44 = vadd.f32 %v5717_v39, %v5716_v27  ;;  %v5719_v43 = vpop.f32.mrb[86].mxu1  ;;  %v2185_v25 = vpop.f32.mrb[86].mxu0 }
 0x1a4   : > { %v5720_v46 = vpop.f32.mrb[87].mxu1  ;;  %v2187_v47 = vpop.f32.mrb[87].mxu0 }
 0x1a5   : > { %6034 = vpow2.f32 %v4974_v42  ;;  %v5721_v9 = vadd.f32 %v5720_v46, %v5719_v43  ;;  %v2086_v57 = vadd.f32 %v5718_v44, %v6963_v12 }
 0x1a7   : > { %v2183_v54 = vadd.f32 %v2182_v36, %v2086_v57  ;;  %v2089_v38 = vadd.f32 %v5721_v9, %v6965_v14 }
 0x1a9   : > { %v4975_v58 = vmul.f32 -1.442695, %v2183_v54  ;;  %v2186_v48 = vadd.f32 %v2185_v25, %v2089_v38  ;;  %v5722_v51 = vpop.f32.mrb[88].mxu1  ;;  %v2190_v59 = vpop.f32.mrb[88].mxu0 }
 0x1aa   : > { %v5723_v53 = vpop.f32.mrb[89].mxu1  ;;  %v2192_v60 = vpop.f32.mrb[89].mxu0 }
 0x1ab   : > { %6036 = vpow2.f32 %v4975_v58  ;;  %v4976_v18 = vmul.f32 -1.442695, %v2186_v48  ;;  %v5724_v61 = vadd.f32 %v5723_v53, %v5722_v51  ;;  %v5725_v62 = vpop.f32.mrb[90].mxu1  ;;  %v2193_v63 = vpop.f32.mrb[90].mxu0 }
 0x1ac   : > { %v5726_v13 = vpop.f32.mrb[91].mxu1  ;;  %v2195_v0 = vpop.f32.mrb[91].mxu0 }
 0x1ad   : > { %v6033_v1 = vpop.eup %6032  ;;  %6038 = vpow2.f32 %v4976_v18  ;;  %v5727_v2 = vadd.f32 %v5726_v13, %v5725_v62  ;;  %v2094_v12 = vadd.f32 %v5724_v61, %v6969_v31 }
 0x1ae   : > { %v2285_v45 = vadd.f32 1.0, %v6033_v1 }
 0x1af   : > { %v6035_v14 = vpop.eup %6034  ;;  %v2191_v24 = vadd.f32 %v2190_v59, %v2094_v12  ;;  %v2097_v4 = vadd.f32 %v5727_v2, %v6971_v33 }
 0x1b0   : > { %6040 = vrcp.f32 %v2285_v45  ;;  %v2286_v16 = vadd.f32 1.0, %v6035_v14 }
 0x1b1   : > { %v4977_v11 = vmul.f32 -1.442695, %v2191_v24  ;;  %v2194_v17 = vadd.f32 %v2193_v63, %v2097_v4  ;;  %v5728_v19 = vpop.f32.mrb[92].mxu1  ;;  %v2198_v30 = vpop.f32.mrb[92].mxu0 }
 0x1b2   : > { %6042 = vrcp.f32 %v2286_v16  ;;  %v5729_v10 = vpop.f32.mrb[93].mxu1  ;;  %v2200_v21 = vpop.f32.mrb[93].mxu0 }
 0x1b3   : > { %6044 = vpow2.f32 %v4977_v11  ;;  %v4978_v22 = vmul.f32 -1.442695, %v2194_v17  ;;  %v5730_v50 = vadd.f32 %v5729_v10, %v5728_v19  ;;  %v5731_v23 = vpop.f32.mrb[94].mxu1  ;;  %v2201_v26 = vpop.f32.mrb[94].mxu0 }
 0x1b4   : > { %v5732_v31 = vpop.f32.mrb[95].mxu1  ;;  %v2203_v3 = vpop.f32.mrb[95].mxu0 }
 0x1b5   : > { %v6037_v28 = vpop.eup %6036  ;;  %6046 = vpow2.f32 %v4978_v22  ;;  %v5733_v20 = vadd.f32 %v5732_v31, %v5731_v23  ;;  %v2102_v33 = vadd.f32 %v5730_v50, %v6983_v55 }
 0x1b6   : > { %v2287_v41 = vadd.f32 1.0, %v6037_v28 }
 0x1b7   : > { %v6039_v37 = vpop.eup %6038  ;;  %v2199_v27 = vadd.f32 %v2198_v30, %v2102_v33  ;;  %v2105_v36 = vadd.f32 %v5733_v20, %v6993_v56 }
 0x1b8   : > { %6048 = vrcp.f32 %v2287_v41  ;;  %v2288_v39 = vadd.f32 1.0, %v6039_v37 }
 0x1b9   : > { %v4979_v40 = vmul.f32 -1.442695, %v2199_v27  ;;  %v2202_v42 = vadd.f32 %v2201_v26, %v2105_v36  ;;  %v5734_v44 = vpop.f32.mrb[96].mxu1  ;;  %v2206_v43 = vpop.f32.mrb[96].mxu0 }
 0x1ba   : > { %v6041_v25 = vpop.eup %6040  ;;  %6050 = vrcp.f32 %v2288_v39  ;;  %v5735_v46 = vpop.f32.mrb[97].mxu1 }
 0x1bb   : > { %v2208_v47 = vpop.f32.mrb[97].mxu0  ;;  %6052 = vpow2.f32 %v4979_v40  ;;  %v4980_v9 = vmul.f32 -1.442695, %v2202_v42  ;;  %v5736_v57 = vadd.f32 %v5735_v46, %v5734_v44  ;;  %v5737_v55 = vpop.f32.mrb[98].mxu1  ;;  %5801 = vmatprep.mubr.msk.f32.mxu1 %vm2343_vm6, %v6041_v25 }
 0x1bc   : > { %v2209_v54 = vpop.f32.mrb[98].mxu0  ;;  %v6043_v38 = vpop.eup %6042 }
 0x1bd   : > { %v5738_v56 = vpop.f32.mrb[99].mxu1  ;;  %v2211_v58 = vpop.f32.mrb[99].mxu0  ;;  %6054 = vpow2.f32 %v4980_v9  ;;  %v2110_v59 = vadd.f32 %v5736_v57, %v6997_v7  ;;  %5802 = vmatmul.mubr.msk.f32.vlgmr.msra.gmra.mrb[112].mxu1 %vm2343_vm6, %v6043_v38 }
 0x1be   : > { %v6045_v48 = vpop.eup %6044  ;;  %v5739_v51 = vadd.f32 %v5738_v56, %v5737_v55  ;;  %5862 = vmatpush3.bf16.msk.msra.mxu1 %vm6986_vm5, %v6980_v49 }
 0x1bf   : > { %v2289_v53 = vadd.f32 1.0, %v6045_v48  ;;  %v6047_v60 = vpop.eup %6046  ;;  %v2207_v18 = vadd.f32 %v2206_v43, %v2110_v59 }
 0x1c0   : > { %v2113_v61 = vadd.f32 %v5739_v51, %v6999_v15  ;;  %v2290_v62 = vadd.f32 1.0, %v6047_v60 }
 0x1c1   : > { %6056 = vrcp.f32 %v2289_v53  ;;  %v4981_v63 = vmul.f32 -1.442695, %v2207_v18  ;;  %v5740_v0 = vpop.f32.mrb[100].mxu1  ;;  %v2214_v1 = vpop.f32.mrb[100].mxu0 }
 0x1c2   : > { %v2210_v13 = vadd.f32 %v2209_v54, %v2113_v61  ;;  %v6049_v2 = vpop.eup %6048  ;;  %6058 = vrcp.f32 %v2290_v62  ;;  %v5741_v7 = vpop.f32.mrb[101].mxu1 }
 0x1c3   : > { %v2216_v12 = vpop.f32.mrb[101].mxu0  ;;  %6060 = vpow2.f32 %v4981_v63  ;;  %v5742_v14 = vadd.f32 %v5741_v7, %v5740_v0  ;;  %v5743_v24 = vpop.f32.mrb[102].mxu1  ;;  %5804 = vmatprep.mubr.msk.f32.mxu1 %vm2343_vm6, %v6049_v2 }
 0x1c4   : > { %v4982_v45 = vmul.f32 -1.442695, %v2210_v13  ;;  %v2217_v49 = vpop.f32.mrb[102].mxu0  ;;  %v6051_v5 = vpop.eup %6050 }
 0x1c5   : > { %v5744_v4 = vpop.f32.mrb[103].mxu1  ;;  %v2219_v15 = vpop.f32.mrb[103].mxu0  ;;  %v2118_v17 = vadd.f32 %v5742_v14, %v7003_v29  ;;  %5805 = vmatmul.mubr.msk.f32.gmra.mrb[114].mxu1 %vm2343_vm6, %v6051_v5 }
 0x1c6   : > { %v6053_v16 = vpop.eup %6052  ;;  %6062 = vpow2.f32 %v4982_v45  ;;  %v5745_v11 = vadd.f32 %v5744_v4, %v5743_v24 }
 0x1c7   : > { %v2291_v19 = vadd.f32 1.0, %v6053_v16  ;;  %v6055_v30 = vpop.eup %6054  ;;  %v2215_v10 = vadd.f32 %v2214_v1, %v2118_v17 }
 0x1c8   : > { %v2121_v21 = vadd.f32 %v5745_v11, %v7005_v34  ;;  %v2292_v22 = vadd.f32 1.0, %v6055_v30 }
 0x1c9   : > { %6064 = vrcp.f32 %v2291_v19  ;;  %v4983_v50 = vmul.f32 -1.442695, %v2215_v10  ;;  %v5746_v26 = vpop.f32.mrb[104].mxu1  ;;  %v2222_v31 = vpop.f32.mrb[104].mxu0 }
 0x1ca   : > { %v2218_v23 = vadd.f32 %v2217_v49, %v2121_v21  ;;  %6066 = vrcp.f32 %v2292_v22  ;;  %v5747_v28 = vpop.f32.mrb[105].mxu1  ;;  %v2224_v20 = vpop.f32.mrb[105].mxu0 }
 0x1cb   : > { %v6057_v3 = vpop.eup %6056  ;;  %6068 = vpow2.f32 %v4983_v50  ;;  %v5748_v29 = vadd.f32 %v5747_v28, %v5746_v26  ;;  %v5749_v41 = vpop.f32.mrb[106].mxu1  ;;  %v5997_v50 = vld [vmem:[%s7847_s7] ss:$56 sps:$4 sm:$0xff]  }
 0x1cc   : > { %v4984_v33 = vmul.f32 -1.442695, %v2218_v23  ;;  %5807 = vmatprep.mubr.msk.f32.mxu1 %vm2343_vm6, %v6057_v3  ;;  %v2225_v37 = vpop.f32.mrb[106].mxu0  ;;  %v6059_v27 = vpop.eup %6058  ;;  %v5999_v23 = vld [vmem:[%s7847_s7 + $0x4] ss:$56 sps:$4 sm:$0xff]  }
 0x1cd   : > { %v5750_v36 = vpop.f32.mrb[107].mxu1  ;;  %v2227_v34 = vpop.f32.mrb[107].mxu0  ;;  %v2126_v42 = vadd.f32 %v5748_v29, %v7009_v32  ;;  %5808 = vmatmul.mubr.msk.f32.gmra.mrb[116].mxu1 %vm2343_vm6, %v6059_v27  ;;  %3214 = vmatprep.subr.bf16.mxu0 %v5999_v23  ;;  %v7063_v26 = vld [vmem:[%s7844_s4] ss:$0 sm:$0xff] }
 0x1ce   : > { %v6061_v39 = vpop.eup %6060  ;;  %6070 = vpow2.f32 %v4984_v33  ;;  %v5751_v40 = vadd.f32 %v5750_v36, %v5749_v41  ;;  %3215 = vmatpush1.bf16.msra.mxu0 %v5997_v50 }
 0x1cf   : > { %v2293_v44 = vadd.f32 1.0, %v6061_v39  ;;  %v2223_v25 = vadd.f32 %v2222_v31, %v2126_v42 }
 0x1d0   : > { %v6063_v43 = vpop.eup %6062  ;;  %v2129_v46 = vadd.f32 %v5751_v40, %v7011_v52 }
 0x1d1   : > { %6072 = vrcp.f32 %v2293_v44  ;;  %v2294_v47 = vadd.f32 1.0, %v6063_v43  ;;  %v4985_v9 = vmul.f32 -1.442695, %v2223_v25  ;;  %v5752_v55 = vpop.f32.mrb[108].mxu1  ;;  %v2230_v54 = vpop.f32.mrb[108].mxu0 }
 0x1d2   : > { %v2226_v57 = vadd.f32 %v2225_v37, %v2129_v46  ;;  %v5753_v56 = vpop.f32.mrb[109].mxu1  ;;  %v2232_v58 = vpop.f32.mrb[109].mxu0 }
 0x1d3   : > { %v6065_v38 = vpop.eup %6064  ;;  %6074 = vrcp.f32 %v2294_v47  ;;  %v5754_v32 = vadd.f32 %v5753_v56, %v5752_v55  ;;  %v5755_v51 = vpop.f32.mrb[110].mxu1 }
 0x1d4   : > { %6076 = vpow2.f32 %v4985_v9  ;;  %v4986_v48 = vmul.f32 -1.442695, %v2226_v57  ;;  %5810 = vmatprep.mubr.msk.f32.mxu1 %vm2343_vm6, %v6065_v38  ;;  %v2233_v59 = vpop.f32.mrb[110].mxu0  ;;  %v6067_v53 = vpop.eup %6066 }
 0x1d5   : > { %v5756_v60 = vpop.f32.mrb[111].mxu1  ;;  %v2235_v52 = vpop.f32.mrb[111].mxu0  ;;  %v2134_v62 = vadd.f32 %v5754_v32, %v7015_v6  ;;  %5811 = vmatmul.mubr.msk.f32.gmra.mrb[118].mxu1 %vm2343_vm6, %v6067_v53 }
 0x1d6   : > { %v6069_v18 = vpop.eup %6068  ;;  %6078 = vpow2.f32 %v4986_v48  ;;  %v5757_v61 = vadd.f32 %v5756_v60, %v5755_v51 }
 0x1d7   : > { %v2295_v63 = vadd.f32 1.0, %v6069_v18  ;;  %v2231_v0 = vadd.f32 %v2230_v54, %v2134_v62 }
 0x1d8   : > { %v6071_v13 = vpop.eup %6070  ;;  %v2137_v1 = vadd.f32 %v5757_v61, %v7017_v8 }
 0x1d9   : > { %6080 = vrcp.f32 %v2295_v63  ;;  %v2296_v2 = vadd.f32 1.0, %v6071_v13  ;;  %v4987_v7 = vmul.f32 -1.442695, %v2231_v0 }
 0x1da   : > { %v2234_v12 = vadd.f32 %v2233_v59, %v2137_v1 }
 0x1db   : > { %v6073_v45 = vpop.eup %6072  ;;  %6082 = vrcp.f32 %v2296_v2 }
 0x1dc   : > { %6084 = vpow2.f32 %v4987_v7  ;;  %v4988_v14 = vmul.f32 -1.442695, %v2234_v12  ;;  %5813 = vmatprep.mubr.msk.f32.mxu1 %vm2343_vm6, %v6073_v45 }
 0x1dd   : > { %v6075_v24 = vpop.eup %6074 }
 0x1de   : > { %v6077_v49 = vpop.eup %6076  ;;  %6086 = vpow2.f32 %v4988_v14  ;;  %5814 = vmatmul.mubr.msk.f32.gmra.mrb[120].mxu1 %vm2343_vm6, %v6075_v24 }
 0x1df   : > { %v2297_v6 = vadd.f32 1.0, %v6077_v49 }
 0x1e0   : > { %v6079_v5 = vpop.eup %6078 }
 0x1e1   : > { %6088 = vrcp.f32 %v2297_v6  ;;  %v2298_v4 = vadd.f32 1.0, %v6079_v5 }
 0x1e3   : > { %v6081_v8 = vpop.eup %6080  ;;  %6090 = vrcp.f32 %v2298_v4 }
 0x1e4   : > { %5816 = vmatprep.mubr.msk.f32.mxu1 %vm2343_vm6, %v6081_v8 }
 0x1e5   : > { %v6083_v15 = vpop.eup %6082 }
 0x1e6   : > { %v6085_v16 = vpop.eup %6084  ;;  %5817 = vmatmul.mubr.msk.f32.gmra.mrb[122].mxu1 %vm2343_vm6, %v6083_v15 }
 0x1e7   : > { %v2299_v11 = vadd.f32 1.0, %v6085_v16 }
 0x1e8   : > { %v6087_v17 = vpop.eup %6086 }
 0x1e9   : > { %6092 = vrcp.f32 %v2299_v11  ;;  %v2300_v19 = vadd.f32 1.0, %v6087_v17 }
 0x1eb   : > { %v6089_v30 = vpop.eup %6088  ;;  %6094 = vrcp.f32 %v2300_v19 }
 0x1ec   : > { %5819 = vmatprep.mubr.msk.f32.mxu1 %vm2343_vm6, %v6089_v30 }
 0x1ed   : > { %v6091_v10 = vpop.eup %6090 }
 0x1ee   : > { %5820 = vmatmul.mubr.msk.f32.gmra.mrb[124].mxu1 %vm2343_vm6, %v6091_v10 }
 0x1f3   : > { %v6093_v21 = vpop.eup %6092 }
 0x1f4   : > { %5822 = vmatprep.mubr.msk.f32.mxu1 %vm2343_vm6, %v6093_v21 }
 0x1f5   : > { %v6095_v22 = vpop.eup %6094 }
 0x1f6   : > { %5823 = vmatmul.mubr.msk.f32.gmra.mrb[126].mxu1 %vm2343_vm6, %v6095_v22 }
 0x290   : > { %v5803_v31 = vpop.f32.mrb[112].mxu1 }
 0x291   : > { %v2468_v3 = vadd.f32 %v5803_v31, %v7063_v26  ;;  %v2462_v28 = vpop.f32.mrb[113].mxu1 }
 0x292   : > { %v2463_v20 = vadd.f32 %v7063_v26, %v2462_v28 }
 0x293   : > { %v5008_v33 = vmul.f32 -1.442695, %v2468_v3 }
 0x294   : > { %v5007_v29 = vmul.f32 -1.442695, %v2463_v20 }
 0x295   : > { %6096 = vpow2.f32 %v5008_v33 }
 0x296   : > { %6098 = vpow2.f32 %v5007_v29 }
 0x298   : > { %v5806_v41 = vpop.f32.mrb[114].mxu1 }
 0x299   : > { %v2478_v37 = vadd.f32 %v5806_v41, %v7063_v26  ;;  %v2472_v27 = vpop.f32.mrb[115].mxu1 }
 0x29a   : > { %v2473_v36 = vadd.f32 %v7063_v26, %v2472_v27 }
 0x29b   : > { %v5010_v34 = vmul.f32 -1.442695, %v2478_v37 }
 0x29c   : > { %v5009_v39 = vmul.f32 -1.442695, %v2473_v36 }
 0x29d   : > { %6100 = vpow2.f32 %v5010_v34 }
 0x29e   : > { %6102 = vpow2.f32 %v5009_v39 }
 0x29f   : > { %v6097_v40 = vpop.eup %6096 }
 0x2a0   : > { %v6099_v42 = vpop.eup %6098  ;;  %v2590_v44 = vadd.f32 1.0, %v6097_v40  ;;  %v5809_v43 = vpop.f32.mrb[116].mxu1 }
 0x2a1   : > { %v2589_v25 = vadd.f32 1.0, %v6099_v42  ;;  %v2488_v46 = vadd.f32 %v5809_v43, %v7063_v26  ;;  %v2482_v47 = vpop.f32.mrb[117].mxu1 }
 0x2a2   : > { %v2483_v9 = vadd.f32 %v7063_v26, %v2482_v47 }
 0x2a3   : > { %6104 = vrcp.f32 %v2589_v25  ;;  %v5012_v57 = vmul.f32 -1.442695, %v2488_v46 }
 0x2a4   : > { %6106 = vrcp.f32 %v2590_v44  ;;  %v5011_v55 = vmul.f32 -1.442695, %v2483_v9 }
 0x2a5   : > { %6108 = vpow2.f32 %v5012_v57 }
 0x2a6   : > { %6110 = vpow2.f32 %v5011_v55 }
 0x2a7   : > { %v6101_v54 = vpop.eup %6100 }
 0x2a8   : > { %v6103_v38 = vpop.eup %6102  ;;  %v2592_v56 = vadd.f32 1.0, %v6101_v54  ;;  %v5812_v58 = vpop.f32.mrb[118].mxu1 }
 0x2a9   : > { %v2591_v48 = vadd.f32 1.0, %v6103_v38  ;;  %v2498_v32 = vadd.f32 %v5812_v58, %v7063_v26  ;;  %v2492_v51 = vpop.f32.mrb[119].mxu1 }
 0x2aa   : > { %v2493_v59 = vadd.f32 %v7063_v26, %v2492_v51 }
 0x2ab   : > { %6112 = vrcp.f32 %v2591_v48  ;;  %v5014_v53 = vmul.f32 -1.442695, %v2498_v32 }
 0x2ac   : > { %6114 = vrcp.f32 %v2592_v56  ;;  %v5013_v60 = vmul.f32 -1.442695, %v2493_v59 }
 0x2ad   : > { %v6105_v52 = vpop.eup %6104  ;;  %6116 = vpow2.f32 %v5014_v53 }
 0x2ae   : > { %v6107_v18 = vpop.eup %6106  ;;  %6118 = vpow2.f32 %v5013_v60  ;;  %5829 = vmatprep.mubr.msk.f32.mxu1 %vm2646_vm7, %v6105_v52 }
 0x2af   : > { %v6109_v61 = vpop.eup %6108  ;;  %5830 = vmatmul.mubr.msk.f32.vlgmr.msra.gmra.mrb[128].mxu1 %vm2646_vm7, %v6107_v18  ;;  %v2962_v18 = vld [vmem:[%s7847_s7 + $0x70] sm:$0x33] }
 0x2b0   : > { %v6111_v62 = vpop.eup %6110  ;;  %v2594_v63 = vadd.f32 1.0, %v6109_v61  ;;  %v5072_v61 = vcombine.high %v2962_v18, %v2962_v18 }
 0x2b1   : > { %v5815_v13 = vpop.f32.mrb[120].mxu1  ;;  %v2593_v0 = vadd.f32 1.0, %v6111_v62  ;;  %v6004_v62 = vld [vmem:[%s7847_s7 + $0xc] ss:$56 sps:$4 sm:$0xff]  }
 0x2b2   : > { %v2508_v1 = vadd.f32 %v5815_v13, %v7063_v26  ;;  %v2502_v2 = vpop.f32.mrb[121].mxu1  ;;  %5085 = vmatprep.subr.msk.bf16.mxu0 %vm2695_vm3, %v5072_v61  ;;  %3327 = vmatprep.subr.bf16.mxu1 %v6004_v62  ;;  %v2963_v13 = vld [vmem:[%s7847_s7 + $0x78] sm:$0x33] }
 0x2b3   : > { %v2503_v7 = vadd.f32 %v7063_v26, %v2502_v2  ;;  %6120 = vrcp.f32 %v2593_v0  ;;  %v5071_v0 = vcombine.low %v2962_v18, %v2962_v18  ;;  %v5073_v2 = vcombine.low %v2963_v13, %v2963_v13  ;;  %v6019_v62 = vld [vmem:[%s7847_s7 + $0x24] ss:$56 sps:$4 sm:$0xff]  }
 0x2b4   : > { %v5016_v12 = vmul.f32 -1.442695, %v2508_v1  ;;  %6122 = vrcp.f32 %v2594_v63  ;;  %v6002_v63 = vld [vmem:[%s7847_s7 + $0x8] ss:$56 sps:$4 sm:$0xff]   ;;  %v5074_v1 = vcombine.high %v2963_v13, %v2963_v13 }
 0x2b5   : > { %v5015_v45 = vmul.f32 -1.442695, %v2503_v7  ;;  %v6113_v14 = vpop.eup %6112  ;;  %3328 = vmatpush1.bf16.msra.mxu1 %v6002_v63  ;;  %v3173_v7 = vsel %vm2695_vm3, %v5071_v0, 0 }
 0x2b6   : > { %6124 = vpow2.f32 %v5016_v12  ;;  %v6115_v24 = vpop.eup %6114  ;;  %5832 = vmatprep.mubr.msk.f32.mxu1 %vm2646_vm7, %v6113_v14  ;;  %5094 = vmatprep.subr.msk.bf16.mxu1 %vm2695_vm3, %v5074_v1  ;;  %v3179_v12 = vsel %vm2695_vm3, %v5073_v2, 0  ;;  %v6014_v14 = vld [vmem:[%s7847_s7 + $0x1c] ss:$56 sps:$4 sm:$0xff]  }
 0x2b7   : > { %6126 = vpow2.f32 %v5015_v45  ;;  %v6117_v49 = vpop.eup %6116  ;;  %5833 = vmatmul.mubr.msk.f32.gmra.mrb[130].mxu1 %vm2646_vm7, %v6115_v24  ;;  %3217 = vmatpush1.bf16.msra.mxu0 %v3173_v7  ;;  %v6009_v45 = vld [vmem:[%s7847_s7 + $0x14] ss:$56 sps:$4 sm:$0xff]   ;;  %v7123_v24 = vld [vmem:[%s7846_s6] ss:$0 sm:$0xff] }
 0x2b8   : > { %v6119_v6 = vpop.eup %6118  ;;  %v2596_v5 = vadd.f32 1.0, %v6117_v49  ;;  %3440 = vmatprep.subr.bf16.mxu0 %v6009_v45 }
 0x2b9   : > { %v5818_v4 = vpop.f32.mrb[122].mxu1  ;;  %v2595_v8 = vadd.f32 1.0, %v6119_v6  ;;  %3330 = vmatpush1.bf16.msra.mxu1 %v3179_v12  ;;  %v6024_v12 = vld [vmem:[%s7847_s7 + $0x2c] ss:$56 sps:$4 sm:$0xff]  }
 0x2ba   : > { %v2518_v15 = vadd.f32 %v5818_v4, %v7063_v26  ;;  %v2512_v16 = vpop.f32.mrb[123].mxu1  ;;  %3553 = vmatprep.subr.bf16.mxu1 %v6014_v14 }
 0x2bb   : > { %v2513_v11 = vadd.f32 %v7063_v26, %v2512_v16  ;;  %6128 = vrcp.f32 %v2595_v8 }
 0x2bc   : > { %v5018_v17 = vmul.f32 -1.442695, %v2518_v15  ;;  %6130 = vrcp.f32 %v2596_v5 }
 0x2bd   : > { %v5017_v19 = vmul.f32 -1.442695, %v2513_v11  ;;  %v6121_v30 = vpop.eup %6120 }
 0x2be   : > { %6132 = vpow2.f32 %v5018_v17  ;;  %v6123_v10 = vpop.eup %6122  ;;  %5835 = vmatprep.mubr.msk.f32.mxu1 %vm2646_vm7, %v6121_v30 }
 0x2bf   : > { %6134 = vpow2.f32 %v5017_v19  ;;  %5836 = vmatmul.mubr.msk.f32.gmra.mrb[132].mxu1 %vm2646_vm7, %v6123_v10 }
 0x2c0   : > { %v6125_v21 = vpop.eup %6124 }
 0x2c1   : > { %v6127_v22 = vpop.eup %6126  ;;  %v2598_v50 = vadd.f32 1.0, %v6125_v21  ;;  %v5821_v23 = vpop.f32.mrb[124].mxu1 }
 0x2c2   : > { %v2597_v31 = vadd.f32 1.0, %v6127_v22  ;;  %v2528_v3 = vadd.f32 %v5821_v23, %v7063_v26  ;;  %v2522_v28 = vpop.f32.mrb[125].mxu1 }
 0x2c3   : > { %v2523_v20 = vadd.f32 %v7063_v26, %v2522_v28 }
 0x2c4   : > { %6136 = vrcp.f32 %v2597_v31  ;;  %v5020_v33 = vmul.f32 -1.442695, %v2528_v3 }
 0x2c5   : > { %6138 = vrcp.f32 %v2598_v50  ;;  %v5019_v29 = vmul.f32 -1.442695, %v2523_v20  ;;  %v6129_v41 = vpop.eup %6128 }
 0x2c6   : > { %6140 = vpow2.f32 %v5020_v33  ;;  %v6131_v37 = vpop.eup %6130  ;;  %5838 = vmatprep.mubr.msk.f32.mxu1 %vm2646_vm7, %v6129_v41 }
 0x2c7   : > { %6142 = vpow2.f32 %v5019_v29  ;;  %5839 = vmatmul.mubr.msk.f32.gmra.mrb[134].mxu1 %vm2646_vm7, %v6131_v37 }
 0x2c8   : > { %v6133_v27 = vpop.eup %6132 }
 0x2c9   : > { %v6135_v36 = vpop.eup %6134  ;;  %v2600_v34 = vadd.f32 1.0, %v6133_v27  ;;  %v5824_v39 = vpop.f32.mrb[126].mxu1 }
 0x2ca   : > { %v2599_v40 = vadd.f32 1.0, %v6135_v36  ;;  %v2538_v42 = vadd.f32 %v5824_v39, %v7063_v26  ;;  %v2532_v44 = vpop.f32.mrb[127].mxu1 }
 0x2cb   : > { %v2533_v43 = vadd.f32 %v7063_v26, %v2532_v44 }
 0x2cc   : > { %6144 = vrcp.f32 %v2599_v40  ;;  %v5022_v25 = vmul.f32 -1.442695, %v2538_v42 }
 0x2cd   : > { %6146 = vrcp.f32 %v2600_v34  ;;  %v5021_v46 = vmul.f32 -1.442695, %v2533_v43  ;;  %v2964_v43 = vld [vmem:[%s7847_s7 + $0x80] sm:$0x33] }
 0x2ce   : > { %v6137_v47 = vpop.eup %6136  ;;  %6148 = vpow2.f32 %v5022_v25 }
 0x2cf   : > { %v6139_v9 = vpop.eup %6138  ;;  %6150 = vpow2.f32 %v5021_v46  ;;  %5841 = vmatprep.mubr.msk.f32.mxu1 %vm2646_vm7, %v6137_v47 }
 0x2d0   : > { %v6141_v57 = vpop.eup %6140  ;;  %5842 = vmatmul.mubr.msk.f32.gmra.mrb[136].mxu1 %vm2646_vm7, %v6139_v9  ;;  %v6007_v9 = vld [vmem:[%s7847_s7 + $0x10] ss:$56 sps:$4 sm:$0xff]  }
 0x2d1   : > { %v6143_v55 = vpop.eup %6142  ;;  %v2602_v54 = vadd.f32 1.0, %v6141_v57  ;;  %v2965_v57 = vld [vmem:[%s7847_s7 + $0x88] sm:$0x33] }
 0x2d2   : > { %v2601_v38 = vadd.f32 1.0, %v6143_v55 }
 0x2d4   : > { %6152 = vrcp.f32 %v2601_v38  ;;  %v5075_v38 = vcombine.low %v2964_v43, %v2964_v43 }
 0x2d5   : > { %6154 = vrcp.f32 %v2602_v54  ;;  %v5076_v54 = vcombine.high %v2964_v43, %v2964_v43 }
 0x2d6   : > { %v6145_v56 = vpop.eup %6144  ;;  %v3185_v61 = vsel %vm2695_vm3, %v5075_v38, 0 }
 0x2d7   : > { %v6147_v26 = vpop.eup %6146  ;;  %5844 = vmatprep.mubr.msk.f32.mxu1 %vm2646_vm7, %v6145_v56 }
 0x2d8   : > { %v6149_v58 = vpop.eup %6148  ;;  %5845 = vmatmul.mubr.msk.f32.gmra.mrb[138].mxu1 %vm2646_vm7, %v6147_v26  ;;  %v6012_v26 = vld [vmem:[%s7847_s7 + $0x18] ss:$56 sps:$4 sm:$0xff]  }
 0x2d9   : > { %v6151_v48 = vpop.eup %6150  ;;  %v2604_v32 = vadd.f32 1.0, %v6149_v58 }
 0x2da   : > { %v2603_v51 = vadd.f32 1.0, %v6151_v48 }
 0x2dc   : > { %6156 = vrcp.f32 %v2603_v51  ;;  %v5078_v51 = vcombine.high %v2965_v57, %v2965_v57 }
 0x2dd   : > { %6158 = vrcp.f32 %v2604_v32 }
 0x2de   : > { %v6153_v59 = vpop.eup %6152 }
 0x2df   : > { %v6155_v53 = vpop.eup %6154  ;;  %5847 = vmatprep.mubr.msk.f32.mxu1 %vm2646_vm7, %v6153_v59  ;;  %v5077_v59 = vcombine.low %v2965_v57, %v2965_v57 }
 0x2e0   : > { %5848 = vmatmul.mubr.msk.f32.gmra.mrb[140].mxu1 %vm2646_vm7, %v6155_v53 }
 0x2e1   : > { %v3191_v1 = vsel %vm2695_vm3, %v5077_v59, 0 }
 0x2e6   : > { %v6157_v60 = vpop.eup %6156 }
 0x2e7   : > { %v6159_v52 = vpop.eup %6158  ;;  %5850 = vmatprep.mubr.msk.f32.mxu1 %vm2646_vm7, %v6157_v60 }
 0x2e8   : > { %5851 = vmatmul.mubr.msk.f32.gmra.mrb[142].mxu1 %vm2646_vm7, %v6159_v52 }
 0x2e9   : > { %3359 = vmatprep.mubr.bf16.mxu1 %v6232_v35 }
 0x382   : > { %v5831_v49 = vpop.f32.mrb[128].mxu1 }
 0x383   : > { %v2771_v6 = vadd.f32 %v5831_v49, %v7123_v24  ;;  %v2765_v5 = vpop.f32.mrb[129].mxu1 }
 0x384   : > { %v2766_v4 = vadd.f32 %v7123_v24, %v2765_v5 }
 0x385   : > { %v5042_v8 = vmul.f32 -1.442695, %v2771_v6 }
 0x386   : > { %v5041_v15 = vmul.f32 -1.442695, %v2766_v4 }
 0x387   : > { %6160 = vpow2.f32 %v5042_v8 }
 0x388   : > { %6162 = vpow2.f32 %v5041_v15 }
 0x38a   : > { %v5834_v16 = vpop.f32.mrb[130].mxu1 }
 0x38b   : > { %v2781_v11 = vadd.f32 %v5834_v16, %v7123_v24  ;;  %v2775_v17 = vpop.f32.mrb[131].mxu1 }
 0x38c   : > { %v2776_v19 = vadd.f32 %v7123_v24, %v2775_v17 }
 0x38d   : > { %v5044_v30 = vmul.f32 -1.442695, %v2781_v11 }
 0x38e   : > { %v5043_v10 = vmul.f32 -1.442695, %v2776_v19 }
 0x38f   : > { %6164 = vpow2.f32 %v5044_v30 }
 0x390   : > { %6166 = vpow2.f32 %v5043_v10 }
 0x391   : > { %v6161_v21 = vpop.eup %6160 }
 0x392   : > { %v6163_v22 = vpop.eup %6162  ;;  %v2893_v50 = vadd.f32 1.0, %v6161_v21  ;;  %v5837_v23 = vpop.f32.mrb[132].mxu1 }
 0x393   : > { %v2892_v31 = vadd.f32 1.0, %v6163_v22  ;;  %v2791_v3 = vadd.f32 %v5837_v23, %v7123_v24  ;;  %v2785_v28 = vpop.f32.mrb[133].mxu1 }
 0x394   : > { %6168 = vrcp.f32 %v2893_v50  ;;  %v2786_v20 = vadd.f32 %v7123_v24, %v2785_v28 }
 0x395   : > { %6170 = vrcp.f32 %v2892_v31  ;;  %v5046_v33 = vmul.f32 -1.442695, %v2791_v3 }
 0x396   : > { %v5045_v29 = vmul.f32 -1.442695, %v2786_v20 }
 0x397   : > { %6172 = vpow2.f32 %v5046_v33 }
 0x398   : > { %6174 = vpow2.f32 %v5045_v29 }
 0x399   : > { %v6165_v41 = vpop.eup %6164 }
 0x39a   : > { %v6167_v37 = vpop.eup %6166  ;;  %v2895_v27 = vadd.f32 1.0, %v6165_v41  ;;  %v5840_v36 = vpop.f32.mrb[134].mxu1 }
 0x39b   : > { %v2894_v34 = vadd.f32 1.0, %v6167_v37  ;;  %v2801_v39 = vadd.f32 %v5840_v36, %v7123_v24  ;;  %v2795_v40 = vpop.f32.mrb[135].mxu1 }
 0x39c   : > { %6176 = vrcp.f32 %v2895_v27  ;;  %v2796_v42 = vadd.f32 %v7123_v24, %v2795_v40 }
 0x39d   : > { %6178 = vrcp.f32 %v2894_v34  ;;  %v5048_v44 = vmul.f32 -1.442695, %v2801_v39 }
 0x39e   : > { %v6169_v25 = vpop.eup %6168  ;;  %v5047_v46 = vmul.f32 -1.442695, %v2796_v42 }
 0x39f   : > { %v6171_v47 = vpop.eup %6170  ;;  %6180 = vpow2.f32 %v5048_v44 }
 0x3a0   : > { %v7142_v55 = vpack.c.bf16 %v6169_v25, %v6171_v47  ;;  %6182 = vpow2.f32 %v5047_v46 }
 0x3a1   : > { %v6173_v56 = vpop.eup %6172 }
 0x3a2   : > { %v6175_v58 = vpop.eup %6174  ;;  %v2897_v48 = vadd.f32 1.0, %v6173_v56  ;;  %5086 = vmatmul.mubr.msk.bf16.vlgmr.msra.gmra.mrb[112].mxu0 %vm2343_vm6, %v7142_v55  ;;  %5095 = vmatmul.mubr.msk.bf16.vlgmr.msra.gmra.mrb[144].mxu1 %vm2343_vm6, %v7142_v55 }
 0x3a3   : > { %v5843_v32 = vpop.f32.mrb[136].mxu1  ;;  %v2896_v53 = vadd.f32 1.0, %v6175_v58  ;;  %3441 = vmatpush1.bf16.msra.mxu0 %v6007_v9  ;;  %3256 = vmatprep.mubr.bf16.mxu0 %v6232_v35 }
 0x3a4   : > { %v2811_v60 = vadd.f32 %v5843_v32, %v7123_v24  ;;  %v2805_v52 = vpop.f32.mrb[137].mxu1  ;;  %6184 = vrcp.f32 %v2897_v48  ;;  %3369 = vmatprep.mubr.bf16.mxu1 %v6232_v35  ;;  %5103 = vmatprep.subr.msk.bf16.mxu0 %vm2695_vm3, %v5076_v54 }
 0x3a5   : > { %v2806_v18 = vadd.f32 %v7123_v24, %v2805_v52  ;;  %6186 = vrcp.f32 %v2896_v53  ;;  %3554 = vmatpush1.bf16.msra.mxu1 %v6012_v26 }
 0x3a6   : > { %v5050_v63 = vmul.f32 -1.442695, %v2811_v60  ;;  %v6177_v13 = vpop.eup %6176  ;;  %5112 = vmatprep.subr.msk.bf16.mxu1 %vm2695_vm3, %v5078_v51 }
 0x3a7   : > { %v5049_v0 = vmul.f32 -1.442695, %v2806_v18  ;;  %v6179_v2 = vpop.eup %6178  ;;  %3443 = vmatpush1.bf16.msra.mxu0 %v3185_v61 }
 0x3a8   : > { %6188 = vpow2.f32 %v5050_v63  ;;  %v7162_v7 = vpack.c.bf16 %v6177_v13, %v6179_v2  ;;  %3666 = vmatprep.subr.bf16.mxu0 %v6019_v62  ;;  %v2966_v13 = vld [vmem:[%s7847_s7 + $0x90] sm:$0x33] }
 0x3a9   : > { %6190 = vpow2.f32 %v5049_v0  ;;  %v6181_v45 = vpop.eup %6180  ;;  %3556 = vmatpush1.bf16.msra.mxu1 %v3191_v1  ;;  %v6017_v0 = vld [vmem:[%s7847_s7 + $0x20] ss:$56 sps:$4 sm:$0xff]   ;;  %v5080_v2 = vcombine.high %v2966_v13, %v2966_v13 }
 0x3aa   : > { %v6183_v14 = vpop.eup %6182  ;;  %v2899_v49 = vadd.f32 1.0, %v6181_v45  ;;  %5087 = vmatmul.mubr.msk.bf16.gmra.mrb[116].mxu0 %vm2343_vm6, %v7162_v7  ;;  %5096 = vmatmul.mubr.msk.bf16.gmra.mrb[148].mxu1 %vm2343_vm6, %v7162_v7  ;;  %v2967_v1 = vld [vmem:[%s7847_s7 + $0x98] sm:$0x33]  ;;  %v6022_v45 = vld [vmem:[%s7847_s7 + $0x28] ss:$56 sps:$4 sm:$0xff]  }
 0x3ab   : > { %v5846_v6 = vpop.f32.mrb[138].mxu1  ;;  %v2898_v5 = vadd.f32 1.0, %v6183_v14  ;;  %3266 = vmatprep.mubr.bf16.mxu0 %v6232_v35  ;;  %3379 = vmatprep.mubr.bf16.mxu1 %v6232_v35  ;;  %v5082_v14 = vcombine.high %v2967_v1, %v2967_v1 }
 0x3ac   : > { %v2821_v4 = vadd.f32 %v5846_v6, %v7123_v24  ;;  %v2815_v8 = vpop.f32.mrb[139].mxu1  ;;  %6192 = vrcp.f32 %v2899_v49  ;;  %3779 = vmatprep.subr.bf16.mxu1 %v6024_v12  ;;  %v5079_v12 = vcombine.low %v2966_v13, %v2966_v13  ;;  %v5081_v49 = vcombine.low %v2967_v1, %v2967_v1 }
 0x3ad   : > { %v2816_v15 = vadd.f32 %v7123_v24, %v2815_v8  ;;  %6194 = vrcp.f32 %v2898_v5  ;;  %v6029_v5 = vld [vmem:[%s7847_s7 + $0x34] ss:$56 sps:$4 sm:$0xff]   ;;  %v2968_v8 = vld [vmem:[%s7847_s7 + $0xa0] sm:$0x33] }
 0x3ae   : > { %v5052_v16 = vmul.f32 -1.442695, %v2821_v4  ;;  %v6185_v11 = vpop.eup %6184  ;;  %v3197_v6 = vsel %vm2695_vm3, %v5079_v12, 0  ;;  %v3203_v4 = vsel %vm2695_vm3, %v5081_v49, 0 }
 0x3af   : > { %v5051_v17 = vmul.f32 -1.442695, %v2816_v15  ;;  %v6187_v19 = vpop.eup %6186  ;;  %v6027_v15 = vld [vmem:[%s7847_s7 + $0x30] ss:$56 sps:$4 sm:$0xff]  }
 0x3b0   : > { %6196 = vpow2.f32 %v5052_v16  ;;  %v7175_v30 = vpack.c.bf16 %v6185_v11, %v6187_v19  ;;  %v5084_v16 = vcombine.high %v2968_v8, %v2968_v8  ;;  %v5083_v11 = vcombine.low %v2968_v8, %v2968_v8 }
 0x3b1   : > { %6198 = vpow2.f32 %v5051_v17  ;;  %v2973_v19 = vlaneseq }
 0x3b2   : > { %v6189_v10 = vpop.eup %6188  ;;  %5088 = vmatmul.mubr.msk.bf16.gmra.mrb[120].mxu0 %vm2343_vm6, %v7175_v30  ;;  %5097 = vmatmul.mubr.msk.bf16.gmra.mrb[152].mxu1 %vm2343_vm6, %v7175_v30  ;;  %v3209_v17 = vsel %vm2695_vm3, %v5083_v11, 0 }
 0x3b3   : > { %v6191_v21 = vpop.eup %6190  ;;  %v2901_v22 = vadd.f32 1.0, %v6189_v10  ;;  %v5849_v50 = vpop.f32.mrb[140].mxu1  ;;  %3276 = vmatprep.mubr.bf16.mxu0 %v6232_v35  ;;  %3389 = vmatprep.mubr.bf16.mxu1 %v6232_v35  ;;  %v7314_v10 = vshrl.u32 %v2973_v19, 7 }
 0x3b4   : > { %v2900_v23 = vadd.f32 1.0, %v6191_v21  ;;  %v2831_v31 = vadd.f32 %v5849_v50, %v7123_v24  ;;  %v2825_v3 = vpop.f32.mrb[141].mxu1 }
 0x3b5   : > { %6200 = vrcp.f32 %v2901_v22  ;;  %v2826_v28 = vadd.f32 %v7123_v24, %v2825_v3  ;;  %v2999_v21 = vsub.s32 6, %v7314_v10  ;;  %v7326_v22 = vld [vmem:[%s7848_s8] sm:$0xff]  ;;  %v3003_v50 = vsub.s32 7, %v7314_v10 }
 0x3b6   : > { %6202 = vrcp.f32 %v2900_v23  ;;  %v5054_v20 = vmul.f32 -1.442695, %v2831_v31  ;;  %v6193_v33 = vpop.eup %6192  ;;  %v2975_v3 = vsub.s32 0, %v7314_v10 }
 0x3b7   : > { %v5053_v29 = vmul.f32 -1.442695, %v2826_v28  ;;  %v6195_v41 = vpop.eup %6194  ;;  %v7330_v23 = vrot.slane %v7326_v22, %v2999_v21  ;;  %v7333_v31 = vrot.slane %v7326_v22, %v3003_v50  ;;  %v2983_v28 = vsub.s32 2, %v7314_v10 }
 0x3b8   : > { %6204 = vpow2.f32 %v5054_v20  ;;  %v7185_v37 = vpack.c.bf16 %v6193_v33, %v6195_v41  ;;  %v2979_v20 = vsub.s32 1, %v7314_v10  ;;  %v2987_v33 = vsub.s32 3, %v7314_v10 }
 0x3b9   : > { %6206 = vpow2.f32 %v5053_v29 }
 0x3ba   : > { %v6197_v27 = vpop.eup %6196  ;;  %5089 = vmatmul.mubr.msk.bf16.gmra.mrb[124].mxu0 %vm2343_vm6, %v7185_v37  ;;  %5098 = vmatmul.mubr.msk.bf16.gmra.mrb[156].mxu1 %vm2343_vm6, %v7185_v37  ;;  %v7389_v29 = vrot.slane %v7326_v22, %v2979_v20  ;;  %v7394_v41 = vrot.slane %v7326_v22, %v2987_v33 }
 0x3bb   : > { %v6199_v36 = vpop.eup %6198  ;;  %v2903_v34 = vadd.f32 1.0, %v6197_v27  ;;  %v5852_v39 = vpop.f32.mrb[142].mxu1  ;;  %3286 = vmatprep.mubr.bf16.mxu0 %v6232_v35  ;;  %3399 = vmatprep.mubr.bf16.mxu1 %v6232_v35 }
 0x3bc   : > { %v2902_v40 = vadd.f32 1.0, %v6199_v36  ;;  %v2841_v42 = vadd.f32 %v5852_v39, %v7123_v24  ;;  %v2835_v44 = vpop.f32.mrb[143].mxu1 }
 0x3bd   : > { %6208 = vrcp.f32 %v2903_v34  ;;  %v2836_v43 = vadd.f32 %v7123_v24, %v2835_v44 }
 0x3be   : > { %6210 = vrcp.f32 %v2902_v40  ;;  %v5056_v25 = vmul.f32 -1.442695, %v2841_v42 }
 0x3bf   : > { %v6201_v46 = vpop.eup %6200  ;;  %v5055_v47 = vmul.f32 -1.442695, %v2836_v43 }
 0x3c0   : > { %v6203_v9 = vpop.eup %6202  ;;  %6212 = vpow2.f32 %v5056_v25 }
 0x3c1   : > { %v7195_v57 = vpack.c.bf16 %v6201_v46, %v6203_v9  ;;  %6214 = vpow2.f32 %v5055_v47 }
 0x3c2   : > { %v6205_v54 = vpop.eup %6204 }
 0x3c3   : > { %v6207_v38 = vpop.eup %6206  ;;  %v2905_v56 = vadd.f32 1.0, %v6205_v54  ;;  %5090 = vmatmul.mubr.msk.bf16.gmra.mrb[128].mxu0 %vm2343_vm6, %v7195_v57  ;;  %5099 = vmatmul.mubr.msk.bf16.gmra.mrb[160].mxu1 %vm2343_vm6, %v7195_v57 }
 0x3c4   : > { %v2904_v26 = vadd.f32 1.0, %v6207_v38  ;;  %3296 = vmatprep.mubr.bf16.mxu0 %v6232_v35  ;;  %3409 = vmatprep.mubr.bf16.mxu1 %v6232_v35 }
 0x3c5   : > { %6216 = vrcp.f32 %v2905_v56 }
 0x3c6   : > { %6218 = vrcp.f32 %v2904_v26 }
 0x3c7   : > { %v6209_v24 = vpop.eup %6208 }
 0x3c8   : > { %v6211_v58 = vpop.eup %6210 }
 0x3c9   : > { %v7203_v48 = vpack.c.bf16 %v6209_v24, %v6211_v58 }
 0x3ca   : > { %v6213_v32 = vpop.eup %6212 }
 0x3cb   : > { %v6215_v51 = vpop.eup %6214  ;;  %v2907_v59 = vadd.f32 1.0, %v6213_v32  ;;  %5091 = vmatmul.mubr.msk.bf16.gmra.mrb[132].mxu0 %vm2343_vm6, %v7203_v48  ;;  %5100 = vmatmul.mubr.msk.bf16.gmra.mrb[164].mxu1 %vm2343_vm6, %v7203_v48 }
 0x3cc   : > { %v2906_v53 = vadd.f32 1.0, %v6215_v51  ;;  %3306 = vmatprep.mubr.bf16.mxu0 %v6232_v35  ;;  %3419 = vmatprep.mubr.bf16.mxu1 %v6232_v35 }
 0x3cd   : > { %6220 = vrcp.f32 %v2907_v59 }
 0x3ce   : > { %6222 = vrcp.f32 %v2906_v53 }
 0x3cf   : > { %v6217_v60 = vpop.eup %6216 }
 0x3d0   : > { %v6219_v52 = vpop.eup %6218 }
 0x3d1   : > { %v7211_v18 = vpack.c.bf16 %v6217_v60, %v6219_v52 }
 0x3d3   : > { %5092 = vmatmul.mubr.msk.bf16.gmra.mrb[136].mxu0 %vm2343_vm6, %v7211_v18  ;;  %5101 = vmatmul.mubr.msk.bf16.gmra.mrb[168].mxu1 %vm2343_vm6, %v7211_v18 }
 0x3d4   : > { %3316 = vmatprep.mubr.bf16.mxu0 %v6232_v35  ;;  %3429 = vmatprep.mubr.bf16.mxu1 %v6232_v35 }
 0x3d7   : > { %v6221_v61 = vpop.eup %6220 }
 0x3d8   : > { %v6223_v62 = vpop.eup %6222 }
 0x3d9   : > { %v7219_v63 = vpack.c.bf16 %v6221_v61, %v6223_v62 }
 0x3db   : > { %5093 = vmatmul.mubr.msk.bf16.gmra.mrb[140].mxu0 %vm2343_vm6, %v7219_v63  ;;  %5102 = vmatmul.mubr.msk.bf16.gmra.mrb[172].mxu1 %vm2343_vm6, %v7219_v63 }
 0x3dc   : > { %3472 = vmatprep.mubr.bf16.mxu0 %v6232_v35  ;;  %3585 = vmatprep.mubr.bf16.mxu1 %v6232_v35 }
 0x3e3   : > { %5104 = vmatmul.mubr.msk.bf16.vlgmr.msra.gmra.mrb[144].mxu0 %vm2343_vm6, %v7142_v55  ;;  %5113 = vmatmul.mubr.msk.bf16.vlgmr.msra.gmra.mrb[176].mxu1 %vm2343_vm6, %v7142_v55 }
 0x3e4   : > { %3667 = vmatpush1.bf16.msra.mxu0 %v6017_v0  ;;  %3482 = vmatprep.mubr.bf16.mxu0 %v6232_v35 }
 0x3e5   : > { %3595 = vmatprep.mubr.bf16.mxu1 %v6232_v35  ;;  %5121 = vmatprep.subr.msk.bf16.mxu0 %vm2695_vm3, %v5080_v2 }
 0x3e6   : > { %3780 = vmatpush1.bf16.msra.mxu1 %v6022_v45 }
 0x3e7   : > { %5130 = vmatprep.subr.msk.bf16.mxu1 %vm2695_vm3, %v5082_v14 }
 0x3e8   : > { %3669 = vmatpush1.bf16.msra.mxu0 %v3197_v6 }
 0x3e9   : > { %3892 = vmatprep.subr.bf16.mxu0 %v6029_v5 }
 0x3ea   : > { %3782 = vmatpush1.bf16.msra.mxu1 %v3203_v4 }
 0x3eb   : > { %5105 = vmatmul.mubr.msk.bf16.gmra.mrb[148].mxu0 %vm2343_vm6, %v7162_v7  ;;  %5114 = vmatmul.mubr.msk.bf16.gmra.mrb[180].mxu1 %vm2343_vm6, %v7162_v7 }
 0x3ec   : > { %3492 = vmatprep.mubr.bf16.mxu0 %v6232_v35  ;;  %3605 = vmatprep.mubr.bf16.mxu1 %v6232_v35 }
 0x3f3   : > { %5106 = vmatmul.mubr.msk.bf16.gmra.mrb[152].mxu0 %vm2343_vm6, %v7175_v30  ;;  %5115 = vmatmul.mubr.msk.bf16.gmra.mrb[184].mxu1 %vm2343_vm6, %v7175_v30 }
 0x3f4   : > { %3502 = vmatprep.mubr.bf16.mxu0 %v6232_v35  ;;  %3615 = vmatprep.mubr.bf16.mxu1 %v6232_v35 }
 0x3fb   : > { %5107 = vmatmul.mubr.msk.bf16.gmra.mrb[156].mxu0 %vm2343_vm6, %v7185_v37  ;;  %5116 = vmatmul.mubr.msk.bf16.gmra.mrb[188].mxu1 %vm2343_vm6, %v7185_v37 }
 0x3fc   : > { %3512 = vmatprep.mubr.bf16.mxu0 %v6232_v35  ;;  %3625 = vmatprep.mubr.bf16.mxu1 %v6232_v35 }
 0x403   : > { %5108 = vmatmul.mubr.msk.bf16.gmra.mrb[160].mxu0 %vm2343_vm6, %v7195_v57  ;;  %5117 = vmatmul.mubr.msk.bf16.gmra.mrb[192].mxu1 %vm2343_vm6, %v7195_v57 }
 0x404   : > { %3522 = vmatprep.mubr.bf16.mxu0 %v6232_v35  ;;  %3635 = vmatprep.mubr.bf16.mxu1 %v6232_v35 }
 0x40b   : > { %5109 = vmatmul.mubr.msk.bf16.gmra.mrb[164].mxu0 %vm2343_vm6, %v7203_v48  ;;  %5118 = vmatmul.mubr.msk.bf16.gmra.mrb[196].mxu1 %vm2343_vm6, %v7203_v48 }
 0x40c   : > { %3532 = vmatprep.mubr.bf16.mxu0 %v6232_v35  ;;  %3645 = vmatprep.mubr.bf16.mxu1 %v6232_v35 }
 0x413   : > { %5110 = vmatmul.mubr.msk.bf16.gmra.mrb[168].mxu0 %vm2343_vm6, %v7211_v18  ;;  %5119 = vmatmul.mubr.msk.bf16.gmra.mrb[200].mxu1 %vm2343_vm6, %v7211_v18 }
 0x414   : > { %3542 = vmatprep.mubr.bf16.mxu0 %v6232_v35  ;;  %3655 = vmatprep.mubr.bf16.mxu1 %v6232_v35 }
 0x41b   : > { %5111 = vmatmul.mubr.msk.bf16.gmra.mrb[172].mxu0 %vm2343_vm6, %v7219_v63  ;;  %5120 = vmatmul.mubr.msk.bf16.gmra.mrb[204].mxu1 %vm2343_vm6, %v7219_v63 }
 0x41c   : > { %3698 = vmatprep.mubr.bf16.mxu0 %v6232_v35  ;;  %3811 = vmatprep.mubr.bf16.mxu1 %v6232_v35 }
 0x423   : > { %5122 = vmatmul.mubr.msk.bf16.vlgmr.msra.gmra.mrb[176].mxu0 %vm2343_vm6, %v7142_v55  ;;  %5131 = vmatmul.mubr.msk.bf16.vlgmr.msra.gmra.mrb[208].mxu1 %vm2343_vm6, %v7142_v55 }
 0x424   : > { %3893 = vmatpush1.bf16.msra.mxu0 %v6027_v15  ;;  %3708 = vmatprep.mubr.bf16.mxu0 %v6232_v35 }
 0x425   : > { %3821 = vmatprep.mubr.bf16.mxu1 %v6232_v35  ;;  %5139 = vmatprep.subr.msk.bf16.mxu0 %vm2695_vm3, %v5084_v16 }
 0x428   : > { %3895 = vmatpush1.bf16.msra.mxu0 %v3209_v17 }
 0x42b   : > { %5123 = vmatmul.mubr.msk.bf16.gmra.mrb[180].mxu0 %vm2343_vm6, %v7162_v7  ;;  %5132 = vmatmul.mubr.msk.bf16.gmra.mrb[212].mxu1 %vm2343_vm6, %v7162_v7 }
 0x42c   : > { %3718 = vmatprep.mubr.bf16.mxu0 %v6232_v35  ;;  %3831 = vmatprep.mubr.bf16.mxu1 %v6232_v35 }
 0x433   : > { %5124 = vmatmul.mubr.msk.bf16.gmra.mrb[184].mxu0 %vm2343_vm6, %v7175_v30  ;;  %5133 = vmatmul.mubr.msk.bf16.gmra.mrb[216].mxu1 %vm2343_vm6, %v7175_v30 }
 0x434   : > { %3728 = vmatprep.mubr.bf16.mxu0 %v6232_v35  ;;  %3841 = vmatprep.mubr.bf16.mxu1 %v6232_v35 }
 0x43b   : > { %5125 = vmatmul.mubr.msk.bf16.gmra.mrb[188].mxu0 %vm2343_vm6, %v7185_v37  ;;  %5134 = vmatmul.mubr.msk.bf16.gmra.mrb[220].mxu1 %vm2343_vm6, %v7185_v37 }
 0x43c   : > { %3738 = vmatprep.mubr.bf16.mxu0 %v6232_v35  ;;  %3851 = vmatprep.mubr.bf16.mxu1 %v6232_v35 }
 0x443   : > { %5126 = vmatmul.mubr.msk.bf16.gmra.mrb[192].mxu0 %vm2343_vm6, %v7195_v57  ;;  %5135 = vmatmul.mubr.msk.bf16.gmra.mrb[224].mxu1 %vm2343_vm6, %v7195_v57 }
 0x444   : > { %3748 = vmatprep.mubr.bf16.mxu0 %v6232_v35  ;;  %3861 = vmatprep.mubr.bf16.mxu1 %v6232_v35 }
 0x44b   : > { %5127 = vmatmul.mubr.msk.bf16.gmra.mrb[196].mxu0 %vm2343_vm6, %v7203_v48  ;;  %5136 = vmatmul.mubr.msk.bf16.gmra.mrb[228].mxu1 %vm2343_vm6, %v7203_v48 }
 0x44c   : > { %3758 = vmatprep.mubr.bf16.mxu0 %v6232_v35  ;;  %3871 = vmatprep.mubr.bf16.mxu1 %v6232_v35 }
 0x453   : > { %5128 = vmatmul.mubr.msk.bf16.gmra.mrb[200].mxu0 %vm2343_vm6, %v7211_v18  ;;  %5137 = vmatmul.mubr.msk.bf16.gmra.mrb[232].mxu1 %vm2343_vm6, %v7211_v18 }
 0x454   : > { %3768 = vmatprep.mubr.bf16.mxu0 %v6232_v35  ;;  %3881 = vmatprep.mubr.bf16.mxu1 %v6232_v35 }
 0x45b   : > { %5129 = vmatmul.mubr.msk.bf16.gmra.mrb[204].mxu0 %vm2343_vm6, %v7219_v63  ;;  %5138 = vmatmul.mubr.msk.bf16.gmra.mrb[236].mxu1 %vm2343_vm6, %v7219_v63 }
 0x45c   : > { %3924 = vmatprep.mubr.bf16.mxu0 %v6232_v35 }
 0x463   : > { %5140 = vmatmul.mubr.msk.bf16.vlgmr.msra.gmra.mrb[208].mxu0 %vm2343_vm6, %v7142_v55  ;;  %v7379_v55 = vrot.slane %v7326_v22, %v2975_v3 }
 0x464   : > { %3934 = vmatprep.mubr.bf16.mxu0 %v6232_v35 }
 0x46b   : > { %5141 = vmatmul.mubr.msk.bf16.gmra.mrb[212].mxu0 %vm2343_vm6, %v7162_v7  ;;  %v7384_v7 = vrot.slane %v7326_v22, %v2983_v28 }
 0x46c   : > { %3944 = vmatprep.mubr.bf16.mxu0 %v6232_v35 }
 0x473   : > { %5142 = vmatmul.mubr.msk.bf16.gmra.mrb[216].mxu0 %vm2343_vm6, %v7175_v30 }
 0x474   : > { %3954 = vmatprep.mubr.bf16.mxu0 %v6232_v35 }
 0x475   : > { %v3248_v30 = vpop.f32.mrb[112].mxu0  ;;  %v3361_v27 = vpop.f32.mrb[144].mxu1 }
 0x476   : > { %v3249_v36 = vadd.f32 %v3248_v30, %v7379_v55  ;;  %v3362_v34 = vadd.f32 %v3361_v27, %v7384_v7  ;;  %v3250_v39 = vpop.f32.mrb[113].mxu0  ;;  %v3363_v40 = vpop.f32.mrb[145].mxu1 }
 0x477   : > { %v3251_v42 = vadd.f32 %v3250_v39, %v7389_v29  ;;  %v3364_v44 = vadd.f32 %v3363_v40, %v7394_v41  ;;  %v3252_v43 = vpop.f32.mrb[114].mxu0  ;;  %v3365_v25 = vpop.f32.mrb[146].mxu1 }
 0x478   : > { %v3253_v46 = vadd.f32 %v3252_v43, %v7379_v55  ;;  %v3366_v47 = vadd.f32 %v3365_v25, %v7384_v7  ;;  %v3254_v9 = vpop.f32.mrb[115].mxu0  ;;  %v3367_v54 = vpop.f32.mrb[147].mxu1 }
 0x479   : > { %v5262_v38 = vpack.c.bf16 %v3251_v42, %v3249_v36  ;;  %v5263_v56 = vpack.c.bf16 %v3364_v44, %v3362_v34  ;;  %v3255_v26 = vadd.f32 %v3254_v9, %v7389_v29  ;;  %v3368_v24 = vadd.f32 %v3367_v54, %v7394_v41 }
 0x47b   : > { %5143 = vmatmul.mubr.msk.bf16.gmra.mrb[220].mxu0 %vm2343_vm6, %v7185_v37  ;;  %4677 = vst [vmem:[%s7405_s16] sm:$0xff] %v5262_v38  ;;  %4678 = vst [vmem:[%s7405_s16 + $0x8] sm:$0xff] %v5263_v56  ;;  %v5269_v58 = vpack.c.bf16 %v3255_v26, %v3253_v46  ;;  %v5270_v32 = vpack.c.bf16 %v3368_v24, %v3366_v47 }
 0x47c   : > { %3964 = vmatprep.mubr.bf16.mxu0 %v6232_v35 }
 0x47d   : > { %4686 = vst [vmem:[%s7405_s16 + $0x38] sm:$0xff] %v5269_v58  ;;  %4687 = vst [vmem:[%s7405_s16 + $0x40] sm:$0xff] %v5270_v32  ;;  %v3258_v51 = vpop.f32.mrb[116].mxu0  ;;  %v3371_v59 = vpop.f32.mrb[148].mxu1 }
 0x47e   : > { %v3259_v53 = vadd.f32 %v3258_v51, %v7379_v55  ;;  %v3372_v60 = vadd.f32 %v3371_v59, %v7384_v7  ;;  %v3260_v52 = vpop.f32.mrb[117].mxu0  ;;  %v3373_v61 = vpop.f32.mrb[149].mxu1 }
 0x47f   : > { %v3261_v37 = vadd.f32 %v3260_v52, %v7389_v29  ;;  %v3374_v62 = vadd.f32 %v3373_v61, %v7394_v41  ;;  %v3262_v13 = vpop.f32.mrb[118].mxu0  ;;  %v3375_v0 = vpop.f32.mrb[150].mxu1 }
 0x480   : > { %v3263_v1 = vadd.f32 %v3262_v13, %v7379_v55  ;;  %v3376_v2 = vadd.f32 %v3375_v0, %v7384_v7  ;;  %v3264_v12 = vpop.f32.mrb[119].mxu0  ;;  %v3377_v45 = vpop.f32.mrb[151].mxu1 }
 0x481   : > { %v5276_v14 = vpack.c.bf16 %v3261_v37, %v3259_v53  ;;  %v5277_v49 = vpack.c.bf16 %v3374_v62, %v3372_v60  ;;  %v3265_v6 = vadd.f32 %v3264_v12, %v7389_v29  ;;  %v3378_v5 = vadd.f32 %v3377_v45, %v7394_v41 }
 0x483   : > { %5144 = vmatmul.mubr.msk.bf16.gmra.mrb[224].mxu0 %vm2343_vm6, %v7195_v57  ;;  %4693 = vst [vmem:[%s7405_s16 + $0x70] sm:$0xff] %v5276_v14  ;;  %4694 = vst [vmem:[%s7405_s16 + $0x78] sm:$0xff] %v5277_v49  ;;  %v5283_v4 = vpack.c.bf16 %v3265_v6, %v3263_v1  ;;  %v5284_v8 = vpack.c.bf16 %v3378_v5, %v3376_v2 }
 0x484   : > { %3974 = vmatprep.mubr.bf16.mxu0 %v6232_v35 }
 0x485   : > { %4700 = vst [vmem:[%s7405_s16 + $0xa8] sm:$0xff] %v5283_v4  ;;  %4701 = vst [vmem:[%s7405_s16 + $0xb0] sm:$0xff] %v5284_v8  ;;  %v3268_v15 = vpop.f32.mrb[120].mxu0  ;;  %v3381_v16 = vpop.f32.mrb[152].mxu1 }
 0x486   : > { %v3269_v11 = vadd.f32 %v3268_v15, %v7379_v55  ;;  %v3382_v17 = vadd.f32 %v3381_v16, %v7384_v7  ;;  %v3270_v19 = vpop.f32.mrb[121].mxu0  ;;  %v3383_v21 = vpop.f32.mrb[153].mxu1 }
 0x487   : > { %v3271_v57 = vadd.f32 %v3270_v19, %v7389_v29  ;;  %v3384_v50 = vadd.f32 %v3383_v21, %v7394_v41  ;;  %v3272_v30 = vpop.f32.mrb[122].mxu0  ;;  %v3385_v27 = vpop.f32.mrb[154].mxu1 }
 0x488   : > { %v3273_v36 = vadd.f32 %v3272_v30, %v7379_v55  ;;  %v3386_v34 = vadd.f32 %v3385_v27, %v7384_v7  ;;  %v3274_v39 = vpop.f32.mrb[123].mxu0  ;;  %v3387_v40 = vpop.f32.mrb[155].mxu1 }
 0x489   : > { %v5290_v42 = vpack.c.bf16 %v3271_v57, %v3269_v11  ;;  %v5291_v44 = vpack.c.bf16 %v3384_v50, %v3382_v17  ;;  %v3275_v43 = vadd.f32 %v3274_v39, %v7389_v29  ;;  %v3388_v25 = vadd.f32 %v3387_v40, %v7394_v41 }
 0x48b   : > { %5145 = vmatmul.mubr.msk.bf16.gmra.mrb[228].mxu0 %vm2343_vm6, %v7203_v48  ;;  %4707 = vst [vmem:[%s7405_s16 + $0xe0] sm:$0xff] %v5290_v42  ;;  %4708 = vst [vmem:[%s7405_s16 + $0xe8] sm:$0xff] %v5291_v44  ;;  %v5297_v46 = vpack.c.bf16 %v3275_v43, %v3273_v36  ;;  %v5298_v47 = vpack.c.bf16 %v3388_v25, %v3386_v34 }
 0x48c   : > { %3984 = vmatprep.mubr.bf16.mxu0 %v6232_v35 }
 0x48d   : > { %4714 = vst [vmem:[%s7405_s16 + $0x118] sm:$0xff] %v5297_v46  ;;  %4715 = vst [vmem:[%s7405_s16 + $0x120] sm:$0xff] %v5298_v47  ;;  %v3278_v9 = vpop.f32.mrb[124].mxu0  ;;  %v3391_v54 = vpop.f32.mrb[156].mxu1 }
 0x48e   : > { %v3279_v38 = vadd.f32 %v3278_v9, %v7379_v55  ;;  %v3392_v56 = vadd.f32 %v3391_v54, %v7384_v7  ;;  %v3280_v26 = vpop.f32.mrb[125].mxu0  ;;  %v3393_v24 = vpop.f32.mrb[157].mxu1 }
 0x48f   : > { %v3281_v48 = vadd.f32 %v3280_v26, %v7389_v29  ;;  %v3394_v58 = vadd.f32 %v3393_v24, %v7394_v41  ;;  %v3282_v32 = vpop.f32.mrb[126].mxu0  ;;  %v3395_v51 = vpop.f32.mrb[158].mxu1 }
 0x490   : > { %v3283_v59 = vadd.f32 %v3282_v32, %v7379_v55  ;;  %v3396_v53 = vadd.f32 %v3395_v51, %v7384_v7  ;;  %v3284_v60 = vpop.f32.mrb[127].mxu0  ;;  %v3397_v52 = vpop.f32.mrb[159].mxu1 }
 0x491   : > { %v5304_v61 = vpack.c.bf16 %v3281_v48, %v3279_v38  ;;  %v5305_v37 = vpack.c.bf16 %v3394_v58, %v3392_v56  ;;  %v3285_v62 = vadd.f32 %v3284_v60, %v7389_v29  ;;  %v3398_v13 = vadd.f32 %v3397_v52, %v7394_v41 }
 0x493   : > { %5146 = vmatmul.mubr.msk.bf16.gmra.mrb[232].mxu0 %vm2343_vm6, %v7211_v18  ;;  %4721 = vst [vmem:[%s7405_s16 + $0x150] sm:$0xff] %v5304_v61  ;;  %4722 = vst [vmem:[%s7405_s16 + $0x158] sm:$0xff] %v5305_v37  ;;  %v5311_v0 = vpack.c.bf16 %v3285_v62, %v3283_v59  ;;  %v5312_v1 = vpack.c.bf16 %v3398_v13, %v3396_v53 }
 0x494   : > { %3994 = vmatprep.mubr.bf16.mxu0 %v6232_v35 }
 0x495   : > { %4728 = vst [vmem:[%s7405_s16 + $0x188] sm:$0xff] %v5311_v0  ;;  %4729 = vst [vmem:[%s7405_s16 + $0x190] sm:$0xff] %v5312_v1 }
 0x496   : > { %v3288_v2 = vpop.f32.mrb[128].mxu0  ;;  %v3401_v12 = vpop.f32.mrb[160].mxu1 }
 0x497   : > { %v3289_v45 = vadd.f32 %v3288_v2, %v7379_v55  ;;  %v3402_v14 = vadd.f32 %v3401_v12, %v7384_v7  ;;  %v3290_v49 = vpop.f32.mrb[129].mxu0  ;;  %v3403_v6 = vpop.f32.mrb[161].mxu1 }
 0x498   : > { %v3291_v18 = vadd.f32 %v3290_v49, %v7389_v29  ;;  %v3404_v5 = vadd.f32 %v3403_v6, %v7394_v41  ;;  %v3292_v4 = vpop.f32.mrb[130].mxu0  ;;  %v3405_v35 = vpop.f32.mrb[162].mxu1 }
 0x499   : > { %v3293_v8 = vadd.f32 %v3292_v4, %v7379_v55  ;;  %v3406_v15 = vadd.f32 %v3405_v35, %v7384_v7  ;;  %v3294_v16 = vpop.f32.mrb[131].mxu0  ;;  %v3407_v11 = vpop.f32.mrb[163].mxu1 }
 0x49a   : > { %v5318_v17 = vpack.c.bf16 %v3291_v18, %v3289_v45  ;;  %v5319_v19 = vpack.c.bf16 %v3404_v5, %v3402_v14  ;;  %v3295_v21 = vadd.f32 %v3294_v16, %v7389_v29  ;;  %v3408_v57 = vadd.f32 %v3407_v11, %v7394_v41 }
 0x49b   : > { %5147 = vmatmul.mubr.msk.bf16.gmra.mrb[236].mxu0 %vm2343_vm6, %v7219_v63 }
 0x49c   : > { %4735 = vst [vmem:[%s7405_s16 + $0x1c0] sm:$0xff] %v5318_v17  ;;  %4736 = vst [vmem:[%s7405_s16 + $0x1c8] sm:$0xff] %v5319_v19  ;;  %v5325_v50 = vpack.c.bf16 %v3295_v21, %v3293_v8  ;;  %v5326_v30 = vpack.c.bf16 %v3408_v57, %v3406_v15  ;;  %v2991_v17 = vsub.s32 4, %v7314_v10 }
 0x49e   : > { %4742 = vst [vmem:[%s7405_s16 + $0x1f8] sm:$0xff] %v5325_v50  ;;  %4743 = vst [vmem:[%s7405_s16 + $0x200] sm:$0xff] %v5326_v30  ;;  %v3298_v27 = vpop.f32.mrb[132].mxu0  ;;  %v3411_v36 = vpop.f32.mrb[164].mxu1  ;;  %v2995_v30 = vsub.s32 5, %v7314_v10 }
 0x49f   : > { %v3299_v34 = vadd.f32 %v3298_v27, %v7379_v55  ;;  %v3412_v39 = vadd.f32 %v3411_v36, %v7384_v7  ;;  %v3300_v40 = vpop.f32.mrb[133].mxu0  ;;  %v3413_v42 = vpop.f32.mrb[165].mxu1 }
 0x4a0   : > { %v3301_v44 = vadd.f32 %v3300_v40, %v7389_v29  ;;  %v3414_v63 = vadd.f32 %v3413_v42, %v7394_v41  ;;  %v3302_v43 = vpop.f32.mrb[134].mxu0  ;;  %v3415_v25 = vpop.f32.mrb[166].mxu1 }
 0x4a1   : > { %v3303_v46 = vadd.f32 %v3302_v43, %v7379_v55  ;;  %v3416_v47 = vadd.f32 %v3415_v25, %v7384_v7  ;;  %v3304_v9 = vpop.f32.mrb[135].mxu0  ;;  %v3417_v54 = vpop.f32.mrb[167].mxu1  ;;  %v7514_v43 = vrot.slane %v7326_v22, %v2991_v17 }
 0x4a2   : > { %v5332_v38 = vpack.c.bf16 %v3301_v44, %v3299_v34  ;;  %v5333_v56 = vpack.c.bf16 %v3414_v63, %v3412_v39  ;;  %v3305_v26 = vadd.f32 %v3304_v9, %v7389_v29  ;;  %v3418_v24 = vadd.f32 %v3417_v54, %v7394_v41 }
 0x4a4   : > { %4749 = vst [vmem:[%s7405_s16 + $0x230] sm:$0xff] %v5332_v38  ;;  %4750 = vst [vmem:[%s7405_s16 + $0x238] sm:$0xff] %v5333_v56  ;;  %v5339_v48 = vpack.c.bf16 %v3305_v26, %v3303_v46  ;;  %v5340_v58 = vpack.c.bf16 %v3418_v24, %v3416_v47 }
 0x4a6   : > { %4756 = vst [vmem:[%s7405_s16 + $0x268] sm:$0xff] %v5339_v48  ;;  %4757 = vst [vmem:[%s7405_s16 + $0x270] sm:$0xff] %v5340_v58  ;;  %v3308_v32 = vpop.f32.mrb[136].mxu0  ;;  %v3421_v51 = vpop.f32.mrb[168].mxu1 }
 0x4a7   : > { %v3309_v59 = vadd.f32 %v3308_v32, %v7379_v55  ;;  %v3422_v53 = vadd.f32 %v3421_v51, %v7384_v7  ;;  %v3310_v60 = vpop.f32.mrb[137].mxu0  ;;  %v3423_v52 = vpop.f32.mrb[169].mxu1 }
 0x4a8   : > { %v3311_v61 = vadd.f32 %v3310_v60, %v7389_v29  ;;  %v3424_v37 = vadd.f32 %v3423_v52, %v7394_v41  ;;  %v3312_v62 = vpop.f32.mrb[138].mxu0  ;;  %v3425_v13 = vpop.f32.mrb[170].mxu1 }
 0x4a9   : > { %v3313_v0 = vadd.f32 %v3312_v62, %v7379_v55  ;;  %v3426_v1 = vadd.f32 %v3425_v13, %v7384_v7  ;;  %v3314_v2 = vpop.f32.mrb[139].mxu0  ;;  %v3427_v12 = vpop.f32.mrb[171].mxu1 }
 0x4aa   : > { %v5346_v45 = vpack.c.bf16 %v3311_v61, %v3309_v59  ;;  %v5347_v14 = vpack.c.bf16 %v3424_v37, %v3422_v53  ;;  %v3315_v49 = vadd.f32 %v3314_v2, %v7389_v29  ;;  %v3428_v6 = vadd.f32 %v3427_v12, %v7394_v41 }
 0x4ac   : > { %4763 = vst [vmem:[%s7405_s16 + $0x2a0] sm:$0xff] %v5346_v45  ;;  %4764 = vst [vmem:[%s7405_s16 + $0x2a8] sm:$0xff] %v5347_v14  ;;  %v5353_v18 = vpack.c.bf16 %v3315_v49, %v3313_v0  ;;  %v5354_v5 = vpack.c.bf16 %v3428_v6, %v3426_v1 }
 0x4ae   : > { %4770 = vst [vmem:[%s7405_s16 + $0x2d8] sm:$0xff] %v5353_v18  ;;  %4771 = vst [vmem:[%s7405_s16 + $0x2e0] sm:$0xff] %v5354_v5  ;;  %v3318_v4 = vpop.f32.mrb[140].mxu0  ;;  %v3431_v35 = vpop.f32.mrb[172].mxu1 }
 0x4af   : > { %v3319_v8 = vadd.f32 %v3318_v4, %v7379_v55  ;;  %v3432_v15 = vadd.f32 %v3431_v35, %v7384_v7  ;;  %v3320_v16 = vpop.f32.mrb[141].mxu0  ;;  %v3433_v11 = vpop.f32.mrb[173].mxu1 }
 0x4b0   : > { %v3321_v19 = vadd.f32 %v3320_v16, %v7389_v29  ;;  %v3434_v21 = vadd.f32 %v3433_v11, %v7394_v41  ;;  %v3322_v57 = vpop.f32.mrb[142].mxu0  ;;  %v3435_v50 = vpop.f32.mrb[174].mxu1 }
 0x4b1   : > { %v3323_v27 = vadd.f32 %v3322_v57, %v7379_v55  ;;  %v3436_v36 = vadd.f32 %v3435_v50, %v7384_v7  ;;  %v3324_v34 = vpop.f32.mrb[143].mxu0  ;;  %v3437_v39 = vpop.f32.mrb[175].mxu1  ;;  %v7521_v55 = vrot.slane %v7326_v22, %v2995_v30 }
 0x4b2   : > { %v5360_v40 = vpack.c.bf16 %v3321_v19, %v3319_v8  ;;  %v5361_v42 = vpack.c.bf16 %v3434_v21, %v3432_v15  ;;  %v3325_v44 = vadd.f32 %v3324_v34, %v7389_v29  ;;  %v3438_v63 = vadd.f32 %v3437_v39, %v7394_v41 }
 0x4b4   : > { %4777 = vst [vmem:[%s7405_s16 + $0x310] sm:$0xff] %v5360_v40  ;;  %4778 = vst [vmem:[%s7405_s16 + $0x318] sm:$0xff] %v5361_v42  ;;  %v5367_v25 = vpack.c.bf16 %v3325_v44, %v3323_v27  ;;  %v5368_v46 = vpack.c.bf16 %v3438_v63, %v3436_v36 }
 0x4b6   : > { %4784 = vst [vmem:[%s7405_s16 + $0x348] sm:$0xff] %v5367_v25  ;;  %4785 = vst [vmem:[%s7405_s16 + $0x350] sm:$0xff] %v5368_v46  ;;  %v3474_v7 = vpop.f32.mrb[144].mxu0  ;;  %v3587_v29 = vpop.f32.mrb[176].mxu1 }
 0x4b7   : > { %v3475_v41 = vadd.f32 %v3474_v7, %v7514_v43  ;;  %v3588_v47 = vadd.f32 %v3587_v29, %v7330_v23  ;;  %v3476_v9 = vpop.f32.mrb[145].mxu0  ;;  %v3589_v54 = vpop.f32.mrb[177].mxu1 }
 0x4b8   : > { %v3477_v38 = vadd.f32 %v3476_v9, %v7521_v55  ;;  %v3590_v56 = vadd.f32 %v3589_v54, %v7333_v31  ;;  %v3478_v22 = vpop.f32.mrb[146].mxu0  ;;  %v3591_v26 = vpop.f32.mrb[178].mxu1 }
 0x4b9   : > { %v3479_v24 = vadd.f32 %v3478_v22, %v7514_v43  ;;  %v3592_v48 = vadd.f32 %v3591_v26, %v7330_v23  ;;  %v3480_v58 = vpop.f32.mrb[147].mxu0  ;;  %v3593_v32 = vpop.f32.mrb[179].mxu1 }
 0x4ba   : > { %v5264_v51 = vpack.c.bf16 %v3477_v38, %v3475_v41  ;;  %v5265_v59 = vpack.c.bf16 %v3590_v56, %v3588_v47  ;;  %v3481_v53 = vadd.f32 %v3480_v58, %v7521_v55  ;;  %v3594_v60 = vadd.f32 %v3593_v32, %v7333_v31 }
 0x4bc   : > { %4679 = vst [vmem:[%s7405_s16 + $0x10] sm:$0xff] %v5264_v51  ;;  %4680 = vst [vmem:[%s7405_s16 + $0x18] sm:$0xff] %v5265_v59  ;;  %v5271_v52 = vpack.c.bf16 %v3481_v53, %v3479_v24  ;;  %v5272_v61 = vpack.c.bf16 %v3594_v60, %v3592_v48 }
 0x4be   : > { %4688 = vst [vmem:[%s7405_s16 + $0x48] sm:$0xff] %v5271_v52  ;;  %4689 = vst [vmem:[%s7405_s16 + $0x50] sm:$0xff] %v5272_v61  ;;  %v3484_v37 = vpop.f32.mrb[148].mxu0  ;;  %v3597_v62 = vpop.f32.mrb[180].mxu1 }
 0x4bf   : > { %v3485_v13 = vadd.f32 %v3484_v37, %v7514_v43  ;;  %v3598_v0 = vadd.f32 %v3597_v62, %v7330_v23  ;;  %v3486_v1 = vpop.f32.mrb[149].mxu0  ;;  %v3599_v2 = vpop.f32.mrb[181].mxu1 }
 0x4c0   : > { %v3487_v12 = vadd.f32 %v3486_v1, %v7521_v55  ;;  %v3600_v45 = vadd.f32 %v3599_v2, %v7333_v31  ;;  %v3488_v14 = vpop.f32.mrb[150].mxu0  ;;  %v3601_v49 = vpop.f32.mrb[182].mxu1 }
 0x4c1   : > { %v3489_v6 = vadd.f32 %v3488_v14, %v7514_v43  ;;  %v3602_v18 = vadd.f32 %v3601_v49, %v7330_v23  ;;  %v3490_v5 = vpop.f32.mrb[151].mxu0  ;;  %v3603_v4 = vpop.f32.mrb[183].mxu1 }
 0x4c2   : > { %v5278_v35 = vpack.c.bf16 %v3487_v12, %v3485_v13  ;;  %v5279_v8 = vpack.c.bf16 %v3600_v45, %v3598_v0  ;;  %v3491_v15 = vadd.f32 %v3490_v5, %v7521_v55  ;;  %v3604_v16 = vadd.f32 %v3603_v4, %v7333_v31 }
 0x4c4   : > { %4695 = vst [vmem:[%s7405_s16 + $0x80] sm:$0xff] %v5278_v35  ;;  %4696 = vst [vmem:[%s7405_s16 + $0x88] sm:$0xff] %v5279_v8  ;;  %v5285_v11 = vpack.c.bf16 %v3491_v15, %v3489_v6  ;;  %v5286_v19 = vpack.c.bf16 %v3604_v16, %v3602_v18 }
 0x4c6   : > { %4702 = vst [vmem:[%s7405_s16 + $0xb8] sm:$0xff] %v5285_v11  ;;  %4703 = vst [vmem:[%s7405_s16 + $0xc0] sm:$0xff] %v5286_v19  ;;  %v3494_v21 = vpop.f32.mrb[152].mxu0  ;;  %v3607_v57 = vpop.f32.mrb[184].mxu1 }
 0x4c7   : > { %v3495_v50 = vadd.f32 %v3494_v21, %v7514_v43  ;;  %v3608_v27 = vadd.f32 %v3607_v57, %v7330_v23  ;;  %v3496_v36 = vpop.f32.mrb[153].mxu0  ;;  %v3609_v34 = vpop.f32.mrb[185].mxu1 }
 0x4c8   : > { %v3497_v39 = vadd.f32 %v3496_v36, %v7521_v55  ;;  %v3610_v40 = vadd.f32 %v3609_v34, %v7333_v31  ;;  %v3498_v42 = vpop.f32.mrb[154].mxu0  ;;  %v3611_v44 = vpop.f32.mrb[186].mxu1 }
 0x4c9   : > { %v3499_v63 = vadd.f32 %v3498_v42, %v7514_v43  ;;  %v3612_v25 = vadd.f32 %v3611_v44, %v7330_v23  ;;  %v3500_v46 = vpop.f32.mrb[155].mxu0  ;;  %v3613_v7 = vpop.f32.mrb[187].mxu1 }
 0x4ca   : > { %v5292_v29 = vpack.c.bf16 %v3497_v39, %v3495_v50  ;;  %v5293_v41 = vpack.c.bf16 %v3610_v40, %v3608_v27  ;;  %v3501_v47 = vadd.f32 %v3500_v46, %v7521_v55  ;;  %v3614_v9 = vadd.f32 %v3613_v7, %v7333_v31 }
 0x4cc   : > { %4709 = vst [vmem:[%s7405_s16 + $0xf0] sm:$0xff] %v5292_v29  ;;  %4710 = vst [vmem:[%s7405_s16 + $0xf8] sm:$0xff] %v5293_v41  ;;  %v5299_v54 = vpack.c.bf16 %v3501_v47, %v3499_v63  ;;  %v5300_v38 = vpack.c.bf16 %v3614_v9, %v3612_v25 }
 0x4ce   : > { %4716 = vst [vmem:[%s7405_s16 + $0x128] sm:$0xff] %v5299_v54  ;;  %4717 = vst [vmem:[%s7405_s16 + $0x130] sm:$0xff] %v5300_v38  ;;  %v3504_v56 = vpop.f32.mrb[156].mxu0  ;;  %v3617_v22 = vpop.f32.mrb[188].mxu1 }
 0x4cf   : > { %v3505_v26 = vadd.f32 %v3504_v56, %v7514_v43  ;;  %v3618_v24 = vadd.f32 %v3617_v22, %v7330_v23  ;;  %v3506_v48 = vpop.f32.mrb[157].mxu0  ;;  %v3619_v58 = vpop.f32.mrb[189].mxu1 }
 0x4d0   : > { %v3507_v32 = vadd.f32 %v3506_v48, %v7521_v55  ;;  %v3620_v51 = vadd.f32 %v3619_v58, %v7333_v31  ;;  %v3508_v59 = vpop.f32.mrb[158].mxu0  ;;  %v3621_v53 = vpop.f32.mrb[190].mxu1 }
 0x4d1   : > { %v3509_v60 = vadd.f32 %v3508_v59, %v7514_v43  ;;  %v3622_v52 = vadd.f32 %v3621_v53, %v7330_v23  ;;  %v3510_v61 = vpop.f32.mrb[159].mxu0  ;;  %v3623_v37 = vpop.f32.mrb[191].mxu1 }
 0x4d2   : > { %v5306_v62 = vpack.c.bf16 %v3507_v32, %v3505_v26  ;;  %v5307_v13 = vpack.c.bf16 %v3620_v51, %v3618_v24  ;;  %v3511_v0 = vadd.f32 %v3510_v61, %v7521_v55  ;;  %v3624_v1 = vadd.f32 %v3623_v37, %v7333_v31 }
 0x4d4   : > { %4723 = vst [vmem:[%s7405_s16 + $0x160] sm:$0xff] %v5306_v62  ;;  %4724 = vst [vmem:[%s7405_s16 + $0x168] sm:$0xff] %v5307_v13  ;;  %v5313_v2 = vpack.c.bf16 %v3511_v0, %v3509_v60  ;;  %v5314_v12 = vpack.c.bf16 %v3624_v1, %v3622_v52 }
 0x4d6   : > { %4730 = vst [vmem:[%s7405_s16 + $0x198] sm:$0xff] %v5313_v2  ;;  %4731 = vst [vmem:[%s7405_s16 + $0x1a0] sm:$0xff] %v5314_v12  ;;  %v3514_v45 = vpop.f32.mrb[160].mxu0  ;;  %v3627_v14 = vpop.f32.mrb[192].mxu1 }
 0x4d7   : > { %v3515_v49 = vadd.f32 %v3514_v45, %v7514_v43  ;;  %v3628_v6 = vadd.f32 %v3627_v14, %v7330_v23  ;;  %v3516_v18 = vpop.f32.mrb[161].mxu0  ;;  %v3629_v5 = vpop.f32.mrb[193].mxu1 }
 0x4d8   : > { %v3517_v4 = vadd.f32 %v3516_v18, %v7521_v55  ;;  %v3630_v35 = vadd.f32 %v3629_v5, %v7333_v31  ;;  %v3518_v8 = vpop.f32.mrb[162].mxu0  ;;  %v3631_v15 = vpop.f32.mrb[194].mxu1 }
 0x4d9   : > { %v3519_v16 = vadd.f32 %v3518_v8, %v7514_v43  ;;  %v3632_v11 = vadd.f32 %v3631_v15, %v7330_v23  ;;  %v3520_v19 = vpop.f32.mrb[163].mxu0  ;;  %v3633_v21 = vpop.f32.mrb[195].mxu1 }
 0x4da   : > { %v5320_v57 = vpack.c.bf16 %v3517_v4, %v3515_v49  ;;  %v5321_v50 = vpack.c.bf16 %v3630_v35, %v3628_v6  ;;  %v3521_v27 = vadd.f32 %v3520_v19, %v7521_v55  ;;  %v3634_v36 = vadd.f32 %v3633_v21, %v7333_v31 }
 0x4dc   : > { %4737 = vst [vmem:[%s7405_s16 + $0x1d0] sm:$0xff] %v5320_v57  ;;  %4738 = vst [vmem:[%s7405_s16 + $0x1d8] sm:$0xff] %v5321_v50  ;;  %v5327_v34 = vpack.c.bf16 %v3521_v27, %v3519_v16  ;;  %v5328_v39 = vpack.c.bf16 %v3634_v36, %v3632_v11  ;;  %v7616_v36 = vld [vmem:[%s7848_s8 + $0x8] sm:$0x3f] }
 0x4de   : > { %4744 = vst [vmem:[%s7405_s16 + $0x208] sm:$0xff] %v5327_v34  ;;  %4745 = vst [vmem:[%s7405_s16 + $0x210] sm:$0xff] %v5328_v39  ;;  %v3524_v40 = vpop.f32.mrb[164].mxu0  ;;  %v3637_v42 = vpop.f32.mrb[196].mxu1 }
 0x4df   : > { %v3525_v44 = vadd.f32 %v3524_v40, %v7514_v43  ;;  %v3638_v63 = vadd.f32 %v3637_v42, %v7330_v23  ;;  %v3526_v25 = vpop.f32.mrb[165].mxu0  ;;  %v3639_v46 = vpop.f32.mrb[197].mxu1 }
 0x4e0   : > { %v3527_v7 = vadd.f32 %v3526_v25, %v7521_v55  ;;  %v3640_v29 = vadd.f32 %v3639_v46, %v7333_v31  ;;  %v3528_v41 = vpop.f32.mrb[166].mxu0  ;;  %v3641_v47 = vpop.f32.mrb[198].mxu1 }
 0x4e1   : > { %v3529_v9 = vadd.f32 %v3528_v41, %v7514_v43  ;;  %v3642_v54 = vadd.f32 %v3641_v47, %v7330_v23  ;;  %v3530_v38 = vpop.f32.mrb[167].mxu0  ;;  %v3643_v56 = vpop.f32.mrb[199].mxu1 }
 0x4e2   : > { %v5334_v22 = vpack.c.bf16 %v3527_v7, %v3525_v44  ;;  %v5335_v26 = vpack.c.bf16 %v3640_v29, %v3638_v63  ;;  %v3531_v24 = vadd.f32 %v3530_v38, %v7521_v55  ;;  %v3644_v48 = vadd.f32 %v3643_v56, %v7333_v31 }
 0x4e3   : > { %v7625_v7 = vrot.slane %v7616_v36, %v2975_v3 }
 0x4e4   : > { %4751 = vst [vmem:[%s7405_s16 + $0x240] sm:$0xff] %v5334_v22  ;;  %4752 = vst [vmem:[%s7405_s16 + $0x248] sm:$0xff] %v5335_v26  ;;  %v5341_v58 = vpack.c.bf16 %v3531_v24, %v3529_v9  ;;  %v5342_v32 = vpack.c.bf16 %v3644_v48, %v3642_v54 }
 0x4e6   : > { %4758 = vst [vmem:[%s7405_s16 + $0x278] sm:$0xff] %v5341_v58  ;;  %4759 = vst [vmem:[%s7405_s16 + $0x280] sm:$0xff] %v5342_v32  ;;  %v3534_v51 = vpop.f32.mrb[168].mxu0  ;;  %v3647_v59 = vpop.f32.mrb[200].mxu1 }
 0x4e7   : > { %v3535_v53 = vadd.f32 %v3534_v51, %v7514_v43  ;;  %v3648_v60 = vadd.f32 %v3647_v59, %v7330_v23  ;;  %v3536_v52 = vpop.f32.mrb[169].mxu0  ;;  %v3649_v61 = vpop.f32.mrb[201].mxu1 }
 0x4e8   : > { %v3537_v37 = vadd.f32 %v3536_v52, %v7521_v55  ;;  %v3650_v62 = vadd.f32 %v3649_v61, %v7333_v31  ;;  %v3538_v13 = vpop.f32.mrb[170].mxu0  ;;  %v3651_v0 = vpop.f32.mrb[202].mxu1 }
 0x4e9   : > { %v3539_v1 = vadd.f32 %v3538_v13, %v7514_v43  ;;  %v3652_v2 = vadd.f32 %v3651_v0, %v7330_v23  ;;  %v3540_v12 = vpop.f32.mrb[171].mxu0  ;;  %v3653_v45 = vpop.f32.mrb[203].mxu1 }
 0x4ea   : > { %v5348_v14 = vpack.c.bf16 %v3537_v37, %v3535_v53  ;;  %v5349_v49 = vpack.c.bf16 %v3650_v62, %v3648_v60  ;;  %v3541_v6 = vadd.f32 %v3540_v12, %v7521_v55  ;;  %v3654_v18 = vadd.f32 %v3653_v45, %v7333_v31 }
 0x4ec   : > { %4765 = vst [vmem:[%s7405_s16 + $0x2b0] sm:$0xff] %v5348_v14  ;;  %4766 = vst [vmem:[%s7405_s16 + $0x2b8] sm:$0xff] %v5349_v49  ;;  %v5355_v5 = vpack.c.bf16 %v3541_v6, %v3539_v1  ;;  %v5356_v4 = vpack.c.bf16 %v3654_v18, %v3652_v2 }
 0x4ee   : > { %4772 = vst [vmem:[%s7405_s16 + $0x2e8] sm:$0xff] %v5355_v5  ;;  %4773 = vst [vmem:[%s7405_s16 + $0x2f0] sm:$0xff] %v5356_v4  ;;  %v3544_v35 = vpop.f32.mrb[172].mxu0  ;;  %v3657_v8 = vpop.f32.mrb[204].mxu1 }
 0x4ef   : > { %v3545_v15 = vadd.f32 %v3544_v35, %v7514_v43  ;;  %v3658_v16 = vadd.f32 %v3657_v8, %v7330_v23  ;;  %v3546_v11 = vpop.f32.mrb[173].mxu0  ;;  %v3659_v19 = vpop.f32.mrb[205].mxu1 }
 0x4f0   : > { %v3547_v21 = vadd.f32 %v3546_v11, %v7521_v55  ;;  %v3660_v57 = vadd.f32 %v3659_v19, %v7333_v31  ;;  %v3548_v50 = vpop.f32.mrb[174].mxu0  ;;  %v3661_v27 = vpop.f32.mrb[206].mxu1 }
 0x4f1   : > { %v3549_v34 = vadd.f32 %v3548_v50, %v7514_v43  ;;  %v3662_v39 = vadd.f32 %v3661_v27, %v7330_v23  ;;  %v3550_v40 = vpop.f32.mrb[175].mxu0  ;;  %v3663_v42 = vpop.f32.mrb[207].mxu1  ;;  %v7630_v43 = vrot.slane %v7616_v36, %v2983_v28 }
 0x4f2   : > { %v5362_v44 = vpack.c.bf16 %v3547_v21, %v3545_v15  ;;  %v5363_v63 = vpack.c.bf16 %v3660_v57, %v3658_v16  ;;  %v3551_v25 = vadd.f32 %v3550_v40, %v7521_v55  ;;  %v3664_v46 = vadd.f32 %v3663_v42, %v7333_v31 }
 0x4f3   : > { %v7637_v55 = vrot.slane %v7616_v36, %v2979_v20  ;;  %v7642_v31 = vrot.slane %v7616_v36, %v2987_v33 }
 0x4f4   : > { %4779 = vst [vmem:[%s7405_s16 + $0x320] sm:$0xff] %v5362_v44  ;;  %4780 = vst [vmem:[%s7405_s16 + $0x328] sm:$0xff] %v5363_v63  ;;  %v5369_v23 = vpack.c.bf16 %v3551_v25, %v3549_v34  ;;  %v5370_v29 = vpack.c.bf16 %v3664_v46, %v3662_v39 }
 0x4f6   : > { %4786 = vst [vmem:[%s7405_s16 + $0x358] sm:$0xff] %v5369_v23  ;;  %4787 = vst [vmem:[%s7405_s16 + $0x360] sm:$0xff] %v5370_v29  ;;  %v3700_v3 = vpop.f32.mrb[176].mxu0  ;;  %v3813_v41 = vpop.f32.mrb[208].mxu1 }
 0x4f7   : > { %v3701_v28 = vadd.f32 %v3700_v3, %v7625_v7  ;;  %v3814_v47 = vadd.f32 %v3813_v41, %v7630_v43  ;;  %v3702_v9 = vpop.f32.mrb[177].mxu0  ;;  %v3815_v54 = vpop.f32.mrb[209].mxu1 }
 0x4f8   : > { %v3703_v20 = vadd.f32 %v3702_v9, %v7637_v55  ;;  %v3816_v38 = vadd.f32 %v3815_v54, %v7642_v31  ;;  %v3704_v33 = vpop.f32.mrb[178].mxu0  ;;  %v3817_v56 = vpop.f32.mrb[210].mxu1 }
 0x4f9   : > { %v3705_v22 = vadd.f32 %v3704_v33, %v7625_v7  ;;  %v3818_v26 = vadd.f32 %v3817_v56, %v7630_v43  ;;  %v3706_v24 = vpop.f32.mrb[179].mxu0  ;;  %v3819_v48 = vpop.f32.mrb[211].mxu1 }
 0x4fa   : > { %v5266_v58 = vpack.c.bf16 %v3703_v20, %v3701_v28  ;;  %v5267_v32 = vpack.c.bf16 %v3816_v38, %v3814_v47  ;;  %v3707_v51 = vadd.f32 %v3706_v24, %v7637_v55  ;;  %v3820_v59 = vadd.f32 %v3819_v48, %v7642_v31 }
 0x4fc   : > { %4681 = vst [vmem:[%s7405_s16 + $0x20] sm:$0xff] %v5266_v58  ;;  %4682 = vst [vmem:[%s7405_s16 + $0x28] sm:$0xff] %v5267_v32  ;;  %v5273_v53 = vpack.c.bf16 %v3707_v51, %v3705_v22  ;;  %v5274_v60 = vpack.c.bf16 %v3820_v59, %v3818_v26 }
 0x4fe   : > { %4690 = vst [vmem:[%s7405_s16 + $0x58] sm:$0xff] %v5273_v53  ;;  %4691 = vst [vmem:[%s7405_s16 + $0x60] sm:$0xff] %v5274_v60  ;;  %v3710_v52 = vpop.f32.mrb[180].mxu0  ;;  %v3823_v61 = vpop.f32.mrb[212].mxu1 }
 0x4ff   : > { %v3711_v37 = vadd.f32 %v3710_v52, %v7625_v7  ;;  %v3824_v62 = vadd.f32 %v3823_v61, %v7630_v43  ;;  %v3712_v13 = vpop.f32.mrb[181].mxu0  ;;  %v3825_v0 = vpop.f32.mrb[213].mxu1 }
 0x500   : > { %v3713_v1 = vadd.f32 %v3712_v13, %v7637_v55  ;;  %v3826_v2 = vadd.f32 %v3825_v0, %v7642_v31  ;;  %v3714_v12 = vpop.f32.mrb[182].mxu0  ;;  %v3827_v45 = vpop.f32.mrb[214].mxu1 }
 0x501   : > { %v3715_v14 = vadd.f32 %v3714_v12, %v7625_v7  ;;  %v3828_v49 = vadd.f32 %v3827_v45, %v7630_v43  ;;  %v3716_v6 = vpop.f32.mrb[183].mxu0  ;;  %v3829_v18 = vpop.f32.mrb[215].mxu1 }
 0x502   : > { %v5280_v5 = vpack.c.bf16 %v3713_v1, %v3711_v37  ;;  %v5281_v4 = vpack.c.bf16 %v3826_v2, %v3824_v62  ;;  %v3717_v35 = vadd.f32 %v3716_v6, %v7637_v55  ;;  %v3830_v8 = vadd.f32 %v3829_v18, %v7642_v31 }
 0x504   : > { %4697 = vst [vmem:[%s7405_s16 + $0x90] sm:$0xff] %v5280_v5  ;;  %4698 = vst [vmem:[%s7405_s16 + $0x98] sm:$0xff] %v5281_v4  ;;  %v5287_v15 = vpack.c.bf16 %v3717_v35, %v3715_v14  ;;  %v5288_v16 = vpack.c.bf16 %v3830_v8, %v3828_v49 }
 0x506   : > { %4704 = vst [vmem:[%s7405_s16 + $0xc8] sm:$0xff] %v5287_v15  ;;  %4705 = vst [vmem:[%s7405_s16 + $0xd0] sm:$0xff] %v5288_v16  ;;  %v3720_v11 = vpop.f32.mrb[184].mxu0  ;;  %v3833_v19 = vpop.f32.mrb[216].mxu1 }
 0x507   : > { %v3721_v21 = vadd.f32 %v3720_v11, %v7625_v7  ;;  %v3834_v57 = vadd.f32 %v3833_v19, %v7630_v43  ;;  %v3722_v50 = vpop.f32.mrb[185].mxu0  ;;  %v3835_v27 = vpop.f32.mrb[217].mxu1 }
 0x508   : > { %v3723_v34 = vadd.f32 %v3722_v50, %v7637_v55  ;;  %v3836_v39 = vadd.f32 %v3835_v27, %v7642_v31  ;;  %v3724_v40 = vpop.f32.mrb[186].mxu0  ;;  %v3837_v42 = vpop.f32.mrb[218].mxu1 }
 0x509   : > { %v3725_v44 = vadd.f32 %v3724_v40, %v7625_v7  ;;  %v3838_v63 = vadd.f32 %v3837_v42, %v7630_v43  ;;  %v3726_v25 = vpop.f32.mrb[187].mxu0  ;;  %v3839_v46 = vpop.f32.mrb[219].mxu1 }
 0x50a   : > { %v5294_v23 = vpack.c.bf16 %v3723_v34, %v3721_v21  ;;  %v5295_v29 = vpack.c.bf16 %v3836_v39, %v3834_v57  ;;  %v3727_v3 = vadd.f32 %v3726_v25, %v7637_v55  ;;  %v3840_v41 = vadd.f32 %v3839_v46, %v7642_v31 }
 0x50c   : > { %4711 = vst [vmem:[%s7405_s16 + $0x100] sm:$0xff] %v5294_v23  ;;  %4712 = vst [vmem:[%s7405_s16 + $0x108] sm:$0xff] %v5295_v29  ;;  %v5301_v28 = vpack.c.bf16 %v3727_v3, %v3725_v44  ;;  %v5302_v47 = vpack.c.bf16 %v3840_v41, %v3838_v63 }
 0x50e   : > { %4718 = vst [vmem:[%s7405_s16 + $0x138] sm:$0xff] %v5301_v28  ;;  %4719 = vst [vmem:[%s7405_s16 + $0x140] sm:$0xff] %v5302_v47  ;;  %v3730_v9 = vpop.f32.mrb[188].mxu0  ;;  %v3843_v54 = vpop.f32.mrb[220].mxu1 }
 0x50f   : > { %v3731_v20 = vadd.f32 %v3730_v9, %v7625_v7  ;;  %v3844_v38 = vadd.f32 %v3843_v54, %v7630_v43  ;;  %v3732_v33 = vpop.f32.mrb[189].mxu0  ;;  %v3845_v56 = vpop.f32.mrb[221].mxu1 }
 0x510   : > { %v3733_v22 = vadd.f32 %v3732_v33, %v7637_v55  ;;  %v3846_v26 = vadd.f32 %v3845_v56, %v7642_v31  ;;  %v3734_v24 = vpop.f32.mrb[190].mxu0  ;;  %v3847_v48 = vpop.f32.mrb[222].mxu1 }
 0x511   : > { %v3735_v58 = vadd.f32 %v3734_v24, %v7625_v7  ;;  %v3848_v32 = vadd.f32 %v3847_v48, %v7630_v43  ;;  %v3736_v51 = vpop.f32.mrb[191].mxu0  ;;  %v3849_v59 = vpop.f32.mrb[223].mxu1 }
 0x512   : > { %v5308_v53 = vpack.c.bf16 %v3733_v22, %v3731_v20  ;;  %v5309_v60 = vpack.c.bf16 %v3846_v26, %v3844_v38  ;;  %v3737_v52 = vadd.f32 %v3736_v51, %v7637_v55  ;;  %v3850_v61 = vadd.f32 %v3849_v59, %v7642_v31 }
 0x514   : > { %4725 = vst [vmem:[%s7405_s16 + $0x170] sm:$0xff] %v5308_v53  ;;  %4726 = vst [vmem:[%s7405_s16 + $0x178] sm:$0xff] %v5309_v60  ;;  %v5315_v37 = vpack.c.bf16 %v3737_v52, %v3735_v58  ;;  %v5316_v62 = vpack.c.bf16 %v3850_v61, %v3848_v32 }
 0x516   : > { %4732 = vst [vmem:[%s7405_s16 + $0x1a8] sm:$0xff] %v5315_v37  ;;  %4733 = vst [vmem:[%s7405_s16 + $0x1b0] sm:$0xff] %v5316_v62  ;;  %v3740_v13 = vpop.f32.mrb[192].mxu0  ;;  %v3853_v0 = vpop.f32.mrb[224].mxu1 }
 0x517   : > { %v3741_v1 = vadd.f32 %v3740_v13, %v7625_v7  ;;  %v3854_v2 = vadd.f32 %v3853_v0, %v7630_v43  ;;  %v3742_v12 = vpop.f32.mrb[193].mxu0  ;;  %v3855_v45 = vpop.f32.mrb[225].mxu1 }
 0x518   : > { %v3743_v14 = vadd.f32 %v3742_v12, %v7637_v55  ;;  %v3856_v49 = vadd.f32 %v3855_v45, %v7642_v31  ;;  %v3744_v6 = vpop.f32.mrb[194].mxu0  ;;  %v3857_v18 = vpop.f32.mrb[226].mxu1 }
 0x519   : > { %v3745_v5 = vadd.f32 %v3744_v6, %v7625_v7  ;;  %v3858_v4 = vadd.f32 %v3857_v18, %v7630_v43  ;;  %v3746_v35 = vpop.f32.mrb[195].mxu0  ;;  %v3859_v8 = vpop.f32.mrb[227].mxu1 }
 0x51a   : > { %v5322_v15 = vpack.c.bf16 %v3743_v14, %v3741_v1  ;;  %v5323_v16 = vpack.c.bf16 %v3856_v49, %v3854_v2  ;;  %v3747_v11 = vadd.f32 %v3746_v35, %v7637_v55  ;;  %v3860_v19 = vadd.f32 %v3859_v8, %v7642_v31 }
 0x51c   : > { %4739 = vst [vmem:[%s7405_s16 + $0x1e0] sm:$0xff] %v5322_v15  ;;  %4740 = vst [vmem:[%s7405_s16 + $0x1e8] sm:$0xff] %v5323_v16  ;;  %v5329_v21 = vpack.c.bf16 %v3747_v11, %v3745_v5  ;;  %v5330_v57 = vpack.c.bf16 %v3860_v19, %v3858_v4 }
 0x51e   : > { %4746 = vst [vmem:[%s7405_s16 + $0x218] sm:$0xff] %v5329_v21  ;;  %4747 = vst [vmem:[%s7405_s16 + $0x220] sm:$0xff] %v5330_v57  ;;  %v3750_v50 = vpop.f32.mrb[196].mxu0  ;;  %v3863_v27 = vpop.f32.mrb[228].mxu1 }
 0x51f   : > { %v3751_v34 = vadd.f32 %v3750_v50, %v7625_v7  ;;  %v3864_v39 = vadd.f32 %v3863_v27, %v7630_v43  ;;  %v3752_v40 = vpop.f32.mrb[197].mxu0  ;;  %v3865_v42 = vpop.f32.mrb[229].mxu1 }
 0x520   : > { %v3753_v44 = vadd.f32 %v3752_v40, %v7637_v55  ;;  %v3866_v63 = vadd.f32 %v3865_v42, %v7642_v31  ;;  %v3754_v25 = vpop.f32.mrb[198].mxu0  ;;  %v3867_v46 = vpop.f32.mrb[230].mxu1 }
 0x521   : > { %v3755_v23 = vadd.f32 %v3754_v25, %v7625_v7  ;;  %v3868_v29 = vadd.f32 %v3867_v46, %v7630_v43  ;;  %v3756_v3 = vpop.f32.mrb[199].mxu0  ;;  %v3869_v41 = vpop.f32.mrb[231].mxu1 }
 0x522   : > { %v5336_v28 = vpack.c.bf16 %v3753_v44, %v3751_v34  ;;  %v5337_v47 = vpack.c.bf16 %v3866_v63, %v3864_v39  ;;  %v3757_v9 = vadd.f32 %v3756_v3, %v7637_v55  ;;  %v3870_v54 = vadd.f32 %v3869_v41, %v7642_v31 }
 0x523   : > { %v7741_v34 = vrot.slane %v7616_v36, %v2991_v17 }
 0x524   : > { %4753 = vst [vmem:[%s7405_s16 + $0x250] sm:$0xff] %v5336_v28  ;;  %4754 = vst [vmem:[%s7405_s16 + $0x258] sm:$0xff] %v5337_v47  ;;  %v5343_v20 = vpack.c.bf16 %v3757_v9, %v3755_v23  ;;  %v5344_v38 = vpack.c.bf16 %v3870_v54, %v3868_v29 }
 0x526   : > { %4760 = vst [vmem:[%s7405_s16 + $0x288] sm:$0xff] %v5343_v20  ;;  %4761 = vst [vmem:[%s7405_s16 + $0x290] sm:$0xff] %v5344_v38  ;;  %v3760_v33 = vpop.f32.mrb[200].mxu0  ;;  %v3873_v56 = vpop.f32.mrb[232].mxu1 }
 0x527   : > { %v3761_v22 = vadd.f32 %v3760_v33, %v7625_v7  ;;  %v3874_v26 = vadd.f32 %v3873_v56, %v7630_v43  ;;  %v3762_v24 = vpop.f32.mrb[201].mxu0  ;;  %v3875_v48 = vpop.f32.mrb[233].mxu1 }
 0x528   : > { %v3763_v58 = vadd.f32 %v3762_v24, %v7637_v55  ;;  %v3876_v32 = vadd.f32 %v3875_v48, %v7642_v31  ;;  %v3764_v51 = vpop.f32.mrb[202].mxu0  ;;  %v3877_v59 = vpop.f32.mrb[234].mxu1 }
 0x529   : > { %v3765_v53 = vadd.f32 %v3764_v51, %v7625_v7  ;;  %v3878_v60 = vadd.f32 %v3877_v59, %v7630_v43  ;;  %v3766_v52 = vpop.f32.mrb[203].mxu0  ;;  %v3879_v61 = vpop.f32.mrb[235].mxu1 }
 0x52a   : > { %v5350_v37 = vpack.c.bf16 %v3763_v58, %v3761_v22  ;;  %v5351_v62 = vpack.c.bf16 %v3876_v32, %v3874_v26  ;;  %v3767_v13 = vadd.f32 %v3766_v52, %v7637_v55  ;;  %v3880_v0 = vadd.f32 %v3879_v61, %v7642_v31 }
 0x52c   : > { %4767 = vst [vmem:[%s7405_s16 + $0x2c0] sm:$0xff] %v5350_v37  ;;  %4768 = vst [vmem:[%s7405_s16 + $0x2c8] sm:$0xff] %v5351_v62  ;;  %v5357_v1 = vpack.c.bf16 %v3767_v13, %v3765_v53  ;;  %v5358_v2 = vpack.c.bf16 %v3880_v0, %v3878_v60 }
 0x52e   : > { %4774 = vst [vmem:[%s7405_s16 + $0x2f8] sm:$0xff] %v5357_v1  ;;  %4775 = vst [vmem:[%s7405_s16 + $0x300] sm:$0xff] %v5358_v2  ;;  %v3770_v12 = vpop.f32.mrb[204].mxu0  ;;  %v3883_v45 = vpop.f32.mrb[236].mxu1 }
 0x52f   : > { %v3771_v14 = vadd.f32 %v3770_v12, %v7625_v7  ;;  %v3884_v49 = vadd.f32 %v3883_v45, %v7630_v43  ;;  %v3772_v6 = vpop.f32.mrb[205].mxu0  ;;  %v3885_v18 = vpop.f32.mrb[237].mxu1 }
 0x530   : > { %v3773_v5 = vadd.f32 %v3772_v6, %v7637_v55  ;;  %v3886_v4 = vadd.f32 %v3885_v18, %v7642_v31  ;;  %v3774_v35 = vpop.f32.mrb[206].mxu0  ;;  %v3887_v8 = vpop.f32.mrb[238].mxu1 }
 0x531   : > { %v3775_v15 = vadd.f32 %v3774_v35, %v7625_v7  ;;  %v3888_v16 = vadd.f32 %v3887_v8, %v7630_v43  ;;  %v3776_v11 = vpop.f32.mrb[207].mxu0  ;;  %v3889_v19 = vpop.f32.mrb[239].mxu1  ;;  %v7748_v43 = vrot.slane %v7616_v36, %v2995_v30 }
 0x532   : > { %v5364_v21 = vpack.c.bf16 %v3773_v5, %v3771_v14  ;;  %v5365_v57 = vpack.c.bf16 %v3886_v4, %v3884_v49  ;;  %v3777_v50 = vadd.f32 %v3776_v11, %v7637_v55  ;;  %v3890_v27 = vadd.f32 %v3889_v19, %v7642_v31 }
 0x534   : > { %4781 = vst [vmem:[%s7405_s16 + $0x330] sm:$0xff] %v5364_v21  ;;  %4782 = vst [vmem:[%s7405_s16 + $0x338] sm:$0xff] %v5365_v57  ;;  %v5371_v39 = vpack.c.bf16 %v3777_v50, %v3775_v15  ;;  %v5372_v7 = vpack.c.bf16 %v3890_v27, %v3888_v16 }
 0x536   : > { %4788 = vst [vmem:[%s7405_s16 + $0x368] sm:$0xff] %v5371_v39  ;;  %4789 = vst [vmem:[%s7405_s16 + $0x370] sm:$0xff] %v5372_v7  ;;  %v3926_v55 = vpop.f32.mrb[208].mxu0 }
 0x537   : > { %v3927_v31 = vadd.f32 %v3926_v55, %v7741_v34  ;;  %v3928_v40 = vpop.f32.mrb[209].mxu0 }
 0x538   : > { %v3929_v17 = vadd.f32 %v3928_v40, %v7748_v43  ;;  %v3930_v42 = vpop.f32.mrb[210].mxu0 }
 0x539   : > { %v3931_v10 = vadd.f32 %v3930_v42, %v7741_v34  ;;  %v3932_v30 = vpop.f32.mrb[211].mxu0 }
 0x53a   : > { %v5268_v36 = vpack.c.bf16 %v3929_v17, %v3927_v31  ;;  %v3933_v63 = vadd.f32 %v3932_v30, %v7748_v43 }
 0x53c   : > { %4685 = vst.msk [vmem:[%s7405_s16 + $0x30] sm:$0xff] %vm7755_vm9, %v5268_v36  ;;  %v5275_v25 = vpack.c.bf16 %v3933_v63, %v3931_v10 }
 0x53e   : > { %4692 = vst.msk [vmem:[%s7405_s16 + $0x68] sm:$0xff] %vm7755_vm9, %v5275_v25  ;;  %v3936_v46 = vpop.f32.mrb[212].mxu0 }
 0x53f   : > { %v3937_v23 = vadd.f32 %v3936_v46, %v7741_v34  ;;  %v3938_v29 = vpop.f32.mrb[213].mxu0 }
 0x540   : > { %v3939_v3 = vadd.f32 %v3938_v29, %v7748_v43  ;;  %v3940_v41 = vpop.f32.mrb[214].mxu0 }
 0x541   : > { %v3941_v28 = vadd.f32 %v3940_v41, %v7741_v34  ;;  %v3942_v47 = vpop.f32.mrb[215].mxu0 }
 0x542   : > { %v5282_v9 = vpack.c.bf16 %v3939_v3, %v3937_v23  ;;  %v3943_v54 = vadd.f32 %v3942_v47, %v7748_v43 }
 0x544   : > { %4699 = vst.msk [vmem:[%s7405_s16 + $0xa0] sm:$0xff] %vm7755_vm9, %v5282_v9  ;;  %v5289_v20 = vpack.c.bf16 %v3943_v54, %v3941_v28 }
 0x546   : > { %4706 = vst.msk [vmem:[%s7405_s16 + $0xd8] sm:$0xff] %vm7755_vm9, %v5289_v20  ;;  %v3946_v38 = vpop.f32.mrb[216].mxu0 }
 0x547   : > { %v3947_v33 = vadd.f32 %v3946_v38, %v7741_v34  ;;  %v3948_v56 = vpop.f32.mrb[217].mxu0 }
 0x548   : > { %v3949_v22 = vadd.f32 %v3948_v56, %v7748_v43  ;;  %v3950_v26 = vpop.f32.mrb[218].mxu0 }
 0x549   : > { %v3951_v24 = vadd.f32 %v3950_v26, %v7741_v34  ;;  %v3952_v48 = vpop.f32.mrb[219].mxu0 }
 0x54a   : > { %v5296_v58 = vpack.c.bf16 %v3949_v22, %v3947_v33  ;;  %v3953_v32 = vadd.f32 %v3952_v48, %v7748_v43 }
 0x54c   : > { %4713 = vst.msk [vmem:[%s7405_s16 + $0x110] sm:$0xff] %vm7755_vm9, %v5296_v58  ;;  %v5303_v51 = vpack.c.bf16 %v3953_v32, %v3951_v24 }
 0x54e   : > { %4720 = vst.msk [vmem:[%s7405_s16 + $0x148] sm:$0xff] %vm7755_vm9, %v5303_v51  ;;  %v3956_v59 = vpop.f32.mrb[220].mxu0 }
 0x54f   : > { %v3957_v53 = vadd.f32 %v3956_v59, %v7741_v34  ;;  %v3958_v60 = vpop.f32.mrb[221].mxu0 }
 0x550   : > { %v3959_v52 = vadd.f32 %v3958_v60, %v7748_v43  ;;  %v3960_v61 = vpop.f32.mrb[222].mxu0 }
 0x551   : > { %v3961_v37 = vadd.f32 %v3960_v61, %v7741_v34  ;;  %v3962_v62 = vpop.f32.mrb[223].mxu0 }
 0x552   : > { %v5310_v13 = vpack.c.bf16 %v3959_v52, %v3957_v53  ;;  %v3963_v0 = vadd.f32 %v3962_v62, %v7748_v43 }
 0x554   : > { %4727 = vst.msk [vmem:[%s7405_s16 + $0x180] sm:$0xff] %vm7755_vm9, %v5310_v13  ;;  %v5317_v1 = vpack.c.bf16 %v3963_v0, %v3961_v37 }
 0x556   : > { %4734 = vst.msk [vmem:[%s7405_s16 + $0x1b8] sm:$0xff] %vm7755_vm9, %v5317_v1  ;;  %v3966_v2 = vpop.f32.mrb[224].mxu0 }
 0x557   : > { %v3967_v12 = vadd.f32 %v3966_v2, %v7741_v34  ;;  %v3968_v45 = vpop.f32.mrb[225].mxu0 }
 0x558   : > { %v3969_v14 = vadd.f32 %v3968_v45, %v7748_v43  ;;  %v3970_v49 = vpop.f32.mrb[226].mxu0 }
 0x559   : > { %v3971_v6 = vadd.f32 %v3970_v49, %v7741_v34  ;;  %v3972_v18 = vpop.f32.mrb[227].mxu0 }
 0x55a   : > { %v5324_v5 = vpack.c.bf16 %v3969_v14, %v3967_v12  ;;  %v3973_v4 = vadd.f32 %v3972_v18, %v7748_v43 }
 0x55c   : > { %4741 = vst.msk [vmem:[%s7405_s16 + $0x1f0] sm:$0xff] %vm7755_vm9, %v5324_v5  ;;  %v5331_v35 = vpack.c.bf16 %v3973_v4, %v3971_v6 }
 0x55e   : > { %4748 = vst.msk [vmem:[%s7405_s16 + $0x228] sm:$0xff] %vm7755_vm9, %v5331_v35  ;;  %v3976_v8 = vpop.f32.mrb[228].mxu0 }
 0x55f   : > { %v3977_v15 = vadd.f32 %v3976_v8, %v7741_v34  ;;  %v3978_v16 = vpop.f32.mrb[229].mxu0 }
 0x560   : > { %v3979_v11 = vadd.f32 %v3978_v16, %v7748_v43  ;;  %v3980_v19 = vpop.f32.mrb[230].mxu0 }
 0x561   : > { %v3981_v21 = vadd.f32 %v3980_v19, %v7741_v34  ;;  %v3982_v57 = vpop.f32.mrb[231].mxu0 }
 0x562   : > { %v5338_v50 = vpack.c.bf16 %v3979_v11, %v3977_v15  ;;  %v3983_v27 = vadd.f32 %v3982_v57, %v7748_v43 }
 0x564   : > { %4755 = vst.msk [vmem:[%s7405_s16 + $0x260] sm:$0xff] %vm7755_vm9, %v5338_v50  ;;  %v5345_v39 = vpack.c.bf16 %v3983_v27, %v3981_v21 }
 0x566   : > { %4762 = vst.msk [vmem:[%s7405_s16 + $0x298] sm:$0xff] %vm7755_vm9, %v5345_v39  ;;  %v3986_v7 = vpop.f32.mrb[232].mxu0 }
 0x567   : > { %v3987_v55 = vadd.f32 %v3986_v7, %v7741_v34  ;;  %v3988_v31 = vpop.f32.mrb[233].mxu0 }
 0x568   : > { %v3989_v40 = vadd.f32 %v3988_v31, %v7748_v43  ;;  %v3990_v17 = vpop.f32.mrb[234].mxu0 }
 0x569   : > { %v3991_v42 = vadd.f32 %v3990_v17, %v7741_v34  ;;  %v3992_v10 = vpop.f32.mrb[235].mxu0 }
 0x56a   : > { %v5352_v30 = vpack.c.bf16 %v3989_v40, %v3987_v55  ;;  %v3993_v36 = vadd.f32 %v3992_v10, %v7748_v43 }
 0x56c   : > { %4769 = vst.msk [vmem:[%s7405_s16 + $0x2d0] sm:$0xff] %vm7755_vm9, %v5352_v30  ;;  %v5359_v63 = vpack.c.bf16 %v3993_v36, %v3991_v42 }
 0x56e   : > { %4776 = vst.msk [vmem:[%s7405_s16 + $0x308] sm:$0xff] %vm7755_vm9, %v5359_v63  ;;  %v3996_v25 = vpop.f32.mrb[236].mxu0 }
 0x56f   : > { %v3997_v46 = vadd.f32 %v3996_v25, %v7741_v34  ;;  %v3998_v23 = vpop.f32.mrb[237].mxu0 }
 0x570   : > { %v3999_v29 = vadd.f32 %v3998_v23, %v7748_v43  ;;  %v4000_v3 = vpop.f32.mrb[238].mxu0 }
 0x571   : > { %v4001_v41 = vadd.f32 %v4000_v3, %v7741_v34  ;;  %v4002_v28 = vpop.f32.mrb[239].mxu0 }
 0x572   : > { %v5366_v47 = vpack.c.bf16 %v3999_v29, %v3997_v46  ;;  %v4003_v9 = vadd.f32 %v4002_v28, %v7748_v43 }
 0x574   : > { %4783 = vst.msk [vmem:[%s7405_s16 + $0x340] sm:$0xff] %vm7755_vm9, %v5366_v47  ;;  %v5373_v54 = vpack.c.bf16 %v4003_v9, %v4001_v41 }
 0x576   : > { %4790 = vst.msk [vmem:[%s7405_s16 + $0x378] sm:$0xff] %vm7755_vm9, %v5373_v54 }
 0x577 PF: > { %s19_s30 = sadd.s32 1, %s6230_s30  }
 0x578   : > { %p16_p4 = scmp.ge.s32.totalorder %s19_s30, 6  }
 0x57a   :  { %18 = sbr.rel (!%p16_p4) target bundleno = 1 (0x1), region = 86 }

</bundles_post_ra>
